<compile_context>
chip_gen: v7x
topology: tpu7x:2x2x1
jax: 0.10.0
libtpu: 0.0.40
codegen_flags: <defaults>
</compile_context>

<pallas_src>
import functools

import jax
import jax.numpy as jnp
import numpy as np
from jax.experimental import pallas as pl
from jax.experimental.pallas import tpu as pltpu  # noqa: F401  (TPU backend)

# ----------------------------- model config ---------------------------------
HA1, HA2, HA3 = 8, 8, 8
STATE_DIM = HA1 + HA2 + HA3 + 2          # 26
HIDDEN1, HIDDEN2, HIDDEN3 = 32, 32, 32
ACTION_DIM = 4
N_LSTM = 64                              # LSTM hidden size (n = 64 in __init__)
E_MIN, E_MAX = -1.0, 1.0
BATCH = 2

T = HA1                                  # all three sequences have length 8
G = 3 * N_LSTM                           # 192 : packed hidden [h1|h2|h3]
GW = 4 * G                               # 768 : packed gates  [i|f|o|g]


# ------------------------------ Pallas kernel --------------------------------
def policy_kernel(x_ref, wx_ref, bx_ref, whh_ref,
                  w1h_ref, w1x_ref, b1_ref, w2_ref, b2_ref,
                  w3_ref, b3_ref, w4_ref, b4_ref, out_ref, *, e_min, e_max):
    """Fused 3xLSTM + MLP forward.

    x_ref   : [B, 26]           full state
    wx_ref  : [26, T*768]       input->gate weights for every timestep (packed)
    bx_ref  : [1, T*768]        combined biases (b_ih + b_hh), tiled over T
    whh_ref : [192, 768]        block-structured recurrent weights (h @ W layout)
    w1h_ref : [192, H1], w1x_ref: [2, H1]  split fc1
    w2..w4, b1..b4              remaining MLP params
    out_ref : [B, 4]
    """
    x = x_ref[...]                                                   # [B, 26]
    B = x.shape[0]

    # All input contributions for all timesteps / gates / LSTMs in one matmul,
    # biases folded in, so the recurrence loop is matmul + activations only.
    xw = jnp.dot(x, wx_ref[...], preferred_element_type=jnp.float32) + bx_ref[...]

    whh = whh_ref[...]                                               # [G, GW]
    h = jnp.zeros((B, G), jnp.float32)
    c = jnp.zeros((B, G), jnp.float32)

    for t in range(T):                                               # static unroll, T=8
        pre = xw[:, t * GW:(t + 1) * GW] + jnp.dot(
            h, whh, preferred_element_type=jnp.float32)              # [B, 768]
        sig = jax.nn.sigmoid(pre[:, :3 * G])                         # i|f|o  [B, 576]
        g = jnp.tanh(pre[:, 3 * G:])                                 # g      [B, 192]
        i = sig[:, :G]
        f = sig[:, G:2 * G]
        o = sig[:, 2 * G:]
        c = f * c + i * g
        h = o * jnp.tanh(c)

    # MLP on feat = [h1|h2|h3 | x[:, -2:]]  (fc1 split to avoid a lane concat).
    x_tail = x[:, STATE_DIM - 2:]                                    # [B, 2]
    a = (jnp.dot(h, w1h_ref[...], preferred_element_type=jnp.float32)
         + jnp.dot(x_tail, w1x_ref[...], preferred_element_type=jnp.float32)
         + b1_ref[...])
    a = jnp.maximum(a, 0.0)
    a = jnp.maximum(
        jnp.dot(a, w2_ref[...], preferred_element_type=jnp.float32) + b2_ref[...], 0.0)
    a = jnp.maximum(
        jnp.dot(a, w3_ref[...], preferred_element_type=jnp.float32) + b3_ref[...], 0.0)
    a = jnp.dot(a, w4_ref[...], preferred_element_type=jnp.float32) + b4_ref[...]
    out_ref[...] = jnp.clip(a, e_min, e_max)                         # Hardtanh


# ------------------------------ wrapper ---------------------------------------
@jax.jit
def policy_forward(x, packed):
    kern = functools.partial(policy_kernel, e_min=E_MIN, e_max=E_MAX)
    # Gridless call: batch + all weights fit comfortably in VMEM, so every
    # operand is a single full-array block (no pipelining needed).
    return pl.pallas_call(
        kern,
        out_shape=jax.ShapeDtypeStruct((x.shape[0], ACTION_DIM), jnp.float32),
    )(x, packed["wx"], packed["bx"], packed["whh"],
      packed["w1h"], packed["w1x"], packed["b1"],
      packed["w2"], packed["b2"], packed["w3"], packed["b3"],
      packed["w4"], packed["b4"])


# ------------------------------ param packing ---------------------------------
def pack_params(params):
    """Repack per-gate params (PyTorch layout, gate order i,f,g,o, combined
    bias b_ih+b_hh, whh pre-transposed for h@W) into the fused kernel layout."""
    H = N_LSTM
    assert HA1 == HA2 == HA3, "fused recurrence assumes equal sequence lengths"
    offsets = (0, HA1, HA1 + HA2)
    gate_slot = {0: 0, 1: 1, 2: 3, 3: 2}     # pytorch (i,f,g,o) -> packed (i,f,o,g)

    whh_big = np.zeros((G, GW), np.float32)
    wx_big = np.zeros((STATE_DIM, T * GW), np.float32)
    b_big = np.zeros((1, GW), np.float32)

    for k, name in enumerate(("rnn1", "rnn2", "rnn3")):
        wih, whh, b = (np.asarray(a) for a in params[name])   # [4,1,H],[4,H,H],[4,1,H]
        for pg in range(4):
            c0 = gate_slot[pg] * G + k * H
            whh_big[k * H:(k + 1) * H, c0:c0 + H] = whh[pg]
            b_big[0, c0:c0 + H] = b[pg, 0]
            for t in range(T):
                wx_big[offsets[k] + t, t * GW + c0:t * GW + c0 + H] = wih[pg, 0]

    bx_big = np.tile(b_big, (1, T))                            # [1, T*GW]

    w1, b1, w2, b2, w3, b3, w4, b4 = (np.asarray(a) for a in params["mlp"])
    packed = {
        "wx": wx_big, "bx": bx_big, "whh": whh_big,
        "w1h": w1[:G], "w1x": w1[G:], "b1": b1,
        "w2": w2, "b2": b2, "w3": w3, "b3": b3, "w4": w4, "b4": b4,
    }
    return {k: jnp.asarray(v) for k, v in packed.items()}


# --------------------------- pure-JAX reference -------------------------------
def lstm_last_h_ref(seq, wih, whh, b):
    B, Tl = seq.shape
    H = whh.shape[-1]
    h = jnp.zeros((B, H), jnp.float32)
    c = jnp.zeros((B, H), jnp.float32)
    for t in range(Tl):
        x_t = seq[:, t:t + 1]
        gi = jax.nn.sigmoid(x_t * wih[0] + h @ whh[0] + b[0])
        gf = jax.nn.sigmoid(x_t * wih[1] + h @ whh[1] + b[1])
        gg = jnp.tanh(x_t * wih[2] + h @ whh[2] + b[2])
        go = jax.nn.sigmoid(x_t * wih[3] + h @ whh[3] + b[3])
        c = gf * c + gi * gg
        h = go * jnp.tanh(c)
    return h


def policy_forward_ref(x, params):
    price = x[:, :HA1]
    pv = x[:, HA1:HA1 + HA2]
    load = x[:, HA1 + HA2:HA1 + HA2 + HA3]
    h1 = lstm_last_h_ref(price, *params["rnn1"])
    h2 = lstm_last_h_ref(pv, *params["rnn2"])
    h3 = lstm_last_h_ref(load, *params["rnn3"])
    h = jnp.concatenate([h1, h2, h3, x[:, -2:]], axis=1)
    w1, b1, w2, b2, w3, b3, w4, b4 = params["mlp"]
    h = jnp.maximum(h @ w1 + b1, 0.0)
    h = jnp.maximum(h @ w2 + b2, 0.0)
    h = jnp.maximum(h @ w3 + b3, 0.0)
    h = h @ w4 + b4
    return jnp.clip(h, E_MIN, E_MAX)


# ------------------------------ param init ------------------------------------
def init_params(key):
    """Deterministic synthetic init mirroring the PyTorch module's shapes.

    LSTM weights ~ U(-1/sqrt(H), 1/sqrt(H)) (PyTorch default); Linear weights
    ~ N(0, 0.001), biases ~ N(0, 0.01) (the module's initWeights).
    When importing real PyTorch weights: sum b_ih+b_hh and transpose weight_hh."""
    H = N_LSTM
    bound = 1.0 / np.sqrt(H)
    keys = jax.random.split(key, 17)          # 9 LSTM keys + 8 MLP keys
    ki = iter(keys)

    def lstm_params(k1, k2, k3):
        wih = jax.random.uniform(k1, (4, 1, H), jnp.float32, -bound, bound)
        whh = jax.random.uniform(k2, (4, H, H), jnp.float32, -bound, bound)
        b = jax.random.uniform(k3, (4, 1, H), jnp.float32, -bound, bound)
        return (wih, whh, b)

    rnn1 = lstm_params(next(ki), next(ki), next(ki))
    rnn2 = lstm_params(next(ki), next(ki), next(ki))
    rnn3 = lstm_params(next(ki), next(ki), next(ki))

    feat_dim = 3 * H + 2
    w1 = 0.001 * jax.random.normal(next(ki), (feat_dim, HIDDEN1), jnp.float32)
    b1 = 0.01 * jax.random.normal(next(ki), (1, HIDDEN1), jnp.float32)
    w2 = 0.001 * jax.random.normal(next(ki), (HIDDEN1, HIDDEN2), jnp.float32)
    b2 = 0.01 * jax.random.normal(next(ki), (1, HIDDEN2), jnp.float32)
    w3 = 0.001 * jax.random.normal(next(ki), (HIDDEN2, HIDDEN3), jnp.float32)
    b3 = 0.01 * jax.random.normal(next(ki), (1, HIDDEN3), jnp.float32)
    w4 = 0.001 * jax.random.normal(next(ki), (HIDDEN3, ACTION_DIM), jnp.float32)
    b4 = 0.01 * jax.random.normal(next(ki), (1, ACTION_DIM), jnp.float32)

    return {"rnn1": rnn1, "rnn2": rnn2, "rnn3": rnn3,
            "mlp": (w1, b1, w2, b2, w3, b3, w4, b4)}


# ----------------------------------- main --------------------------------------
if __name__ == "__main__":
    key = jax.random.PRNGKey(0)
    k_param, k_x = jax.random.split(key)
    params = init_params(k_param)
    packed = pack_params(params)
    x = jax.random.normal(k_x, (BATCH, STATE_DIM), jnp.float32)

    out = policy_forward(x, packed)
    out = jax.block_until_ready(out)

    ref = policy_forward_ref(x, params)
    assert out.shape == (BATCH, ACTION_DIM), out.shape
    np.testing.assert_allclose(np.asarray(out), np.asarray(ref),
                               rtol=1e-4, atol=1e-5)
    print("KERNEL_OK")
</pallas_src>

<mosaic_0001>
module attributes {stable_mosaic.version = 11 : i64} {
  func.func @policy_kernel(%arg0: memref<2x26xf32, #tpu.memory_space<vmem>>, %arg1: memref<26x6144xf32, #tpu.memory_space<vmem>>, %arg2: memref<1x6144xf32, #tpu.memory_space<vmem>>, %arg3: memref<192x768xf32, #tpu.memory_space<vmem>>, %arg4: memref<192x32xf32, #tpu.memory_space<vmem>>, %arg5: memref<2x32xf32, #tpu.memory_space<vmem>>, %arg6: memref<1x32xf32, #tpu.memory_space<vmem>>, %arg7: memref<32x32xf32, #tpu.memory_space<vmem>>, %arg8: memref<1x32xf32, #tpu.memory_space<vmem>>, %arg9: memref<32x32xf32, #tpu.memory_space<vmem>>, %arg10: memref<1x32xf32, #tpu.memory_space<vmem>>, %arg11: memref<32x4xf32, #tpu.memory_space<vmem>>, %arg12: memref<1x4xf32, #tpu.memory_space<vmem>>, %arg13: memref<2x4xf32, #tpu.memory_space<vmem>>) attributes {dimension_semantics = [], scalar_prefetch = 0 : i64, scratch_operands = 0 : i64, tpu.core_type = #tpu.core_type<tc>} {
    %c0 = arith.constant 0 : index
    %c0_0 = arith.constant 0 : index
    %0 = vector.load %arg0[%c0, %c0_0] : memref<2x26xf32, #tpu.memory_space<vmem>>, vector<2x26xf32>
    %c0_1 = arith.constant 0 : index
    %c0_2 = arith.constant 0 : index
    %1 = vector.load %arg1[%c0_1, %c0_2] : memref<26x6144xf32, #tpu.memory_space<vmem>>, vector<26x6144xf32>
    %cst = arith.constant dense<0.000000e+00> : vector<2x6144xf32>
    %2 = tpu.matmul %0, %1, %cst {dimension_numbers = #tpu.dot_dimension_numbers<[1], [0], [0], [1], [0, 0, 1, 1], [], []>} : vector<2x26xf32>, vector<26x6144xf32>, vector<2x6144xf32> -> vector<2x6144xf32>
    %c0_3 = arith.constant 0 : index
    %c0_4 = arith.constant 0 : index
    %3 = vector.load %arg2[%c0_3, %c0_4] : memref<1x6144xf32, #tpu.memory_space<vmem>>, vector<1x6144xf32>
    %4 = vector.broadcast %3 : vector<1x6144xf32> to vector<2x6144xf32>
    %5 = arith.addf %2, %4 : vector<2x6144xf32>
    %c0_5 = arith.constant 0 : index
    %c0_6 = arith.constant 0 : index
    %6 = vector.load %arg3[%c0_5, %c0_6] : memref<192x768xf32, #tpu.memory_space<vmem>>, vector<192x768xf32>
    %cst_7 = arith.constant 0.000000e+00 : f32
    %7 = vector.broadcast %cst_7 : f32 to vector<2x192xf32>
    %cst_8 = arith.constant 0.000000e+00 : f32
    %8 = vector.broadcast %cst_8 : f32 to vector<2x192xf32>
    %9 = vector.extract_strided_slice %5 {offsets = [0, 0], sizes = [2, 768], strides = [1, 1]} : vector<2x6144xf32> to vector<2x768xf32>
    %cst_9 = arith.constant dense<0.000000e+00> : vector<2x768xf32>
    %10 = tpu.matmul %7, %6, %cst_9 {dimension_numbers = #tpu.dot_dimension_numbers<[1], [0], [0], [1], [0, 0, 1, 1], [], []>} : vector<2x192xf32>, vector<192x768xf32>, vector<2x768xf32> -> vector<2x768xf32>
    %11 = arith.addf %9, %10 : vector<2x768xf32>
    %12 = vector.extract_strided_slice %11 {offsets = [0, 0], sizes = [2, 576], strides = [1, 1]} : vector<2x768xf32> to vector<2x576xf32>
    %13 = arith.negf %12 : vector<2x576xf32>
    %14 = math.exp %13 : vector<2x576xf32>
    %cst_10 = arith.constant 1.000000e+00 : f32
    %15 = vector.broadcast %cst_10 : f32 to vector<2x576xf32>
    %16 = arith.addf %15, %14 : vector<2x576xf32>
    %17 = arith.divf %15, %16 : vector<2x576xf32>
    %18 = vector.extract_strided_slice %11 {offsets = [0, 576], sizes = [2, 192], strides = [1, 1]} : vector<2x768xf32> to vector<2x192xf32>
    %19 = math.tanh %18 : vector<2x192xf32>
    %20 = vector.extract_strided_slice %17 {offsets = [0, 0], sizes = [2, 192], strides = [1, 1]} : vector<2x576xf32> to vector<2x192xf32>
    %21 = vector.extract_strided_slice %17 {offsets = [0, 192], sizes = [2, 192], strides = [1, 1]} : vector<2x576xf32> to vector<2x192xf32>
    %22 = vector.extract_strided_slice %17 {offsets = [0, 384], sizes = [2, 192], strides = [1, 1]} : vector<2x576xf32> to vector<2x192xf32>
    %23 = arith.mulf %21, %8 : vector<2x192xf32>
    %24 = arith.mulf %20, %19 : vector<2x192xf32>
    %25 = arith.addf %23, %24 : vector<2x192xf32>
    %26 = math.tanh %25 : vector<2x192xf32>
    %27 = arith.mulf %22, %26 : vector<2x192xf32>
    %28 = vector.extract_strided_slice %5 {offsets = [0, 768], sizes = [2, 768], strides = [1, 1]} : vector<2x6144xf32> to vector<2x768xf32>
    %cst_11 = arith.constant dense<0.000000e+00> : vector<2x768xf32>
    %29 = tpu.matmul %27, %6, %cst_11 {dimension_numbers = #tpu.dot_dimension_numbers<[1], [0], [0], [1], [0, 0, 1, 1], [], []>} : vector<2x192xf32>, vector<192x768xf32>, vector<2x768xf32> -> vector<2x768xf32>
    %30 = arith.addf %28, %29 : vector<2x768xf32>
    %31 = vector.extract_strided_slice %30 {offsets = [0, 0], sizes = [2, 576], strides = [1, 1]} : vector<2x768xf32> to vector<2x576xf32>
    %32 = arith.negf %31 : vector<2x576xf32>
    %33 = math.exp %32 : vector<2x576xf32>
    %cst_12 = arith.constant 1.000000e+00 : f32
    %34 = vector.broadcast %cst_12 : f32 to vector<2x576xf32>
    %35 = arith.addf %34, %33 : vector<2x576xf32>
    %36 = arith.divf %34, %35 : vector<2x576xf32>
    %37 = vector.extract_strided_slice %30 {offsets = [0, 576], sizes = [2, 192], strides = [1, 1]} : vector<2x768xf32> to vector<2x192xf32>
    %38 = math.tanh %37 : vector<2x192xf32>
    %39 = vector.extract_strided_slice %36 {offsets = [0, 0], sizes = [2, 192], strides = [1, 1]} : vector<2x576xf32> to vector<2x192xf32>
    %40 = vector.extract_strided_slice %36 {offsets = [0, 192], sizes = [2, 192], strides = [1, 1]} : vector<2x576xf32> to vector<2x192xf32>
    %41 = vector.extract_strided_slice %36 {offsets = [0, 384], sizes = [2, 192], strides = [1, 1]} : vector<2x576xf32> to vector<2x192xf32>
    %42 = arith.mulf %40, %25 : vector<2x192xf32>
    %43 = arith.mulf %39, %38 : vector<2x192xf32>
    %44 = arith.addf %42, %43 : vector<2x192xf32>
    %45 = math.tanh %44 : vector<2x192xf32>
    %46 = arith.mulf %41, %45 : vector<2x192xf32>
    %47 = vector.extract_strided_slice %5 {offsets = [0, 1536], sizes = [2, 768], strides = [1, 1]} : vector<2x6144xf32> to vector<2x768xf32>
    %cst_13 = arith.constant dense<0.000000e+00> : vector<2x768xf32>
    %48 = tpu.matmul %46, %6, %cst_13 {dimension_numbers = #tpu.dot_dimension_numbers<[1], [0], [0], [1], [0, 0, 1, 1], [], []>} : vector<2x192xf32>, vector<192x768xf32>, vector<2x768xf32> -> vector<2x768xf32>
    %49 = arith.addf %47, %48 : vector<2x768xf32>
    %50 = vector.extract_strided_slice %49 {offsets = [0, 0], sizes = [2, 576], strides = [1, 1]} : vector<2x768xf32> to vector<2x576xf32>
    %51 = arith.negf %50 : vector<2x576xf32>
    %52 = math.exp %51 : vector<2x576xf32>
    %cst_14 = arith.constant 1.000000e+00 : f32
    %53 = vector.broadcast %cst_14 : f32 to vector<2x576xf32>
    %54 = arith.addf %53, %52 : vector<2x576xf32>
    %55 = arith.divf %53, %54 : vector<2x576xf32>
    %56 = vector.extract_strided_slice %49 {offsets = [0, 576], sizes = [2, 192], strides = [1, 1]} : vector<2x768xf32> to vector<2x192xf32>
    %57 = math.tanh %56 : vector<2x192xf32>
    %58 = vector.extract_strided_slice %55 {offsets = [0, 0], sizes = [2, 192], strides = [1, 1]} : vector<2x576xf32> to vector<2x192xf32>
    %59 = vector.extract_strided_slice %55 {offsets = [0, 192], sizes = [2, 192], strides = [1, 1]} : vector<2x576xf32> to vector<2x192xf32>
    %60 = vector.extract_strided_slice %55 {offsets = [0, 384], sizes = [2, 192], strides = [1, 1]} : vector<2x576xf32> to vector<2x192xf32>
    %61 = arith.mulf %59, %44 : vector<2x192xf32>
    %62 = arith.mulf %58, %57 : vector<2x192xf32>
    %63 = arith.addf %61, %62 : vector<2x192xf32>
    %64 = math.tanh %63 : vector<2x192xf32>
    %65 = arith.mulf %60, %64 : vector<2x192xf32>
    %66 = vector.extract_strided_slice %5 {offsets = [0, 2304], sizes = [2, 768], strides = [1, 1]} : vector<2x6144xf32> to vector<2x768xf32>
    %cst_15 = arith.constant dense<0.000000e+00> : vector<2x768xf32>
    %67 = tpu.matmul %65, %6, %cst_15 {dimension_numbers = #tpu.dot_dimension_numbers<[1], [0], [0], [1], [0, 0, 1, 1], [], []>} : vector<2x192xf32>, vector<192x768xf32>, vector<2x768xf32> -> vector<2x768xf32>
    %68 = arith.addf %66, %67 : vector<2x768xf32>
    %69 = vector.extract_strided_slice %68 {offsets = [0, 0], sizes = [2, 576], strides = [1, 1]} : vector<2x768xf32> to vector<2x576xf32>
    %70 = arith.negf %69 : vector<2x576xf32>
    %71 = math.exp %70 : vector<2x576xf32>
    %cst_16 = arith.constant 1.000000e+00 : f32
    %72 = vector.broadcast %cst_16 : f32 to vector<2x576xf32>
    %73 = arith.addf %72, %71 : vector<2x576xf32>
    %74 = arith.divf %72, %73 : vector<2x576xf32>
    %75 = vector.extract_strided_slice %68 {offsets = [0, 576], sizes = [2, 192], strides = [1, 1]} : vector<2x768xf32> to vector<2x192xf32>
    %76 = math.tanh %75 : vector<2x192xf32>
    %77 = vector.extract_strided_slice %74 {offsets = [0, 0], sizes = [2, 192], strides = [1, 1]} : vector<2x576xf32> to vector<2x192xf32>
    %78 = vector.extract_strided_slice %74 {offsets = [0, 192], sizes = [2, 192], strides = [1, 1]} : vector<2x576xf32> to vector<2x192xf32>
    %79 = vector.extract_strided_slice %74 {offsets = [0, 384], sizes = [2, 192], strides = [1, 1]} : vector<2x576xf32> to vector<2x192xf32>
    %80 = arith.mulf %78, %63 : vector<2x192xf32>
    %81 = arith.mulf %77, %76 : vector<2x192xf32>
    %82 = arith.addf %80, %81 : vector<2x192xf32>
    %83 = math.tanh %82 : vector<2x192xf32>
    %84 = arith.mulf %79, %83 : vector<2x192xf32>
    %85 = vector.extract_strided_slice %5 {offsets = [0, 3072], sizes = [2, 768], strides = [1, 1]} : vector<2x6144xf32> to vector<2x768xf32>
    %cst_17 = arith.constant dense<0.000000e+00> : vector<2x768xf32>
    %86 = tpu.matmul %84, %6, %cst_17 {dimension_numbers = #tpu.dot_dimension_numbers<[1], [0], [0], [1], [0, 0, 1, 1], [], []>} : vector<2x192xf32>, vector<192x768xf32>, vector<2x768xf32> -> vector<2x768xf32>
    %87 = arith.addf %85, %86 : vector<2x768xf32>
    %88 = vector.extract_strided_slice %87 {offsets = [0, 0], sizes = [2, 576], strides = [1, 1]} : vector<2x768xf32> to vector<2x576xf32>
    %89 = arith.negf %88 : vector<2x576xf32>
    %90 = math.exp %89 : vector<2x576xf32>
    %cst_18 = arith.constant 1.000000e+00 : f32
    %91 = vector.broadcast %cst_18 : f32 to vector<2x576xf32>
    %92 = arith.addf %91, %90 : vector<2x576xf32>
    %93 = arith.divf %91, %92 : vector<2x576xf32>
    %94 = vector.extract_strided_slice %87 {offsets = [0, 576], sizes = [2, 192], strides = [1, 1]} : vector<2x768xf32> to vector<2x192xf32>
    %95 = math.tanh %94 : vector<2x192xf32>
    %96 = vector.extract_strided_slice %93 {offsets = [0, 0], sizes = [2, 192], strides = [1, 1]} : vector<2x576xf32> to vector<2x192xf32>
    %97 = vector.extract_strided_slice %93 {offsets = [0, 192], sizes = [2, 192], strides = [1, 1]} : vector<2x576xf32> to vector<2x192xf32>
    %98 = vector.extract_strided_slice %93 {offsets = [0, 384], sizes = [2, 192], strides = [1, 1]} : vector<2x576xf32> to vector<2x192xf32>
    %99 = arith.mulf %97, %82 : vector<2x192xf32>
    %100 = arith.mulf %96, %95 : vector<2x192xf32>
    %101 = arith.addf %99, %100 : vector<2x192xf32>
    %102 = math.tanh %101 : vector<2x192xf32>
    %103 = arith.mulf %98, %102 : vector<2x192xf32>
    %104 = vector.extract_strided_slice %5 {offsets = [0, 3840], sizes = [2, 768], strides = [1, 1]} : vector<2x6144xf32> to vector<2x768xf32>
    %cst_19 = arith.constant dense<0.000000e+00> : vector<2x768xf32>
    %105 = tpu.matmul %103, %6, %cst_19 {dimension_numbers = #tpu.dot_dimension_numbers<[1], [0], [0], [1], [0, 0, 1, 1], [], []>} : vector<2x192xf32>, vector<192x768xf32>, vector<2x768xf32> -> vector<2x768xf32>
    %106 = arith.addf %104, %105 : vector<2x768xf32>
    %107 = vector.extract_strided_slice %106 {offsets = [0, 0], sizes = [2, 576], strides = [1, 1]} : vector<2x768xf32> to vector<2x576xf32>
    %108 = arith.negf %107 : vector<2x576xf32>
    %109 = math.exp %108 : vector<2x576xf32>
    %cst_20 = arith.constant 1.000000e+00 : f32
    %110 = vector.broadcast %cst_20 : f32 to vector<2x576xf32>
    %111 = arith.addf %110, %109 : vector<2x576xf32>
    %112 = arith.divf %110, %111 : vector<2x576xf32>
    %113 = vector.extract_strided_slice %106 {offsets = [0, 576], sizes = [2, 192], strides = [1, 1]} : vector<2x768xf32> to vector<2x192xf32>
    %114 = math.tanh %113 : vector<2x192xf32>
    %115 = vector.extract_strided_slice %112 {offsets = [0, 0], sizes = [2, 192], strides = [1, 1]} : vector<2x576xf32> to vector<2x192xf32>
    %116 = vector.extract_strided_slice %112 {offsets = [0, 192], sizes = [2, 192], strides = [1, 1]} : vector<2x576xf32> to vector<2x192xf32>
    %117 = vector.extract_strided_slice %112 {offsets = [0, 384], sizes = [2, 192], strides = [1, 1]} : vector<2x576xf32> to vector<2x192xf32>
    %118 = arith.mulf %116, %101 : vector<2x192xf32>
    %119 = arith.mulf %115, %114 : vector<2x192xf32>
    %120 = arith.addf %118, %119 : vector<2x192xf32>
    %121 = math.tanh %120 : vector<2x192xf32>
    %122 = arith.mulf %117, %121 : vector<2x192xf32>
    %123 = vector.extract_strided_slice %5 {offsets = [0, 4608], sizes = [2, 768], strides = [1, 1]} : vector<2x6144xf32> to vector<2x768xf32>
    %cst_21 = arith.constant dense<0.000000e+00> : vector<2x768xf32>
    %124 = tpu.matmul %122, %6, %cst_21 {dimension_numbers = #tpu.dot_dimension_numbers<[1], [0], [0], [1], [0, 0, 1, 1], [], []>} : vector<2x192xf32>, vector<192x768xf32>, vector<2x768xf32> -> vector<2x768xf32>
    %125 = arith.addf %123, %124 : vector<2x768xf32>
    %126 = vector.extract_strided_slice %125 {offsets = [0, 0], sizes = [2, 576], strides = [1, 1]} : vector<2x768xf32> to vector<2x576xf32>
    %127 = arith.negf %126 : vector<2x576xf32>
    %128 = math.exp %127 : vector<2x576xf32>
    %cst_22 = arith.constant 1.000000e+00 : f32
    %129 = vector.broadcast %cst_22 : f32 to vector<2x576xf32>
    %130 = arith.addf %129, %128 : vector<2x576xf32>
    %131 = arith.divf %129, %130 : vector<2x576xf32>
    %132 = vector.extract_strided_slice %125 {offsets = [0, 576], sizes = [2, 192], strides = [1, 1]} : vector<2x768xf32> to vector<2x192xf32>
    %133 = math.tanh %132 : vector<2x192xf32>
    %134 = vector.extract_strided_slice %131 {offsets = [0, 0], sizes = [2, 192], strides = [1, 1]} : vector<2x576xf32> to vector<2x192xf32>
    %135 = vector.extract_strided_slice %131 {offsets = [0, 192], sizes = [2, 192], strides = [1, 1]} : vector<2x576xf32> to vector<2x192xf32>
    %136 = vector.extract_strided_slice %131 {offsets = [0, 384], sizes = [2, 192], strides = [1, 1]} : vector<2x576xf32> to vector<2x192xf32>
    %137 = arith.mulf %135, %120 : vector<2x192xf32>
    %138 = arith.mulf %134, %133 : vector<2x192xf32>
    %139 = arith.addf %137, %138 : vector<2x192xf32>
    %140 = math.tanh %139 : vector<2x192xf32>
    %141 = arith.mulf %136, %140 : vector<2x192xf32>
    %142 = vector.extract_strided_slice %5 {offsets = [0, 5376], sizes = [2, 768], strides = [1, 1]} : vector<2x6144xf32> to vector<2x768xf32>
    %cst_23 = arith.constant dense<0.000000e+00> : vector<2x768xf32>
    %143 = tpu.matmul %141, %6, %cst_23 {dimension_numbers = #tpu.dot_dimension_numbers<[1], [0], [0], [1], [0, 0, 1, 1], [], []>} : vector<2x192xf32>, vector<192x768xf32>, vector<2x768xf32> -> vector<2x768xf32>
    %144 = arith.addf %142, %143 : vector<2x768xf32>
    %145 = vector.extract_strided_slice %144 {offsets = [0, 0], sizes = [2, 576], strides = [1, 1]} : vector<2x768xf32> to vector<2x576xf32>
    %146 = arith.negf %145 : vector<2x576xf32>
    %147 = math.exp %146 : vector<2x576xf32>
    %cst_24 = arith.constant 1.000000e+00 : f32
    %148 = vector.broadcast %cst_24 : f32 to vector<2x576xf32>
    %149 = arith.addf %148, %147 : vector<2x576xf32>
    %150 = arith.divf %148, %149 : vector<2x576xf32>
    %151 = vector.extract_strided_slice %144 {offsets = [0, 576], sizes = [2, 192], strides = [1, 1]} : vector<2x768xf32> to vector<2x192xf32>
    %152 = math.tanh %151 : vector<2x192xf32>
    %153 = vector.extract_strided_slice %150 {offsets = [0, 0], sizes = [2, 192], strides = [1, 1]} : vector<2x576xf32> to vector<2x192xf32>
    %154 = vector.extract_strided_slice %150 {offsets = [0, 192], sizes = [2, 192], strides = [1, 1]} : vector<2x576xf32> to vector<2x192xf32>
    %155 = vector.extract_strided_slice %150 {offsets = [0, 384], sizes = [2, 192], strides = [1, 1]} : vector<2x576xf32> to vector<2x192xf32>
    %156 = arith.mulf %154, %139 : vector<2x192xf32>
    %157 = arith.mulf %153, %152 : vector<2x192xf32>
    %158 = arith.addf %156, %157 : vector<2x192xf32>
    %159 = math.tanh %158 : vector<2x192xf32>
    %160 = arith.mulf %155, %159 : vector<2x192xf32>
    %161 = vector.extract_strided_slice %0 {offsets = [0, 24], sizes = [2, 2], strides = [1, 1]} : vector<2x26xf32> to vector<2x2xf32>
    %c0_25 = arith.constant 0 : index
    %c0_26 = arith.constant 0 : index
    %162 = vector.load %arg4[%c0_25, %c0_26] : memref<192x32xf32, #tpu.memory_space<vmem>>, vector<192x32xf32>
    %cst_27 = arith.constant dense<0.000000e+00> : vector<2x32xf32>
    %163 = tpu.matmul %160, %162, %cst_27 {dimension_numbers = #tpu.dot_dimension_numbers<[1], [0], [0], [1], [0, 0, 1, 1], [], []>} : vector<2x192xf32>, vector<192x32xf32>, vector<2x32xf32> -> vector<2x32xf32>
    %c0_28 = arith.constant 0 : index
    %c0_29 = arith.constant 0 : index
    %164 = vector.load %arg5[%c0_28, %c0_29] : memref<2x32xf32, #tpu.memory_space<vmem>>, vector<2x32xf32>
    %cst_30 = arith.constant dense<0.000000e+00> : vector<2x32xf32>
    %165 = tpu.matmul %161, %164, %cst_30 {dimension_numbers = #tpu.dot_dimension_numbers<[1], [0], [0], [1], [0, 0, 1, 1], [], []>} : vector<2x2xf32>, vector<2x32xf32>, vector<2x32xf32> -> vector<2x32xf32>
    %166 = arith.addf %163, %165 : vector<2x32xf32>
    %c0_31 = arith.constant 0 : index
    %c0_32 = arith.constant 0 : index
    %167 = vector.load %arg6[%c0_31, %c0_32] : memref<1x32xf32, #tpu.memory_space<vmem>>, vector<1x32xf32>
    %168 = vector.broadcast %167 : vector<1x32xf32> to vector<2x32xf32>
    %169 = arith.addf %166, %168 : vector<2x32xf32>
    %cst_33 = arith.constant 0.000000e+00 : f32
    %170 = vector.broadcast %cst_33 : f32 to vector<2x32xf32>
    %171 = arith.maximumf %169, %170 : vector<2x32xf32>
    %c0_34 = arith.constant 0 : index
    %c0_35 = arith.constant 0 : index
    %172 = vector.load %arg7[%c0_34, %c0_35] : memref<32x32xf32, #tpu.memory_space<vmem>>, vector<32x32xf32>
    %cst_36 = arith.constant dense<0.000000e+00> : vector<2x32xf32>
    %173 = tpu.matmul %171, %172, %cst_36 {dimension_numbers = #tpu.dot_dimension_numbers<[1], [0], [0], [1], [0, 0, 1, 1], [], []>} : vector<2x32xf32>, vector<32x32xf32>, vector<2x32xf32> -> vector<2x32xf32>
    %c0_37 = arith.constant 0 : index
    %c0_38 = arith.constant 0 : index
    %174 = vector.load %arg8[%c0_37, %c0_38] : memref<1x32xf32, #tpu.memory_space<vmem>>, vector<1x32xf32>
    %175 = vector.broadcast %174 : vector<1x32xf32> to vector<2x32xf32>
    %176 = arith.addf %173, %175 : vector<2x32xf32>
    %cst_39 = arith.constant 0.000000e+00 : f32
    %177 = vector.broadcast %cst_39 : f32 to vector<2x32xf32>
    %178 = arith.maximumf %176, %177 : vector<2x32xf32>
    %c0_40 = arith.constant 0 : index
    %c0_41 = arith.constant 0 : index
    %179 = vector.load %arg9[%c0_40, %c0_41] : memref<32x32xf32, #tpu.memory_space<vmem>>, vector<32x32xf32>
    %cst_42 = arith.constant dense<0.000000e+00> : vector<2x32xf32>
    %180 = tpu.matmul %178, %179, %cst_42 {dimension_numbers = #tpu.dot_dimension_numbers<[1], [0], [0], [1], [0, 0, 1, 1], [], []>} : vector<2x32xf32>, vector<32x32xf32>, vector<2x32xf32> -> vector<2x32xf32>
    %c0_43 = arith.constant 0 : index
    %c0_44 = arith.constant 0 : index
    %181 = vector.load %arg10[%c0_43, %c0_44] : memref<1x32xf32, #tpu.memory_space<vmem>>, vector<1x32xf32>
    %182 = vector.broadcast %181 : vector<1x32xf32> to vector<2x32xf32>
    %183 = arith.addf %180, %182 : vector<2x32xf32>
    %cst_45 = arith.constant 0.000000e+00 : f32
    %184 = vector.broadcast %cst_45 : f32 to vector<2x32xf32>
    %185 = arith.maximumf %183, %184 : vector<2x32xf32>
    %c0_46 = arith.constant 0 : index
    %c0_47 = arith.constant 0 : index
    %186 = vector.load %arg11[%c0_46, %c0_47] : memref<32x4xf32, #tpu.memory_space<vmem>>, vector<32x4xf32>
    %cst_48 = arith.constant dense<0.000000e+00> : vector<2x4xf32>
    %187 = tpu.matmul %185, %186, %cst_48 {dimension_numbers = #tpu.dot_dimension_numbers<[1], [0], [0], [1], [0, 0, 1, 1], [], []>} : vector<2x32xf32>, vector<32x4xf32>, vector<2x4xf32> -> vector<2x4xf32>
    %c0_49 = arith.constant 0 : index
    %c0_50 = arith.constant 0 : index
    %188 = vector.load %arg12[%c0_49, %c0_50] : memref<1x4xf32, #tpu.memory_space<vmem>>, vector<1x4xf32>
    %189 = vector.broadcast %188 : vector<1x4xf32> to vector<2x4xf32>
    %190 = arith.addf %187, %189 : vector<2x4xf32>
    %cst_51 = arith.constant -1.000000e+00 : f32
    %cst_52 = arith.constant 1.000000e+00 : f32
    %191 = vector.broadcast %cst_51 : f32 to vector<2x4xf32>
    %192 = arith.maximumf %191, %190 : vector<2x4xf32>
    %193 = vector.broadcast %cst_52 : f32 to vector<2x4xf32>
    %194 = arith.minimumf %193, %192 : vector<2x4xf32>
    %c0_53 = arith.constant 0 : index
    %c0_54 = arith.constant 0 : index
    %195 = vector.load %arg13[%c0_53, %c0_54] : memref<2x4xf32, #tpu.memory_space<vmem>>, vector<2x4xf32>
    tpu.vector_store %arg13[%c0_53, %c0_54], %194 {strides = array<i32>} : memref<2x4xf32, #tpu.memory_space<vmem>>, vector<2x4xf32>,
    return
  }
}

</mosaic_0001>

<bundles_post_ra>
// kernel: policy_forward.1
= control target key start
LH: loop header
LB: loop body
LE: loop exit
PB: predicated region body
PF: predicated region fallthrough
CT: control target
= control target key end

     0   :  { %18 = vsyncpa [#allocation3], 0  ;;  %s8854_s0 = inlined_call_operand.vmem [shape: f32[2,26], index: 0, kind: input, shape index: {}]   ;;  %s8855_s1 = inlined_call_operand.hbm [shape: f32[26,6144], index: 1, kind: input, shape index: {}]   ;;  %s8856_s2 = inlined_call_operand.vmem [shape: f32[1,6144], index: 2, kind: input, shape index: {}]   ;;  %s8857_s3 = inlined_call_operand.hbm [shape: f32[192,768], index: 3, kind: input, shape index: {}]   ;;  %s8858_s4 = inlined_call_operand.vmem [shape: f32[192,32], index: 4, kind: input, shape index: {}]   ;;  %s8859_s5 = inlined_call_operand.vmem [shape: f32[2,32], index: 5, kind: input, shape index: {}]   ;;  %s8860_s6 = inlined_call_operand.vmem [shape: f32[1,32], index: 6, kind: input, shape index: {}]   ;;  %s8861_s7 = inlined_call_operand.vmem [shape: f32[32,32], index: 7, kind: input, shape index: {}]   ;;  %s8862_s8 = inlined_call_operand.vmem [shape: f32[1,32], index: 8, kind: input, shape index: {}]   ;;  %s8863_s9 = inlined_call_operand.vmem [shape: f32[32,32], index: 9, kind: input, shape index: {}]   ;;  %s8864_s10 = inlined_call_operand.vmem [shape: f32[1,32], index: 10, kind: input, shape index: {}]   ;;  %s8865_s11 = inlined_call_operand.vmem [shape: f32[32,4], index: 11, kind: input, shape index: {}]   ;;  %s8866_s12 = inlined_call_operand.vmem [shape: f32[1,4], index: 12, kind: input, shape index: {}]   ;;  %s8867_s13 = inlined_call_operand.hbm [shape: f32[2,4], index: 13, kind: output, shape index: {}]  }
   0x1   :  { %19 = vsyncpa [#allocation6], 0 }
   0x2   :  { %20 = vsyncpa [#allocation4], 0  ;;  %s7355_s25 = smov [#allocation2]   ;;  %s7283_s29 = scalar_lea.hbm %s8855_s1, 24576 }
   0x3   :  { %s28_s26 = sshll.u32 %s7355_s25, 4  ;;  %p7284_p0 = scmp.ne.s32.totalorder %s8855_s1, %s7283_s29  ;;  %s29_s26 = int_to_ptr.vmem [resolvable:$true] %s28_s26 }
   0x4   :  { %p7287_p1 = scmp.lt.u32.totalorder %s7283_s29, %s8855_s1 }
   0x6   :  { %p7289_p2 = pnand %p7287_p1, %p7284_p0 }
   0x8   :  { %7292 = shalt.err (!%p7289_p2)
}
   0x9   :  { %s7293_s17 = scalar_lea.vmem %s29_s26, 24576  ;;  %p7298_p4 = scmp.lt.s32.totalorder %s29_s26, %s29_s26 }
   0xa   :  { %p7294_p3 = scmp.ne.s32.totalorder %s29_s26, %s7293_s17  ;;  %p7299_p5 = scmp.lt.s32.totalorder %s7293_s17, %s7293_s17 }
   0xc   :  { %p7300_p6 = por %p7299_p5, %p7298_p4 }
   0xe   :  { %p7301_p7 = pnand %p7300_p6, %p7294_p3 }
  0x10   :  { %7304 = shalt.err (!%p7301_p7)
}
  0x11   :  { %s7356_s18 = smov 6144   ;;  %s7357_s19 = smov 384  }
  0x12   :  { %34 = dma.hbm_to_vmem [thread:$0]  %s8855_s1, 24576, %s29_s26, [#allocation3], %s7356_s18, %s7356_s18, %s7357_s19  }
  0x13   :  { %s7358_s22 = smov [#allocation5]   ;;  %s7305_s27 = scalar_lea.hbm %s8857_s3, 18432 }
  0x14   :  { %s42_s23 = sshll.u32 %s7358_s22, 4  ;;  %p7306_p8 = scmp.ne.s32.totalorder %s8857_s3, %s7305_s27  ;;  %s43_s23 = int_to_ptr.vmem [resolvable:$true] %s42_s23 }
  0x15   :  { %p7309_p9 = scmp.lt.u32.totalorder %s7305_s27, %s8857_s3 }
  0x17   :  { %p7311_p10 = pnand %p7309_p9, %p7306_p8 }
  0x19   :  { %7314 = shalt.err (!%p7311_p10)
}
  0x1a   :  { %s7315_s15 = scalar_lea.vmem %s43_s23, 18432  ;;  %p7320_p12 = scmp.lt.s32.totalorder %s43_s23, %s43_s23 }
  0x1b   :  { %p7316_p11 = scmp.ne.s32.totalorder %s43_s23, %s7315_s15  ;;  %p7321_p13 = scmp.lt.s32.totalorder %s7315_s15, %s7315_s15 }
  0x1d   :  { %p7322_p0 = por %p7321_p13, %p7320_p12 }
  0x1f   :  { %p7323_p1 = pnand %p7322_p0, %p7316_p11 }
  0x21   :  { %7326 = shalt.err (!%p7323_p1)
}
  0x22   :  { %s7359_s1 = smov 768   ;;  %s7360_s26 = smov 48  }
  0x23   :  { %48 = dma.hbm_to_vmem [thread:$0]  %s8857_s3, 18432, %s43_s23, [#allocation6], %s7359_s1, %s7359_s1, %s7360_s26  }
  0x24   :  { %7349 = dma.done.wait [#allocation3], 24576  }
  0x25   :  { %7350 = vsyncadd [#allocation3], 4294942720 }
  0x26   :  { %7351 = dma.done.wait [#allocation6], 18432  }
  0x27   :  { %7352 = vsyncadd [#allocation6], 4294948864  ;;  %v8868_v0 = vmov 0.0   ;;  %vm522_vm0 = vcmask 1041408   ;;  %vm7362_vm1 = vmmov 1   ;;  %v75_v2 = vld [vmem:[#allocation2 + $0x8] sm:$0xff] }
  0x28   :  { %731 = vmatprep.mubr.f32.mxu0 %v8868_v0  ;;  %944 = vmatprep.mubr.f32.mxu1 %v8868_v0  ;;  %vm7465_vm2 = vmpackc.low %vm522_vm0, %vm7362_vm1  ;;  %v123_v3 = vld [vmem:[#allocation2 + $0x188] sm:$0xff]  ;;  %v81_v4 = vld [vmem:[#allocation2 + $0x38] sm:$0xff]  ;;  %vm518_vm3 = vcmask 211968   ;;  %s7363_s21 = smov 64   ;;  %vm2515_vm4 = vcmask 523264   ;;  %vm7365_vm5 = vmmov 0  }
  0x29   :  { %v5503_v5 = vpack.c.bf16 %v123_v3, %v75_v2  ;;  %v129_v6 = vld [vmem:[#allocation2 + $0x1b8] sm:$0xff]  ;;  %v74_v7 = vld [vmem:[#allocation2] sm:$0xff]  ;;  %v80_v11 = vld [vmem:[#allocation2 + $0x30] sm:$0xff]  ;;  %s7366_s25 = smov 104   ;;  %vm4871_vm6 = vcmask 15360   ;;  %vm5040_vm7 = vcmask 261120  }
  0x2a   :  { %v122_v8 = vld [vmem:[#allocation2 + $0x180] sm:$0xff]  ;;  %v5533_v9 = vpack.c.bf16 %v129_v6, %v81_v4  ;;  %v128_v12 = vld [vmem:[#allocation2 + $0x1b0] sm:$0xff]  ;;  %v171_v13 = vld [vmem:[#allocation2 + $0x308] sm:$0xff]  ;;  %s7367_s30 = smov [#allocation7]   ;;  %vm5286_vm8 = vcmask 25600  }
  0x2b   :  { %v5505_v10 = vpack.c.bf16 %v122_v8, %v74_v7  ;;  %5504 = vmatprep.subr.bf16.mxu0 %v5503_v5  ;;  %v5535_v14 = vpack.c.bf16 %v128_v12, %v80_v11  ;;  %v219_v15 = vld [vmem:[#allocation2 + $0x488] sm:$0x3]  ;;  %v177_v16 = vld [vmem:[#allocation2 + $0x338] sm:$0xff]  ;;  %v170_v20 = vld [vmem:[#allocation2 + $0x300] sm:$0xff]  ;;  %s5294_s14 = sshll.u32 %s7367_s30, 4  ;;  %s5295_s14 = int_to_ptr.vmem [resolvable:$true] %s5294_s14 }
  0x2c   :  { %v225_v17 = vld [vmem:[#allocation2 + $0x4b8] sm:$0x3]  ;;  %5534 = vmatprep.subr.bf16.mxu1 %v5533_v9  ;;  %v5507_v18 = vpack.c.bf16 %v219_v15, %v171_v13  ;;  %v218_v21 = vld [vmem:[#allocation2 + $0x480] sm:$0x3]  ;;  %v176_v22 = vld [vmem:[#allocation2 + $0x330] sm:$0xff]  ;;  %p7332_p3 = scmp.lt.s32.totalorder %s5295_s14, %s5295_s14 }
  0x2d   :  { %5506 = vmatpush1.bf16.msra.mxu0 %v5505_v10  ;;  %v5537_v19 = vpack.c.bf16 %v225_v17, %v177_v16  ;;  %5536 = vmatpush1.bf16.msra.mxu1 %v5535_v14  ;;  %v5510_v23 = vpack.c.bf16 %v218_v21, %v170_v20  ;;  %v224_v24 = vld [vmem:[#allocation2 + $0x4b0] sm:$0x3]  ;;  %v77_v25 = vld [vmem:[#allocation2 + $0x18] sm:$0xff]  ;;  %v7476_v31 = vld [vmem:[%s8854_s0] sm:$0x3] }
  0x2e   :  { %v125_v26 = vld [vmem:[#allocation2 + $0x198] sm:$0xff]  ;;  %5509 = vmatprep.subr.msk.bf16.mxu0 %vm7465_vm2, %v5507_v18  ;;  %v5540_v27 = vpack.c.bf16 %v224_v24, %v176_v22  ;;  %v76_v33 = vld [vmem:[#allocation2 + $0x10] sm:$0xff]  ;;  %v79_v49 = vld [vmem:[#allocation2 + $0x28] sm:$0xff] }
  0x2f   :  { %5539 = vmatprep.subr.msk.bf16.mxu1 %vm7465_vm2, %v5537_v19  ;;  %v5513_v28 = vpack.c.bf16 %v125_v26, %v77_v25  ;;  %v85_v29 = vld [vmem:[#allocation2 + $0x58] sm:$0xff]  ;;  %v124_v34 = vld [vmem:[#allocation2 + $0x190] sm:$0xff]  ;;  %v127_v50 = vld [vmem:[#allocation2 + $0x1a8] sm:$0xff] }
  0x30   :  { %v133_v30 = vld [vmem:[#allocation2 + $0x1d8] sm:$0xff]  ;;  %v84_v35 = vld [vmem:[#allocation2 + $0x50] sm:$0xff]  ;;  %v5515_v36 = vpack.c.bf16 %v124_v34, %v76_v33  ;;  %v5523_v55 = vpack.c.bf16 %v127_v50, %v79_v49  ;;  %v78_v56 = vld [vmem:[#allocation2 + $0x20] sm:$0xff] }
  0x31   :  { %v5553_v32 = vpack.c.bf16 %v133_v30, %v85_v29  ;;  %5512 = vmatpush1.bf16.msk.msra.mxu0 %vm7465_vm2, %v5510_v23  ;;  %v132_v37 = vld [vmem:[#allocation2 + $0x1d0] sm:$0xff]  ;;  %v173_v38 = vld [vmem:[#allocation2 + $0x318] sm:$0xff]  ;;  %5542 = vmatpush1.bf16.msk.msra.mxu1 %vm7465_vm2, %v5540_v27  ;;  %v126_v57 = vld [vmem:[#allocation2 + $0x1a0] sm:$0xff] }
  0x32   :  { %v221_v39 = vld [vmem:[#allocation2 + $0x498] sm:$0x3]  ;;  %5514 = vmatprep.subr.bf16.mxu0 %v5513_v28  ;;  %v5555_v40 = vpack.c.bf16 %v132_v37, %v84_v35  ;;  %v172_v44 = vld [vmem:[#allocation2 + $0x310] sm:$0xff]  ;;  %v175_v61 = vld [vmem:[#allocation2 + $0x328] sm:$0xff]  ;;  %v5525_v3 = vpack.c.bf16 %v126_v57, %v78_v56 }
  0x33   :  { %v5517_v41 = vpack.c.bf16 %v221_v39, %v173_v38  ;;  %v181_v42 = vld [vmem:[#allocation2 + $0x358] sm:$0xff]  ;;  %5554 = vmatprep.subr.bf16.mxu1 %v5553_v32  ;;  %v220_v46 = vld [vmem:[#allocation2 + $0x490] sm:$0x3]  ;;  %v223_v62 = vld [vmem:[#allocation2 + $0x4a8] sm:$0x3] }
  0x34   :  { %v229_v43 = vld [vmem:[#allocation2 + $0x4d8] sm:$0x3]  ;;  %v180_v47 = vld [vmem:[#allocation2 + $0x350] sm:$0xff]  ;;  %5306 = vmatmul.mubr.msk.f32.vlgmr.msra.gmra.mrb[0].mxu0 %vm518_vm3, %v7476_v31  ;;  %5315 = vmatmul.mubr.msk.f32.vlgmr.msra.gmra.mrb[0].mxu1 %vm518_vm3, %v7476_v31  ;;  %v5520_v52 = vpack.c.bf16 %v220_v46, %v172_v44  ;;  %v5527_v5 = vpack.c.bf16 %v223_v62, %v175_v61  ;;  %v174_v6 = vld [vmem:[#allocation2 + $0x320] sm:$0xff] }
  0x35   :  { %v5557_v45 = vpack.c.bf16 %v229_v43, %v181_v42  ;;  %v228_v48 = vld [vmem:[#allocation2 + $0x4d0] sm:$0x3]  ;;  %v89_v51 = vld [vmem:[#allocation2 + $0x78] sm:$0xff]  ;;  %5516 = vmatpush1.bf16.msra.mxu0 %v5515_v36  ;;  %5556 = vmatpush1.bf16.msra.mxu1 %v5555_v40  ;;  %v222_v7 = vld [vmem:[#allocation2 + $0x4a0] sm:$0x3] }
  0x36   :  { %v137_v53 = vld [vmem:[#allocation2 + $0x1f8] sm:$0xff]  ;;  %5519 = vmatprep.subr.msk.bf16.mxu0 %vm7465_vm2, %v5517_v41  ;;  %v5560_v54 = vpack.c.bf16 %v228_v48, %v180_v47  ;;  %v88_v58 = vld [vmem:[#allocation2 + $0x70] sm:$0xff]  ;;  %802 = vmatprep.mubr.f32.mxu0 %v8868_v0  ;;  %v83_v11 = vld [vmem:[#allocation2 + $0x48] sm:$0xff]  ;;  %v5530_v15 = vpack.c.bf16 %v222_v7, %v174_v6 }
  0x37   :  { %5559 = vmatprep.subr.msk.bf16.mxu1 %vm7465_vm2, %v5557_v45  ;;  %v5573_v59 = vpack.c.bf16 %v137_v53, %v89_v51  ;;  %v136_v60 = vld [vmem:[#allocation2 + $0x1f0] sm:$0xff]  ;;  %1086 = vmatprep.mubr.f32.mxu1 %v8868_v0  ;;  %v185_v63 = vld [vmem:[#allocation2 + $0x378] sm:$0xff]  ;;  %v131_v12 = vld [vmem:[#allocation2 + $0x1c8] sm:$0xff] }
  0x38   :  { %v233_v2 = vld [vmem:[#allocation2 + $0x4f8] sm:$0x3]  ;;  %v5575_v4 = vpack.c.bf16 %v136_v60, %v88_v58  ;;  %v184_v8 = vld [vmem:[#allocation2 + $0x370] sm:$0xff]  ;;  %v5543_v17 = vpack.c.bf16 %v131_v12, %v83_v11  ;;  %v82_v18 = vld [vmem:[#allocation2 + $0x40] sm:$0xff] }
  0x39   :  { %5522 = vmatpush1.bf16.msk.msra.mxu0 %vm7465_vm2, %v5520_v52  ;;  %5562 = vmatpush1.bf16.msk.msra.mxu1 %vm7465_vm2, %v5560_v54  ;;  %v5577_v9 = vpack.c.bf16 %v233_v2, %v185_v63  ;;  %v232_v10 = vld [vmem:[#allocation2 + $0x4f0] sm:$0x3]  ;;  %v93_v13 = vld [vmem:[#allocation2 + $0x98] sm:$0xff]  ;;  %v130_v19 = vld [vmem:[#allocation2 + $0x1c0] sm:$0xff] }
  0x3a   :  { %5524 = vmatprep.subr.bf16.mxu0 %v5523_v55  ;;  %5574 = vmatprep.subr.bf16.mxu1 %v5573_v59  ;;  %v141_v14 = vld [vmem:[#allocation2 + $0x218] sm:$0xff]  ;;  %v5580_v16 = vpack.c.bf16 %v232_v10, %v184_v8  ;;  %v92_v20 = vld [vmem:[#allocation2 + $0x90] sm:$0xff]  ;;  %v179_v23 = vld [vmem:[#allocation2 + $0x348] sm:$0xff]  ;;  %v5545_v27 = vpack.c.bf16 %v130_v19, %v82_v18 }
  0x3b   :  { %v5593_v21 = vpack.c.bf16 %v141_v14, %v93_v13  ;;  %v140_v22 = vld [vmem:[#allocation2 + $0x210] sm:$0xff]  ;;  %v227_v24 = vld [vmem:[#allocation2 + $0x4c8] sm:$0x3]  ;;  %v189_v25 = vld [vmem:[#allocation2 + $0x398] sm:$0xff] }
  0x3c   :  { %5309 = vmatmul.mubr.msk.f32.vlgmr.msra.gmra.mrb[2].mxu0 %vm518_vm3, %v7476_v31  ;;  %5321 = vmatmul.mubr.msk.f32.vlgmr.msra.gmra.mrb[2].mxu1 %vm518_vm3, %v7476_v31  ;;  %v237_v26 = vld [vmem:[#allocation2 + $0x518] sm:$0x3]  ;;  %v5595_v28 = vpack.c.bf16 %v140_v22, %v92_v20  ;;  %v5547_v29 = vpack.c.bf16 %v227_v24, %v179_v23  ;;  %v178_v30 = vld [vmem:[#allocation2 + $0x340] sm:$0xff]  ;;  %v188_v33 = vld [vmem:[#allocation2 + $0x390] sm:$0xff] }
  0x3d   :  { %5526 = vmatpush1.bf16.msra.mxu0 %v5525_v3  ;;  %5576 = vmatpush1.bf16.msra.mxu1 %v5575_v4  ;;  %v226_v32 = vld [vmem:[#allocation2 + $0x4c0] sm:$0x3]  ;;  %v5597_v34 = vpack.c.bf16 %v237_v26, %v189_v25  ;;  %v236_v35 = vld [vmem:[#allocation2 + $0x510] sm:$0x3]  ;;  %v87_v36 = vld [vmem:[#allocation2 + $0x68] sm:$0xff] }
  0x3e   :  { %5529 = vmatprep.subr.msk.bf16.mxu0 %vm7465_vm2, %v5527_v5  ;;  %5579 = vmatprep.subr.msk.bf16.mxu1 %vm7465_vm2, %v5577_v9  ;;  %v135_v37 = vld [vmem:[#allocation2 + $0x1e8] sm:$0xff]  ;;  %v97_v38 = vld [vmem:[#allocation2 + $0xb8] sm:$0xff]  ;;  %v5550_v40 = vpack.c.bf16 %v226_v32, %v178_v30  ;;  %v5600_v41 = vpack.c.bf16 %v236_v35, %v188_v33  ;;  %v86_v43 = vld [vmem:[#allocation2 + $0x60] sm:$0xff] }
  0x3f   :  { %873 = vmatprep.mubr.f32.mxu0 %v8868_v0  ;;  %1228 = vmatprep.mubr.f32.mxu1 %v8868_v0  ;;  %v145_v39 = vld [vmem:[#allocation2 + $0x238] sm:$0xff]  ;;  %v5563_v42 = vpack.c.bf16 %v135_v37, %v87_v36  ;;  %v134_v44 = vld [vmem:[#allocation2 + $0x1e0] sm:$0xff]  ;;  %v96_v45 = vld [vmem:[#allocation2 + $0xb0] sm:$0xff] }
  0x40   :  { %v5613_v46 = vpack.c.bf16 %v145_v39, %v97_v38  ;;  %v144_v47 = vld [vmem:[#allocation2 + $0x230] sm:$0xff]  ;;  %v183_v48 = vld [vmem:[#allocation2 + $0x368] sm:$0xff]  ;;  %v193_v50 = vld [vmem:[#allocation2 + $0x3b8] sm:$0xff]  ;;  %v5565_v52 = vpack.c.bf16 %v134_v44, %v86_v43 }
  0x41   :  { %5532 = vmatpush1.bf16.msk.msra.mxu0 %vm7465_vm2, %v5530_v15  ;;  %5582 = vmatpush1.bf16.msk.msra.mxu1 %vm7465_vm2, %v5580_v16  ;;  %v231_v49 = vld [vmem:[#allocation2 + $0x4e8] sm:$0x3]  ;;  %v241_v51 = vld [vmem:[#allocation2 + $0x538] sm:$0x3]  ;;  %v5615_v53 = vpack.c.bf16 %v144_v47, %v96_v45  ;;  %v182_v55 = vld [vmem:[#allocation2 + $0x360] sm:$0xff] }
  0x42   :  { %5544 = vmatprep.subr.bf16.mxu0 %v5543_v17  ;;  %5594 = vmatprep.subr.bf16.mxu1 %v5593_v21  ;;  %v5567_v54 = vpack.c.bf16 %v231_v49, %v183_v48  ;;  %v230_v56 = vld [vmem:[#allocation2 + $0x4e0] sm:$0x3]  ;;  %v192_v57 = vld [vmem:[#allocation2 + $0x3b0] sm:$0xff]  ;;  %v5617_v58 = vpack.c.bf16 %v241_v51, %v193_v50  ;;  %v91_v60 = vld [vmem:[#allocation2 + $0x88] sm:$0xff] }
  0x43   :  { %v240_v59 = vld [vmem:[#allocation2 + $0x530] sm:$0x3]  ;;  %v139_v61 = vld [vmem:[#allocation2 + $0x208] sm:$0xff]  ;;  %v101_v62 = vld [vmem:[#allocation2 + $0xd8] sm:$0xff]  ;;  %v5570_v2 = vpack.c.bf16 %v230_v56, %v182_v55 }
  0x44   :  { %5312 = vmatmul.mubr.msk.f32.vlgmr.msra.gmra.mrb[4].mxu0 %vm518_vm3, %v7476_v31  ;;  %5327 = vmatmul.mubr.msk.f32.vlgmr.msra.gmra.mrb[4].mxu1 %vm518_vm3, %v7476_v31  ;;  %v149_v63 = vld [vmem:[#allocation2 + $0x258] sm:$0xff]  ;;  %v5620_v3 = vpack.c.bf16 %v240_v59, %v192_v57  ;;  %v5583_v4 = vpack.c.bf16 %v139_v61, %v91_v60  ;;  %v90_v5 = vld [vmem:[#allocation2 + $0x80] sm:$0xff]  ;;  %v100_v7 = vld [vmem:[#allocation2 + $0xd0] sm:$0xff] }
  0x45   :  { %5546 = vmatpush1.bf16.msra.mxu0 %v5545_v27  ;;  %5596 = vmatpush1.bf16.msra.mxu1 %v5595_v28  ;;  %v138_v6 = vld [vmem:[#allocation2 + $0x200] sm:$0xff]  ;;  %v5633_v8 = vpack.c.bf16 %v149_v63, %v101_v62  ;;  %v148_v9 = vld [vmem:[#allocation2 + $0x250] sm:$0xff]  ;;  %v187_v10 = vld [vmem:[#allocation2 + $0x388] sm:$0xff] }
  0x46   :  { %5549 = vmatprep.subr.msk.bf16.mxu0 %vm7465_vm2, %v5547_v29  ;;  %5599 = vmatprep.subr.msk.bf16.mxu1 %vm7465_vm2, %v5597_v34  ;;  %v235_v11 = vld [vmem:[#allocation2 + $0x508] sm:$0x3]  ;;  %v197_v12 = vld [vmem:[#allocation2 + $0x3d8] sm:$0xff]  ;;  %v5585_v14 = vpack.c.bf16 %v138_v6, %v90_v5  ;;  %v5635_v15 = vpack.c.bf16 %v148_v9, %v100_v7  ;;  %v186_v17 = vld [vmem:[#allocation2 + $0x380] sm:$0xff] }
  0x47   :  { %1015 = vmatprep.mubr.f32.mxu0 %v8868_v0  ;;  %1370 = vmatprep.mubr.f32.mxu1 %v8868_v0  ;;  %v245_v13 = vld [vmem:[#allocation2 + $0x558] sm:$0x3]  ;;  %v5587_v16 = vpack.c.bf16 %v235_v11, %v187_v10  ;;  %v234_v18 = vld [vmem:[#allocation2 + $0x500] sm:$0x3]  ;;  %v196_v19 = vld [vmem:[#allocation2 + $0x3d0] sm:$0xff] }
  0x48   :  { %v5637_v20 = vpack.c.bf16 %v245_v13, %v197_v12  ;;  %v244_v21 = vld [vmem:[#allocation2 + $0x550] sm:$0x3]  ;;  %v95_v22 = vld [vmem:[#allocation2 + $0xa8] sm:$0xff]  ;;  %v105_v24 = vld [vmem:[#allocation2 + $0xf8] sm:$0xff]  ;;  %v5590_v26 = vpack.c.bf16 %v234_v18, %v186_v17 }
  0x49   :  { %5552 = vmatpush1.bf16.msk.msra.mxu0 %vm7465_vm2, %v5550_v40  ;;  %5602 = vmatpush1.bf16.msk.msra.mxu1 %vm7465_vm2, %v5600_v41  ;;  %v143_v23 = vld [vmem:[#allocation2 + $0x228] sm:$0xff]  ;;  %v153_v25 = vld [vmem:[#allocation2 + $0x278] sm:$0xff]  ;;  %v5640_v27 = vpack.c.bf16 %v244_v21, %v196_v19  ;;  %v94_v29 = vld [vmem:[#allocation2 + $0xa0] sm:$0xff] }
  0x4a   :  { %5564 = vmatprep.subr.bf16.mxu0 %v5563_v42  ;;  %5614 = vmatprep.subr.bf16.mxu1 %v5613_v46  ;;  %v5603_v28 = vpack.c.bf16 %v143_v23, %v95_v22  ;;  %v142_v30 = vld [vmem:[#allocation2 + $0x220] sm:$0xff]  ;;  %v104_v32 = vld [vmem:[#allocation2 + $0xf0] sm:$0xff]  ;;  %v5653_v33 = vpack.c.bf16 %v153_v25, %v105_v24  ;;  %v191_v35 = vld [vmem:[#allocation2 + $0x3a8] sm:$0xff] }
  0x4b   :  { %v152_v34 = vld [vmem:[#allocation2 + $0x270] sm:$0xff]  ;;  %v239_v36 = vld [vmem:[#allocation2 + $0x528] sm:$0x3]  ;;  %v201_v37 = vld [vmem:[#allocation2 + $0x3f8] sm:$0xff]  ;;  %v5605_v39 = vpack.c.bf16 %v142_v30, %v94_v29 }
  0x4c   :  { %5318 = vmatmul.mubr.msk.f32.vlgmr.msra.gmra.mrb[6].mxu0 %vm518_vm3, %v7476_v31  ;;  %5333 = vmatmul.mubr.msk.f32.vlgmr.msra.gmra.mrb[6].mxu1 %vm518_vm3, %v7476_v31  ;;  %v249_v38 = vld [vmem:[#allocation2 + $0x578] sm:$0x3]  ;;  %v5655_v40 = vpack.c.bf16 %v152_v34, %v104_v32  ;;  %v5607_v41 = vpack.c.bf16 %v239_v36, %v191_v35  ;;  %v190_v42 = vld [vmem:[#allocation2 + $0x3a0] sm:$0xff]  ;;  %v200_v44 = vld [vmem:[#allocation2 + $0x3f0] sm:$0xff] }
  0x4d   :  { %5566 = vmatpush1.bf16.msra.mxu0 %v5565_v52  ;;  %5616 = vmatpush1.bf16.msra.mxu1 %v5615_v53  ;;  %v238_v43 = vld [vmem:[#allocation2 + $0x520] sm:$0x3]  ;;  %v5657_v45 = vpack.c.bf16 %v249_v38, %v201_v37  ;;  %v248_v46 = vld [vmem:[#allocation2 + $0x570] sm:$0x3]  ;;  %v99_v47 = vld [vmem:[#allocation2 + $0xc8] sm:$0xff] }
  0x4e   :  { %5569 = vmatprep.subr.msk.bf16.mxu0 %vm7465_vm2, %v5567_v54  ;;  %5619 = vmatprep.subr.msk.bf16.mxu1 %vm7465_vm2, %v5617_v58  ;;  %v147_v48 = vld [vmem:[#allocation2 + $0x248] sm:$0xff]  ;;  %v109_v49 = vld [vmem:[#allocation2 + $0x118] sm:$0xff]  ;;  %v5610_v51 = vpack.c.bf16 %v238_v43, %v190_v42  ;;  %v5660_v52 = vpack.c.bf16 %v248_v46, %v200_v44  ;;  %v98_v54 = vld [vmem:[#allocation2 + $0xc0] sm:$0xff] }
  0x4f   :  { %1157 = vmatprep.mubr.f32.mxu0 %v8868_v0  ;;  %1512 = vmatprep.mubr.f32.mxu1 %v8868_v0  ;;  %v157_v50 = vld [vmem:[#allocation2 + $0x298] sm:$0xff]  ;;  %v5623_v53 = vpack.c.bf16 %v147_v48, %v99_v47  ;;  %v146_v55 = vld [vmem:[#allocation2 + $0x240] sm:$0xff]  ;;  %v108_v56 = vld [vmem:[#allocation2 + $0x110] sm:$0xff] }
  0x50   :  { %v5673_v57 = vpack.c.bf16 %v157_v50, %v109_v49  ;;  %v156_v58 = vld [vmem:[#allocation2 + $0x290] sm:$0xff]  ;;  %v195_v59 = vld [vmem:[#allocation2 + $0x3c8] sm:$0xff]  ;;  %v205_v61 = vld [vmem:[#allocation2 + $0x418] sm:$0xff]  ;;  %v5625_v63 = vpack.c.bf16 %v146_v55, %v98_v54 }
  0x51   :  { %5572 = vmatpush1.bf16.msk.msra.mxu0 %vm7465_vm2, %v5570_v2  ;;  %5622 = vmatpush1.bf16.msk.msra.mxu1 %vm7465_vm2, %v5620_v3  ;;  %v243_v60 = vld [vmem:[#allocation2 + $0x548] sm:$0x3]  ;;  %v253_v62 = vld [vmem:[#allocation2 + $0x598] sm:$0x3]  ;;  %v5675_v2 = vpack.c.bf16 %v156_v58, %v108_v56  ;;  %v242_v5 = vld [vmem:[#allocation2 + $0x540] sm:$0x3] }
  0x52   :  { %5584 = vmatprep.subr.bf16.mxu0 %v5583_v4  ;;  %5634 = vmatprep.subr.bf16.mxu1 %v5633_v8  ;;  %v5627_v3 = vpack.c.bf16 %v243_v60, %v195_v59  ;;  %v194_v4 = vld [vmem:[#allocation2 + $0x3c0] sm:$0xff]  ;;  %v204_v6 = vld [vmem:[#allocation2 + $0x410] sm:$0xff]  ;;  %v5677_v7 = vpack.c.bf16 %v253_v62, %v205_v61  ;;  %v103_v9 = vld [vmem:[#allocation2 + $0xe8] sm:$0xff] }
  0x53   :  { %v252_v8 = vld [vmem:[#allocation2 + $0x590] sm:$0x3]  ;;  %v151_v10 = vld [vmem:[#allocation2 + $0x268] sm:$0xff]  ;;  %v113_v11 = vld [vmem:[#allocation2 + $0x138] sm:$0xff]  ;;  %v5630_v13 = vpack.c.bf16 %v242_v5, %v194_v4 }
  0x54   :  { %5324 = vmatmul.mubr.msk.f32.vlgmr.msra.gmra.mrb[8].mxu0 %vm518_vm3, %v7476_v31  ;;  %5339 = vmatmul.mubr.msk.f32.vlgmr.msra.gmra.mrb[8].mxu1 %vm518_vm3, %v7476_v31  ;;  %v161_v12 = vld [vmem:[#allocation2 + $0x2b8] sm:$0xff]  ;;  %v150_v17 = vld [vmem:[#allocation2 + $0x260] sm:$0xff]  ;;  %v112_v18 = vld [vmem:[#allocation2 + $0x130] sm:$0xff] }
  0x55   :  { %5586 = vmatpush1.bf16.msra.mxu0 %v5585_v14  ;;  %5636 = vmatpush1.bf16.msra.mxu1 %v5635_v15  ;;  %v5680_v14 = vpack.c.bf16 %v252_v8, %v204_v6  ;;  %v5643_v15 = vpack.c.bf16 %v151_v10, %v103_v9  ;;  %v5693_v19 = vpack.c.bf16 %v161_v12, %v113_v11  ;;  %v199_v21 = vld [vmem:[#allocation2 + $0x3e8] sm:$0xff]  ;;  %v209_v23 = vld [vmem:[#allocation2 + $0x438] sm:$0xff]  ;;  %v246_v29 = vld [vmem:[#allocation2 + $0x560] sm:$0x3] }
  0x56   :  { %5589 = vmatprep.subr.msk.bf16.mxu0 %vm7465_vm2, %v5587_v16  ;;  %5639 = vmatprep.subr.msk.bf16.mxu1 %vm7465_vm2, %v5637_v20  ;;  %v102_v16 = vld [vmem:[#allocation2 + $0xe0] sm:$0xff]  ;;  %v160_v20 = vld [vmem:[#allocation2 + $0x2b0] sm:$0xff]  ;;  %v247_v22 = vld [vmem:[#allocation2 + $0x568] sm:$0x3] }
  0x57   :  { %1299 = vmatprep.mubr.f32.mxu0 %v8868_v0  ;;  %1654 = vmatprep.mubr.f32.mxu1 %v8868_v0  ;;  %v257_v24 = vld [vmem:[#allocation2 + $0x5b8] sm:$0x3]  ;;  %v5645_v25 = vpack.c.bf16 %v150_v17, %v102_v16  ;;  %v208_v30 = vld [vmem:[#allocation2 + $0x430] sm:$0xff]  ;;  %v107_v34 = vld [vmem:[#allocation2 + $0x108] sm:$0xff] }
  0x58   :  { %v5697_v32 = vpack.c.bf16 %v257_v24, %v209_v23  ;;  %v155_v35 = vld [vmem:[#allocation2 + $0x288] sm:$0xff]  ;;  %v117_v36 = vld [vmem:[#allocation2 + $0x158] sm:$0xff]  ;;  %v154_v42 = vld [vmem:[#allocation2 + $0x280] sm:$0xff] }
  0x59   :  { %5592 = vmatpush1.bf16.msk.msra.mxu0 %vm7465_vm2, %v5590_v26  ;;  %5642 = vmatpush1.bf16.msk.msra.mxu1 %vm7465_vm2, %v5640_v27  ;;  %v5695_v26 = vpack.c.bf16 %v160_v20, %v112_v18  ;;  %v5647_v27 = vpack.c.bf16 %v247_v22, %v199_v21  ;;  %v165_v37 = vld [vmem:[#allocation2 + $0x2d8] sm:$0xff]  ;;  %v116_v43 = vld [vmem:[#allocation2 + $0x150] sm:$0xff]  ;;  %v203_v46 = vld [vmem:[#allocation2 + $0x408] sm:$0xff] }
  0x5a   :  { %5604 = vmatprep.subr.bf16.mxu0 %v5603_v28  ;;  %5654 = vmatprep.subr.bf16.mxu1 %v5653_v33  ;;  %v198_v28 = vld [vmem:[#allocation2 + $0x3e0] sm:$0xff]  ;;  %v256_v33 = vld [vmem:[#allocation2 + $0x5b0] sm:$0x3]  ;;  %v5713_v44 = vpack.c.bf16 %v165_v37, %v117_v36  ;;  %v251_v47 = vld [vmem:[#allocation2 + $0x588] sm:$0x3] }
  0x5b   :  { %v5650_v38 = vpack.c.bf16 %v246_v29, %v198_v28  ;;  %v213_v48 = vld [vmem:[#allocation2 + $0x458] sm:$0xff]  ;;  %v250_v54 = vld [vmem:[#allocation2 + $0x580] sm:$0x3]  ;;  %v212_v55 = vld [vmem:[#allocation2 + $0x450] sm:$0xff] }
  0x5c   :  { %5330 = vmatmul.mubr.msk.f32.vlgmr.msra.gmra.mrb[10].mxu0 %vm518_vm3, %v7476_v31  ;;  %5345 = vmatmul.mubr.msk.f32.vlgmr.msra.gmra.mrb[10].mxu1 %vm518_vm3, %v7476_v31  ;;  %v261_v49 = vld [vmem:[#allocation2 + $0x5d8] sm:$0x3]  ;;  %v111_v58 = vld [vmem:[#allocation2 + $0x128] sm:$0xff]  ;;  %v158_v4 = vld [vmem:[#allocation2 + $0x2a0] sm:$0xff] }
  0x5d   :  { %5606 = vmatpush1.bf16.msra.mxu0 %v5605_v39  ;;  %5656 = vmatpush1.bf16.msra.mxu1 %v5655_v40  ;;  %v5700_v39 = vpack.c.bf16 %v256_v33, %v208_v30  ;;  %v5663_v40 = vpack.c.bf16 %v155_v35, %v107_v34  ;;  %v5717_v56 = vpack.c.bf16 %v261_v49, %v213_v48  ;;  %v159_v59 = vld [vmem:[#allocation2 + $0x2a8] sm:$0xff]  ;;  %v121_v60 = vld [vmem:[#allocation2 + $0x178] sm:$0xff]  ;;  %v120_v5 = vld [vmem:[#allocation2 + $0x170] sm:$0xff] }
  0x5e   :  { %5609 = vmatprep.subr.msk.bf16.mxu0 %vm7465_vm2, %v5607_v41  ;;  %5659 = vmatprep.subr.msk.bf16.mxu1 %vm7465_vm2, %v5657_v45  ;;  %v106_v41 = vld [vmem:[#allocation2 + $0x100] sm:$0xff]  ;;  %v164_v45 = vld [vmem:[#allocation2 + $0x2d0] sm:$0xff]  ;;  %v169_v61 = vld [vmem:[#allocation2 + $0x2f8] sm:$0xff] }
  0x5f   :  { %1441 = vmatprep.mubr.f32.mxu0 %v8868_v0  ;;  %1796 = vmatprep.mubr.f32.mxu1 %v8868_v0  ;;  %v5665_v50 = vpack.c.bf16 %v154_v42, %v106_v41  ;;  %v5733_v6 = vpack.c.bf16 %v169_v61, %v121_v60  ;;  %v207_v8 = vld [vmem:[#allocation2 + $0x428] sm:$0xff]  ;;  %v217_v10 = vld [vmem:[#allocation2 + $0x478] sm:$0xff]  ;;  %v254_v16 = vld [vmem:[#allocation2 + $0x5a0] sm:$0x3] }
  0x60   :  { %v255_v9 = vld [vmem:[#allocation2 + $0x5a8] sm:$0x3]  ;;  %v265_v11 = vld [vmem:[#allocation2 + $0x5f8] sm:$0x3]  ;;  %v216_v17 = vld [vmem:[#allocation2 + $0x470] sm:$0xff] }
  0x61   :  { %5612 = vmatpush1.bf16.msk.msra.mxu0 %vm7465_vm2, %v5610_v51  ;;  %5662 = vmatpush1.bf16.msk.msra.mxu1 %vm7465_vm2, %v5660_v52  ;;  %v5715_v51 = vpack.c.bf16 %v164_v45, %v116_v43  ;;  %v5667_v52 = vpack.c.bf16 %v251_v47, %v203_v46  ;;  %v5737_v18 = vpack.c.bf16 %v265_v11, %v217_v10  ;;  %v115_v20 = vld [vmem:[#allocation2 + $0x148] sm:$0xff]  ;;  %v2374_v22 = vld [vmem:[#allocation5 + $0x18] sm:$0xff]  ;;  %v162_v28 = vld [vmem:[#allocation2 + $0x2c0] sm:$0xff] }
  0x62   :  { %5624 = vmatprep.subr.bf16.mxu0 %v5623_v53  ;;  %5674 = vmatprep.subr.bf16.mxu1 %v5673_v57  ;;  %v202_v53 = vld [vmem:[#allocation2 + $0x400] sm:$0xff]  ;;  %v260_v57 = vld [vmem:[#allocation2 + $0x5d0] sm:$0x3]  ;;  %v163_v21 = vld [vmem:[#allocation2 + $0x2c8] sm:$0xff] }
  0x63   :  { %v5670_v62 = vpack.c.bf16 %v250_v54, %v202_v53  ;;  %v2380_v23 = vld [vmem:[#allocation5 + $0x48] sm:$0xff]  ;;  %v2373_v29 = vld [vmem:[#allocation5 + $0x10] sm:$0xff]  ;;  %v2386_v35 = vld [vmem:[#allocation5 + $0x78] sm:$0xff] }
  0x64   :  { %5336 = vmatmul.mubr.msk.f32.vlgmr.msra.gmra.mrb[12].mxu0 %vm518_vm3, %v7476_v31  ;;  %5351 = vmatmul.mubr.msk.f32.vlgmr.msra.gmra.mrb[12].mxu1 %vm518_vm3, %v7476_v31  ;;  %v7617_v30 = vpack.c.bf16 %v2380_v23, %v2374_v22  ;;  %v211_v33 = vld [vmem:[#allocation2 + $0x448] sm:$0xff]  ;;  %v258_v41 = vld [vmem:[#allocation2 + $0x5c0] sm:$0x3]  ;;  %v2385_v42 = vld [vmem:[#allocation5 + $0x70] sm:$0xff] }
  0x65   :  { %5626 = vmatpush1.bf16.msra.mxu0 %v5625_v63  ;;  %5676 = vmatpush1.bf16.msra.mxu1 %v5675_v2  ;;  %v5720_v63 = vpack.c.bf16 %v260_v57, %v212_v55  ;;  %v5683_v2 = vpack.c.bf16 %v159_v59, %v111_v58  ;;  %v259_v34 = vld [vmem:[#allocation2 + $0x5c8] sm:$0x3]  ;;  %v2398_v47 = vld [vmem:[#allocation5 + $0xd8] sm:$0xff]  ;;  %v166_v53 = vld [vmem:[#allocation2 + $0x2e0] sm:$0xff] }
  0x66   :  { %5629 = vmatprep.subr.msk.bf16.mxu0 %vm7465_vm2, %v5627_v3  ;;  %5679 = vmatprep.subr.msk.bf16.mxu1 %vm7465_vm2, %v5677_v7  ;;  %v110_v3 = vld [vmem:[#allocation2 + $0x120] sm:$0xff]  ;;  %v168_v7 = vld [vmem:[#allocation2 + $0x2f0] sm:$0xff]  ;;  %8992 = vst [vmem:[#allocation11_spill] sm:$0xff] %v7617_v30  ;;  %v2392_v36 = vld [vmem:[#allocation5 + $0xa8] sm:$0xff] }
  0x67   :  { %1583 = vmatprep.mubr.f32.mxu0 %v8868_v0  ;;  %1938 = vmatprep.mubr.f32.mxu1 %v8868_v0  ;;  %v5685_v12 = vpack.c.bf16 %v158_v4, %v110_v3  ;;  %v7627_v43 = vpack.c.bf16 %v2392_v36, %v2386_v35  ;;  %v119_v45 = vld [vmem:[#allocation2 + $0x168] sm:$0xff]  ;;  %v2397_v54 = vld [vmem:[#allocation5 + $0xd0] sm:$0xff]  ;;  %v2410_v59 = vld [vmem:[#allocation5 + $0x138] sm:$0xff] }
  0x68   :  { %v167_v46 = vld [vmem:[#allocation2 + $0x2e8] sm:$0xff]  ;;  %v262_v3 = vld [vmem:[#allocation2 + $0x5e0] sm:$0x3]  ;;  %v2409_v4 = vld [vmem:[#allocation5 + $0x130] sm:$0xff] }
  0x69   :  { %5632 = vmatpush1.bf16.msk.msra.mxu0 %vm7465_vm2, %v5630_v13  ;;  %5682 = vmatpush1.bf16.msk.msra.mxu1 %vm7465_vm2, %v5680_v14  ;;  %v5735_v13 = vpack.c.bf16 %v168_v7, %v120_v5  ;;  %v5687_v14 = vpack.c.bf16 %v255_v9, %v207_v8  ;;  %8994 = vst [vmem:[#allocation13_spill] sm:$0xff] %v7627_v43  ;;  %v2404_v48 = vld [vmem:[#allocation5 + $0x108] sm:$0xff]  ;;  %v2378_v8 = vld [vmem:[#allocation5 + $0x38] sm:$0xff] }
  0x6a   :  { %5644 = vmatprep.subr.bf16.mxu0 %v5643_v15  ;;  %5694 = vmatprep.subr.bf16.mxu1 %v5693_v19  ;;  %v206_v15 = vld [vmem:[#allocation2 + $0x420] sm:$0xff]  ;;  %v264_v19 = vld [vmem:[#allocation2 + $0x5f0] sm:$0x3]  ;;  %v7640_v55 = vpack.c.bf16 %v2404_v48, %v2398_v47  ;;  %v215_v57 = vld [vmem:[#allocation2 + $0x468] sm:$0xff] }
  0x6b   :  { %v5690_v24 = vpack.c.bf16 %v254_v16, %v206_v15  ;;  %v263_v58 = vld [vmem:[#allocation2 + $0x5e8] sm:$0x3]  ;;  %v2422_v9 = vld [vmem:[#allocation5 + $0x198] sm:$0xff]  ;;  %v2377_v15 = vld [vmem:[#allocation5 + $0x30] sm:$0xff] }
  0x6c   :  { %5342 = vmatmul.mubr.msk.f32.vlgmr.msra.gmra.mrb[14].mxu0 %vm518_vm3, %v7476_v31  ;;  %5357 = vmatmul.mubr.msk.f32.vlgmr.msra.gmra.mrb[14].mxu1 %vm518_vm3, %v7476_v31  ;;  %8996 = vst [vmem:[#allocation15_spill] sm:$0xff] %v7640_v55  ;;  %v2416_v60 = vld [vmem:[#allocation5 + $0x168] sm:$0xff]  ;;  %v2421_v16 = vld [vmem:[#allocation5 + $0x190] sm:$0xff]  ;;  %v2458_v47 = vld [vmem:[#allocation5 + $0x2b8] sm:$0xff] }
  0x6d   :  { %5646 = vmatpush1.bf16.msra.mxu0 %v5645_v25  ;;  %5696 = vmatpush1.bf16.msra.mxu1 %v5695_v26  ;;  %v5740_v25 = vpack.c.bf16 %v264_v19, %v216_v17  ;;  %v5703_v26 = vpack.c.bf16 %v163_v21, %v115_v20  ;;  %v7649_v5 = vpack.c.bf16 %v2416_v60, %v2410_v59  ;;  %v2372_v7 = vld [vmem:[#allocation5 + $0x8] sm:$0xff]  ;;  %v2390_v20 = vld [vmem:[#allocation5 + $0x98] sm:$0xff] }
  0x6e   :  { %5649 = vmatprep.subr.msk.bf16.mxu0 %vm7465_vm2, %v5647_v27  ;;  %5699 = vmatprep.subr.msk.bf16.mxu1 %vm7465_vm2, %v5697_v32  ;;  %v114_v27 = vld [vmem:[#allocation2 + $0x140] sm:$0xff]  ;;  %v2428_v10 = vld [vmem:[#allocation5 + $0x1c8] sm:$0xff]  ;;  %v2434_v21 = vld [vmem:[#allocation5 + $0x1f8] sm:$0xff] }
  0x6f   :  { %1725 = vmatprep.mubr.f32.mxu0 %v8868_v0  ;;  %2080 = vmatprep.mubr.f32.mxu1 %v8868_v0  ;;  %v2379_v32 = vld [vmem:[#allocation5 + $0x40] sm:$0xff]  ;;  %v5705_v37 = vpack.c.bf16 %v162_v28, %v114_v27  ;;  %8998 = vst [vmem:[#allocation17_spill] sm:$0xff] %v7649_v5  ;;  %v7662_v17 = vpack.c.bf16 %v2428_v10, %v2422_v9  ;;  %v2384_v19 = vld [vmem:[#allocation5 + $0x68] sm:$0xff]  ;;  %v2389_v27 = vld [vmem:[#allocation5 + $0x90] sm:$0xff] }
  0x70   :  { %v2440_v22 = vld [vmem:[#allocation5 + $0x228] sm:$0xff]  ;;  %v2433_v28 = vld [vmem:[#allocation5 + $0x1f0] sm:$0xff]  ;;  %v2426_v60 = vld [vmem:[#allocation5 + $0x1b8] sm:$0xff] }
  0x71   :  { %5652 = vmatpush1.bf16.msk.msra.mxu0 %vm7465_vm2, %v5650_v38  ;;  %5702 = vmatpush1.bf16.msk.msra.mxu1 %vm7465_vm2, %v5700_v39  ;;  %v7624_v38 = vpack.c.bf16 %v2379_v32, %v2373_v29  ;;  %v5707_v39 = vpack.c.bf16 %v259_v34, %v211_v33  ;;  %9001 = vst [vmem:[#allocation20_spill] sm:$0xff] %v7662_v17  ;;  %v2439_v32 = vld [vmem:[#allocation5 + $0x220] sm:$0xff]  ;;  %v2396_v1 = vld [vmem:[#allocation5 + $0xc8] sm:$0xff]  ;;  %v2402_v33 = vld [vmem:[#allocation5 + $0xf8] sm:$0xff] }
  0x72   :  { %5664 = vmatprep.subr.bf16.mxu0 %v5663_v40  ;;  %5714 = vmatprep.subr.bf16.mxu1 %v5713_v44  ;;  %v210_v40 = vld [vmem:[#allocation2 + $0x440] sm:$0xff]  ;;  %v7675_v29 = vpack.c.bf16 %v2440_v22, %v2434_v21  ;;  %v2446_v34 = vld [vmem:[#allocation5 + $0x258] sm:$0xff]  ;;  %v2452_v35 = vld [vmem:[#allocation5 + $0x288] sm:$0xff] }
  0x73   :  { %8993 = vst [vmem:[#allocation12_spill] sm:$0xff] %v7624_v38  ;;  %v2391_v44 = vld [vmem:[#allocation5 + $0xa0] sm:$0xff]  ;;  %v5710_v49 = vpack.c.bf16 %v258_v41, %v210_v40  ;;  %v2401_v41 = vld [vmem:[#allocation5 + $0xf0] sm:$0xff]  ;;  %v2464_v48 = vld [vmem:[#allocation5 + $0x2e8] sm:$0xff] }
  0x74   :  { %5348 = vmatmul.mubr.msk.f32.vlgmr.msra.gmra.mrb[16].mxu0 %vm518_vm3, %v7476_v31  ;;  %5363 = vmatmul.mubr.msk.f32.vlgmr.msra.gmra.mrb[16].mxu1 %vm518_vm3, %v7476_v31  ;;  %9003 = vst [vmem:[#allocation22_spill] sm:$0xff] %v7675_v29  ;;  %v2395_v40 = vld [vmem:[#allocation5 + $0xc0] sm:$0xff]  ;;  %v2420_v59 = vld [vmem:[#allocation5 + $0x188] sm:$0xff]  ;;  %v2437_v22 = vld [vmem:[#allocation5 + $0x210] sm:$0xff] }
  0x75   :  { %5666 = vmatpush1.bf16.msra.mxu0 %v5665_v50  ;;  %5716 = vmatpush1.bf16.msra.mxu1 %v5715_v51  ;;  %v7636_v50 = vpack.c.bf16 %v2391_v44, %v2385_v42  ;;  %v5723_v51 = vpack.c.bf16 %v167_v46, %v119_v45  ;;  %v2445_v42 = vld [vmem:[#allocation5 + $0x250] sm:$0xff]  ;;  %v2451_v44 = vld [vmem:[#allocation5 + $0x280] sm:$0xff]  ;;  %v2408_v45 = vld [vmem:[#allocation5 + $0x128] sm:$0xff] }
  0x76   :  { %5669 = vmatprep.subr.msk.bf16.mxu0 %vm7465_vm2, %v5667_v52  ;;  %5719 = vmatprep.subr.msk.bf16.mxu1 %vm7465_vm2, %v5717_v56  ;;  %v118_v52 = vld [vmem:[#allocation2 + $0x160] sm:$0xff]  ;;  %v2414_v46 = vld [vmem:[#allocation5 + $0x158] sm:$0xff] }
  0x77   :  { %1867 = vmatprep.mubr.f32.mxu0 %v8868_v0  ;;  %2222 = vmatprep.mubr.f32.mxu1 %v8868_v0  ;;  %8995 = vst [vmem:[#allocation14_spill] sm:$0xff] %v7636_v50  ;;  %v2403_v56 = vld [vmem:[#allocation5 + $0x100] sm:$0xff]  ;;  %v5725_v61 = vpack.c.bf16 %v166_v53, %v118_v52  ;;  %v7699_v52 = vpack.c.bf16 %v2414_v46, %v2408_v45  ;;  %v2493_v45 = vld [vmem:[#allocation5 + $0x3d0] sm:$0xff] }
  0x78   :  { %v2407_v53 = vld [vmem:[#allocation5 + $0x120] sm:$0xff] }
  0x79   :  { %5672 = vmatpush1.bf16.msk.msra.mxu0 %vm7465_vm2, %v5670_v62  ;;  %5722 = vmatpush1.bf16.msk.msra.mxu1 %vm7465_vm2, %v5720_v63  ;;  %v7646_v62 = vpack.c.bf16 %v2403_v56, %v2397_v54  ;;  %v5727_v63 = vpack.c.bf16 %v263_v58, %v215_v57  ;;  %v2413_v54 = vld [vmem:[#allocation5 + $0x150] sm:$0xff]  ;;  %v7702_v57 = vpack.c.bf16 %v2464_v48, %v2458_v47  ;;  %v2463_v58 = vld [vmem:[#allocation5 + $0x2e0] sm:$0xff]  ;;  %v2456_v48 = vld [vmem:[#allocation5 + $0x2a8] sm:$0xff] }
  0x7a   :  { %5684 = vmatprep.subr.bf16.mxu0 %v5683_v2  ;;  %5734 = vmatprep.subr.bf16.mxu1 %v5733_v6  ;;  %v214_v2 = vld [vmem:[#allocation2 + $0x460] sm:$0xff]  ;;  %v2457_v56 = vld [vmem:[#allocation5 + $0x2b0] sm:$0xff] }
  0x7b   :  { %8997 = vst [vmem:[#allocation16_spill] sm:$0xff] %v7646_v62  ;;  %v2415_v6 = vld [vmem:[#allocation5 + $0x160] sm:$0xff]  ;;  %v5730_v11 = vpack.c.bf16 %v262_v3, %v214_v2  ;;  %9007 = vst [vmem:[#allocation26_spill] sm:$0xff] %v7702_v57  ;;  %v7705_v2 = vpack.c.bf16 %v2413_v54, %v2407_v53  ;;  %v7709_v3 = vpack.c.bf16 %v2463_v58, %v2457_v56  ;;  %v2462_v53 = vld [vmem:[#allocation5 + $0x2d8] sm:$0xff] }
  0x7c   :  { %5354 = vmatmul.mubr.msk.f32.vlgmr.msra.gmra.mrb[18].mxu0 %vm518_vm3, %v7476_v31  ;;  %5369 = vmatmul.mubr.msk.f32.vlgmr.msra.gmra.mrb[18].mxu1 %vm518_vm3, %v7476_v31  ;;  %v2475_v10 = vld [vmem:[#allocation5 + $0x340] sm:$0xff]  ;;  %v2506_v54 = vld [vmem:[#allocation5 + $0x438] sm:$0xff]  ;;  %v2512_v56 = vld [vmem:[#allocation5 + $0x468] sm:$0xff] }
  0x7d   :  { %5686 = vmatpush1.bf16.msra.mxu0 %v5685_v12  ;;  %5736 = vmatpush1.bf16.msra.mxu1 %v5735_v13  ;;  %v7657_v12 = vpack.c.bf16 %v2415_v6, %v2409_v4  ;;  %v7659_v13 = vpack.c.bf16 %v2378_v8, %v2372_v7  ;;  %9008 = vst [vmem:[#allocation27_spill] sm:$0xff] %v7709_v3  ;;  %v2419_v6 = vld [vmem:[#allocation5 + $0x180] sm:$0xff]  ;;  %v2425_v7 = vld [vmem:[#allocation5 + $0x1b0] sm:$0xff] }
  0x7e   :  { %5689 = vmatprep.subr.msk.bf16.mxu0 %vm7465_vm2, %v5687_v14  ;;  %5739 = vmatprep.subr.msk.bf16.mxu1 %vm7465_vm2, %v5737_v18  ;;  %v2371_v14 = vld [vmem:[#allocation5] sm:$0xff]  ;;  %v7711_v4 = vpack.c.bf16 %v2426_v60, %v2420_v59  ;;  %v2469_v8 = vld [vmem:[#allocation5 + $0x310] sm:$0xff]  ;;  %v7747_v60 = vpack.c.bf16 %v2462_v53, %v2456_v48 }
  0x7f   :  { %2009 = vmatprep.mubr.f32.mxu0 %v8868_v0  ;;  %2364 = vmatprep.mubr.f32.mxu1 %v8868_v0  ;;  %8999 = vst [vmem:[#allocation18_spill] sm:$0xff] %v7657_v12  ;;  %9000 = vst [vmem:[#allocation19_spill] sm:$0xff] %v7659_v13  ;;  %v2427_v18 = vld [vmem:[#allocation5 + $0x1c0] sm:$0xff]  ;;  %v7666_v23 = vpack.c.bf16 %v2377_v15, %v2371_v14  ;;  %v2438_v14 = vld [vmem:[#allocation5 + $0x218] sm:$0xff] }
  0x80   :  { %v2482_v15 = vld [vmem:[#allocation5 + $0x378] sm:$0xff]  ;;  %v2431_v21 = vld [vmem:[#allocation5 + $0x1e0] sm:$0xff]  ;;  %9019 = vst [vmem:[#allocation38_spill] sm:$0xff] %v7747_v60  ;;  %v2497_v53 = vld [vmem:[#allocation5 + $0x3f0] sm:$0xff] }
  0x81   :  { %5692 = vmatpush1.bf16.msk.msra.mxu0 %vm7465_vm2, %v5690_v24  ;;  %5742 = vmatpush1.bf16.msk.msra.mxu1 %vm7465_vm2, %v5740_v25  ;;  %v7670_v24 = vpack.c.bf16 %v2427_v18, %v2421_v16  ;;  %v7672_v25 = vpack.c.bf16 %v2390_v20, %v2384_v19  ;;  %v2488_v16 = vld [vmem:[#allocation5 + $0x3a8] sm:$0xff]  ;;  %v7717_v18 = vpack.c.bf16 %v2425_v7, %v2419_v6  ;;  %v2499_v47 = vld [vmem:[#allocation5 + $0x400] sm:$0xff]  ;;  %v2505_v6 = vld [vmem:[#allocation5 + $0x430] sm:$0xff] }
  0x82   :  { %5704 = vmatprep.subr.bf16.mxu0 %v5703_v26  ;;  %5792 = vmatprep.subr.bf16.mxu1 %v7617_v30  ;;  %v2383_v26 = vld [vmem:[#allocation5 + $0x60] sm:$0xff]  ;;  %v7721_v19 = vpack.c.bf16 %v2475_v10, %v2469_v8  ;;  %v7745_v59 = vpack.c.bf16 %v2499_v47, %v2493_v45  ;;  %v7750_v7 = vpack.c.bf16 %v2512_v56, %v2506_v54  ;;  %v2468_v10 = vld [vmem:[#allocation5 + $0x308] sm:$0xff]  ;;  %v2510_v56 = vld [vmem:[#allocation5 + $0x458] sm:$0xff] }
  0x83   :  { %9002 = vst [vmem:[#allocation21_spill] sm:$0xff] %v7670_v24  ;;  %v7680_v36 = vpack.c.bf16 %v2389_v27, %v2383_v26  ;;  %v2481_v26 = vld [vmem:[#allocation5 + $0x370] sm:$0xff]  ;;  %v7726_v27 = vpack.c.bf16 %v2488_v16, %v2482_v15  ;;  %v2511_v8 = vld [vmem:[#allocation5 + $0x460] sm:$0xff]  ;;  %v2504_v54 = vld [vmem:[#allocation5 + $0x428] sm:$0xff] }
  0x84   :  { %5360 = vmatmul.mubr.msk.f32.vlgmr.msra.gmra.mrb[20].mxu0 %vm518_vm3, %v7476_v31  ;;  %5375 = vmatmul.mubr.msk.f32.vlgmr.msra.gmra.mrb[20].mxu1 %vm518_vm3, %v7476_v31  ;;  %9010 = vst [vmem:[#allocation29_spill] sm:$0xff] %v7721_v19  ;;  %9018 = vst [vmem:[#allocation37_spill] sm:$0xff] %v7745_v59  ;;  %v7757_v15 = vpack.c.bf16 %v2511_v8, %v2505_v6  ;;  %v2491_v48 = vld [vmem:[#allocation5 + $0x3c0] sm:$0xff]  ;;  %v2509_v8 = vld [vmem:[#allocation5 + $0x450] sm:$0xff] }
  0x85   :  { %5706 = vmatpush1.bf16.msra.mxu0 %v5705_v37  ;;  %5794 = vmatpush1.bf16.msra.mxu1 %v7624_v38  ;;  %v7685_v37 = vpack.c.bf16 %v2439_v32, %v2433_v28  ;;  %9012 = vst [vmem:[#allocation31_spill] sm:$0xff] %v7726_v27  ;;  %v2487_v28 = vld [vmem:[#allocation5 + $0x3a0] sm:$0xff]  ;;  %v2444_v32 = vld [vmem:[#allocation5 + $0x248] sm:$0xff]  ;;  %9020 = vst [vmem:[#allocation39_spill] sm:$0xff] %v7750_v7 }
  0x86   :  { %5709 = vmatprep.subr.msk.bf16.mxu0 %vm7465_vm2, %v5707_v39  ;;  %5796 = vmatprep.subr.bf16.mxu1 %v7627_v43  ;;  %v7687_v39 = vpack.c.bf16 %v2402_v33, %v2396_v1  ;;  %v2450_v1 = vld [vmem:[#allocation5 + $0x278] sm:$0xff]  ;;  %9022 = vst [vmem:[#allocation41_spill] sm:$0xff] %v7757_v15  ;;  %v2503_v6 = vld [vmem:[#allocation5 + $0x420] sm:$0xff] }
  0x87   :  { %2151 = vmatprep.mubr.f32.mxu0 %v8868_v0  ;;  %2654 = vmatprep.mubr.f32.mxu1 %v8868_v0  ;;  %9004 = vst [vmem:[#allocation23_spill] sm:$0xff] %v7685_v37  ;;  %v2494_v33 = vld [vmem:[#allocation5 + $0x3d8] sm:$0xff] }
  0x89   :  { %5712 = vmatpush1.bf16.msk.msra.mxu0 %vm7465_vm2, %v5710_v49  ;;  %5798 = vmatpush1.bf16.msra.mxu1 %v7636_v50  ;;  %v7693_v49 = vpack.c.bf16 %v2401_v41, %v2395_v40  ;;  %v7733_v40 = vpack.c.bf16 %v2487_v28, %v2481_v26  ;;  %v7735_v41 = vpack.c.bf16 %v2450_v1, %v2444_v32  ;;  %v2480_v26 = vld [vmem:[#allocation5 + $0x368] sm:$0xff]  ;;  %v2486_v28 = vld [vmem:[#allocation5 + $0x398] sm:$0xff] }
  0x8a   :  { %5724 = vmatprep.subr.bf16.mxu0 %v5723_v51  ;;  %5800 = vmatprep.subr.bf16.mxu1 %v7640_v55  ;;  %v7697_v51 = vpack.c.bf16 %v2451_v44, %v2445_v42  ;;  %v2443_v42 = vld [vmem:[#allocation5 + $0x240] sm:$0xff]  ;;  %v2449_v44 = vld [vmem:[#allocation5 + $0x270] sm:$0xff]  ;;  %v7767_v1 = vpack.c.bf16 %v2486_v28, %v2480_v26 }
  0x8b   :  { %9014 = vst [vmem:[#allocation33_spill] sm:$0xff] %v7733_v40  ;;  %9015 = vst [vmem:[#allocation34_spill] sm:$0xff] %v7735_v41  ;;  %v7741_v58 = vpack.c.bf16 %v2449_v44, %v2443_v42  ;;  %v2492_v42 = vld [vmem:[#allocation5 + $0x3c8] sm:$0xff]  ;;  %v2498_v44 = vld [vmem:[#allocation5 + $0x3f8] sm:$0xff] }
  0x8c   :  { %5366 = vmatmul.mubr.msk.f32.vlgmr.msra.gmra.mrb[22].mxu0 %vm518_vm3, %v7476_v31  ;;  %9006 = vst [vmem:[#allocation25_spill] sm:$0xff] %v7697_v51  ;;  %9025 = vst [vmem:[#allocation44_spill] sm:$0xff] %v7767_v1  ;;  %v7775_v47 = vpack.c.bf16 %v2498_v44, %v2492_v42  ;;  %v2375_v26 = vld [vmem:[#allocation5 + $0x20] sm:$0xff]  ;;  %v2381_v28 = vld [vmem:[#allocation5 + $0x50] sm:$0xff] }
  0x8d   :  { %5726 = vmatpush1.bf16.msra.mxu0 %v5725_v61  ;;  %2293 = vmatprep.mubr.f32.mxu0 %v8868_v0  ;;  %v2470_v61 = vld [vmem:[#allocation5 + $0x318] sm:$0xff]  ;;  %9017 = vst [vmem:[#allocation36_spill] sm:$0xff] %v7741_v58  ;;  %v7796_v42 = vpack.c.bf16 %v2381_v28, %v2375_v26  ;;  %v2412_v26 = vld [vmem:[#allocation5 + $0x148] sm:$0xff] }
  0x8e   :  { %5802 = vmatpush1.bf16.msra.mxu1 %v7646_v62  ;;  %5729 = vmatprep.subr.msk.bf16.mxu0 %vm7465_vm2, %v5727_v63  ;;  %v2476_v63 = vld [vmem:[#allocation5 + $0x348] sm:$0xff]  ;;  %9027 = vst [vmem:[#allocation46_spill] sm:$0xff] %v7775_v47  ;;  %v2418_v28 = vld [vmem:[#allocation5 + $0x178] sm:$0xff] }
  0x8f   :  { %5804 = vmatprep.subr.bf16.mxu1 %v7649_v5  ;;  %v7714_v9 = vpack.c.bf16 %v2476_v63, %v2470_v61  ;;  %v2455_v61 = vld [vmem:[#allocation5 + $0x2a0] sm:$0xff]  ;;  %v2461_v63 = vld [vmem:[#allocation5 + $0x2d0] sm:$0xff] }
  0x91   :  { %5732 = vmatpush1.bf16.msk.msra.mxu0 %vm7465_vm2, %v5730_v11  ;;  %9009 = vst [vmem:[#allocation28_spill] sm:$0xff] %v7714_v9  ;;  %v2432_v11 = vld [vmem:[#allocation5 + $0x1e8] sm:$0xff] }
  0x92   :  { %5806 = vmatpush1.bf16.msra.mxu1 %v7657_v12  ;;  %5744 = vmatprep.subr.bf16.mxu0 %v7659_v13  ;;  %v7723_v20 = vpack.c.bf16 %v2438_v14, %v2432_v11  ;;  %v2474_v11 = vld [vmem:[#allocation5 + $0x338] sm:$0xff]  ;;  %v7753_v14 = vpack.c.bf16 %v2461_v63, %v2455_v61  ;;  %v7780_v61 = vpack.c.bf16 %v2497_v53, %v2491_v48  ;;  %v2387_v48 = vld [vmem:[#allocation5 + $0x80] sm:$0xff]  ;;  %v2393_v53 = vld [vmem:[#allocation5 + $0xb0] sm:$0xff] }
  0x93   :  { %5808 = vmatprep.subr.bf16.mxu1 %v7662_v17  ;;  %v7759_v16 = vpack.c.bf16 %v2474_v11, %v2468_v10  ;;  %v7783_v63 = vpack.c.bf16 %v2510_v56, %v2504_v54  ;;  %v2376_v10 = vld [vmem:[#allocation5 + $0x28] sm:$0xff]  ;;  %v2382_v11 = vld [vmem:[#allocation5 + $0x58] sm:$0xff] }
  0x94   :  { %5372 = vmatmul.mubr.msk.f32.vlgmr.msra.gmra.mrb[24].mxu0 %vm518_vm3, %v7476_v31  ;;  %v7690_v31 = vpack.c.bf16 %v2452_v35, %v2446_v34  ;;  %9011 = vst [vmem:[#allocation30_spill] sm:$0xff] %v7723_v20  ;;  %v2500_v34 = vld [vmem:[#allocation5 + $0x408] sm:$0xff]  ;;  %v7729_v35 = vpack.c.bf16 %v2437_v22, %v2431_v21  ;;  %9021 = vst [vmem:[#allocation40_spill] sm:$0xff] %v7753_v14  ;;  %v2467_v21 = vld [vmem:[#allocation5 + $0x300] sm:$0xff] }
  0x95   :  { %5746 = vmatpush1.bf16.msra.mxu0 %v7666_v23  ;;  %2583 = vmatprep.mubr.f32.mxu0 %v8868_v0  ;;  %v7738_v46 = vpack.c.bf16 %v2500_v34, %v2494_v33  ;;  %9023 = vst [vmem:[#allocation42_spill] sm:$0xff] %v7759_v16  ;;  %v2473_v22 = vld [vmem:[#allocation5 + $0x330] sm:$0xff]  ;;  %v2479_v33 = vld [vmem:[#allocation5 + $0x360] sm:$0xff]  ;;  %9028 = vst [vmem:[#allocation47_spill] sm:$0xff] %v7780_v61 }
  0x96   :  { %5810 = vmatpush1.bf16.msra.mxu1 %v7670_v24  ;;  %5748 = vmatprep.subr.bf16.mxu0 %v7672_v25  ;;  %9005 = vst [vmem:[#allocation24_spill] sm:$0xff] %v7690_v31  ;;  %9013 = vst [vmem:[#allocation32_spill] sm:$0xff] %v7729_v35  ;;  %v7763_v32 = vpack.c.bf16 %v2473_v22, %v2467_v21  ;;  %v2485_v34 = vld [vmem:[#allocation5 + $0x390] sm:$0xff]  ;;  %v7788_v21 = vpack.c.bf16 %v2509_v8, %v2503_v6  ;;  %v2400_v54 = vld [vmem:[#allocation5 + $0xe8] sm:$0xff] }
  0x97   :  { %5812 = vmatprep.subr.bf16.mxu1 %v7675_v29  ;;  %9016 = vst [vmem:[#allocation35_spill] sm:$0xff] %v7738_v46  ;;  %v7772_v45 = vpack.c.bf16 %v2485_v34, %v2479_v33  ;;  %9029 = vst [vmem:[#allocation48_spill] sm:$0xff] %v7783_v63  ;;  %v7791_v22 = vpack.c.bf16 %v2382_v11, %v2376_v10  ;;  %v2388_v33 = vld [vmem:[#allocation5 + $0x88] sm:$0xff]  ;;  %v2394_v34 = vld [vmem:[#allocation5 + $0xb8] sm:$0xff]  ;;  %v7805_v6 = vpack.c.bf16 %v2393_v53, %v2387_v48 }
  0x98   :  { %9024 = vst [vmem:[#allocation43_spill] sm:$0xff] %v7763_v32  ;;  %9030 = vst [vmem:[#allocation49_spill] sm:$0xff] %v7788_v21  ;;  %v7799_v44 = vpack.c.bf16 %v2394_v34, %v2388_v33  ;;  %v2406_v56 = vld [vmem:[#allocation5 + $0x118] sm:$0xff]  ;;  %v2399_v10 = vld [vmem:[#allocation5 + $0xe0] sm:$0xff]  ;;  %v7817_v34 = vpack.c.bf16 %v2418_v28, %v2412_v26 }
  0x99   :  { %5750 = vmatpush1.bf16.msra.mxu0 %v7680_v36  ;;  %9026 = vst [vmem:[#allocation45_spill] sm:$0xff] %v7772_v45  ;;  %9031 = vst [vmem:[#allocation50_spill] sm:$0xff] %v7791_v22  ;;  %v7809_v8 = vpack.c.bf16 %v2406_v56, %v2400_v54  ;;  %v2405_v11 = vld [vmem:[#allocation5 + $0x110] sm:$0xff]  ;;  %v2411_v48 = vld [vmem:[#allocation5 + $0x140] sm:$0xff] }
  0x9a   :  { %5814 = vmatpush1.bf16.msra.mxu1 %v7685_v37  ;;  %5752 = vmatprep.subr.bf16.mxu0 %v7687_v39  ;;  %v7814_v33 = vpack.c.bf16 %v2405_v11, %v2399_v10  ;;  %v2417_v53 = vld [vmem:[#allocation5 + $0x170] sm:$0xff]  ;;  %v2424_v54 = vld [vmem:[#allocation5 + $0x1a8] sm:$0xff]  ;;  %v2430_v56 = vld [vmem:[#allocation5 + $0x1d8] sm:$0xff] }
  0x9b   :  { %5816 = vmatprep.subr.bf16.mxu1 %v7690_v31  ;;  %v7825_v10 = vpack.c.bf16 %v2430_v56, %v2424_v54  ;;  %v2423_v11 = vld [vmem:[#allocation5 + $0x1a0] sm:$0xff]  ;;  %v2436_v26 = vld [vmem:[#allocation5 + $0x208] sm:$0xff]  ;;  %v2442_v28 = vld [vmem:[#allocation5 + $0x238] sm:$0xff] }
  0x9c   :  { %v2448_v54 = vld [vmem:[#allocation5 + $0x268] sm:$0xff]  ;;  %v2454_v56 = vld [vmem:[#allocation5 + $0x298] sm:$0xff] }
  0x9d   :  { %5754 = vmatpush1.bf16.msra.mxu0 %v7693_v49 }
  0x9e   :  { %5818 = vmatpush1.bf16.msra.mxu1 %v7697_v51  ;;  %5756 = vmatprep.subr.bf16.mxu0 %v7699_v52 }
  0x9f   :  { %5820 = vmatprep.subr.bf16.mxu1 %v7702_v57 }
  0xa1   :  { %5758 = vmatpush1.bf16.msra.mxu0 %v7705_v2 }
  0xa2   :  { %5822 = vmatpush1.bf16.msra.mxu1 %v7709_v3  ;;  %5760 = vmatprep.subr.bf16.mxu0 %v7711_v4 }
  0xa3   :  { %5824 = vmatprep.subr.bf16.mxu1 %v7714_v9 }
  0xa5   :  { %5762 = vmatpush1.bf16.msra.mxu0 %v7717_v18 }
  0xa6   :  { %5826 = vmatpush1.bf16.msra.mxu1 %v7721_v19  ;;  %5764 = vmatprep.subr.bf16.mxu0 %v7723_v20 }
  0xa7   :  { %5828 = vmatprep.subr.bf16.mxu1 %v7726_v27 }
  0xa9   :  { %5766 = vmatpush1.bf16.msra.mxu0 %v7729_v35 }
  0xaa   :  { %5830 = vmatpush1.bf16.msra.mxu1 %v7733_v40  ;;  %5768 = vmatprep.subr.bf16.mxu0 %v7735_v41 }
  0xab   :  { %5832 = vmatprep.subr.bf16.mxu1 %v7738_v46 }
  0xad   :  { %5770 = vmatpush1.bf16.msra.mxu0 %v7741_v58 }
  0xae   :  { %5834 = vmatpush1.bf16.msra.mxu1 %v7745_v59  ;;  %5772 = vmatprep.subr.bf16.mxu0 %v7747_v60 }
  0xaf   :  { %5836 = vmatprep.subr.bf16.mxu1 %v7750_v7 }
  0xb1   :  { %5774 = vmatpush1.bf16.msra.mxu0 %v7753_v14 }
  0xb2   :  { %5838 = vmatpush1.bf16.msra.mxu1 %v7757_v15  ;;  %5776 = vmatprep.subr.bf16.mxu0 %v7759_v16 }
  0xb3   :  { %5888 = vmatprep.subr.bf16.mxu1 %v7659_v13 }
  0xb5   :  { %2655 = vmatmul.mubr.f32.vlgmr.msra.gmra.mrb[22].mxu1 %v8868_v0  ;;  %5778 = vmatpush1.bf16.msra.mxu0 %v7763_v32 }
  0xb6   :  { %5780 = vmatprep.subr.bf16.mxu0 %v7767_v1  ;;  %5890 = vmatpush1.bf16.msra.mxu1 %v7666_v23 }
  0xb7   :  { %5892 = vmatprep.subr.bf16.mxu1 %v7672_v25 }
  0xb9   :  { %5782 = vmatpush1.bf16.msra.mxu0 %v7772_v45 }
  0xba   :  { %5784 = vmatprep.subr.bf16.mxu0 %v7775_v47  ;;  %5894 = vmatpush1.bf16.msra.mxu1 %v7680_v36 }
  0xbb   :  { %5896 = vmatprep.subr.bf16.mxu1 %v7687_v39 }
  0xbd   :  { %5786 = vmatpush1.bf16.msra.mxu0 %v7780_v61 }
  0xbe   :  { %5788 = vmatprep.subr.bf16.mxu0 %v7783_v63  ;;  %5898 = vmatpush1.bf16.msra.mxu1 %v7693_v49 }
  0xbf   :  { %5900 = vmatprep.subr.bf16.mxu1 %v7699_v52 }
  0xc1   :  { %5790 = vmatpush1.bf16.msra.mxu0 %v7788_v21 }
  0xc2   :  { %5840 = vmatprep.subr.bf16.mxu0 %v7791_v22  ;;  %5902 = vmatpush1.bf16.msra.mxu1 %v7705_v2 }
  0xc3   :  { %5904 = vmatprep.subr.bf16.mxu1 %v7711_v4 }
  0xc4   :  { %2584 = vmatmul.mubr.f32.vlgmr.msra.gmra.mrb[0].mxu0 %v8868_v0 }
  0xc5   :  { %5842 = vmatpush1.bf16.msra.mxu0 %v7796_v42  ;;  %2725 = vmatprep.mubr.f32.mxu0 %v8868_v0  ;;  %v7822_v0 = vpack.c.bf16 %v2417_v53, %v2411_v48  ;;  %v7833_v48 = vpack.c.bf16 %v2442_v28, %v2436_v26  ;;  %v2435_v53 = vld [vmem:[#allocation5 + $0x200] sm:$0xff]  ;;  %v2460_v26 = vld [vmem:[#allocation5 + $0x2c8] sm:$0xff]  ;;  %v2466_v28 = vld [vmem:[#allocation5 + $0x2f8] sm:$0xff] }
  0xc6   :  { %5844 = vmatprep.subr.bf16.mxu0 %v7799_v44  ;;  %5906 = vmatpush1.bf16.msra.mxu1 %v7717_v18 }
  0xc7   :  { %5908 = vmatprep.subr.bf16.mxu1 %v7723_v20  ;;  %v2429_v20 = vld [vmem:[#allocation5 + $0x1d0] sm:$0xff] }
  0xc9   :  { %5846 = vmatpush1.bf16.msra.mxu0 %v7805_v6 }
  0xca   :  { %5848 = vmatprep.subr.bf16.mxu0 %v7809_v8  ;;  %5910 = vmatpush1.bf16.msra.mxu1 %v7729_v35  ;;  %v7830_v35 = vpack.c.bf16 %v2429_v20, %v2423_v11  ;;  %v7841_v20 = vpack.c.bf16 %v2454_v56, %v2448_v54  ;;  %v2447_v11 = vld [vmem:[#allocation5 + $0x260] sm:$0xff]  ;;  %v2472_v54 = vld [vmem:[#allocation5 + $0x328] sm:$0xff]  ;;  %v2478_v56 = vld [vmem:[#allocation5 + $0x358] sm:$0xff] }
  0xcb   :  { %5912 = vmatprep.subr.bf16.mxu1 %v7735_v41  ;;  %v2441_v41 = vld [vmem:[#allocation5 + $0x230] sm:$0xff] }
  0xcd   :  { %5850 = vmatpush1.bf16.msra.mxu0 %v7814_v33 }
  0xce   :  { %5852 = vmatprep.subr.bf16.mxu0 %v7817_v34  ;;  %5914 = vmatpush1.bf16.msra.mxu1 %v7741_v58  ;;  %v7838_v58 = vpack.c.bf16 %v2441_v41, %v2435_v53  ;;  %v7849_v41 = vpack.c.bf16 %v2466_v28, %v2460_v26  ;;  %v2459_v53 = vld [vmem:[#allocation5 + $0x2c0] sm:$0xff]  ;;  %v2484_v26 = vld [vmem:[#allocation5 + $0x388] sm:$0xff]  ;;  %v2490_v28 = vld [vmem:[#allocation5 + $0x3b8] sm:$0xff] }
  0xcf   :  { %5916 = vmatprep.subr.bf16.mxu1 %v7747_v60  ;;  %v2453_v60 = vld [vmem:[#allocation5 + $0x290] sm:$0xff] }
  0xd1   :  { %5854 = vmatpush1.bf16.msra.mxu0 %v7822_v0 }
  0xd2   :  { %5856 = vmatprep.subr.bf16.mxu0 %v7825_v10  ;;  %5918 = vmatpush1.bf16.msra.mxu1 %v7753_v14  ;;  %v7846_v14 = vpack.c.bf16 %v2453_v60, %v2447_v11  ;;  %v7857_v60 = vpack.c.bf16 %v2478_v56, %v2472_v54  ;;  %v2471_v11 = vld [vmem:[#allocation5 + $0x320] sm:$0xff]  ;;  %v2496_v54 = vld [vmem:[#allocation5 + $0x3e8] sm:$0xff]  ;;  %v2502_v56 = vld [vmem:[#allocation5 + $0x418] sm:$0xff] }
  0xd3   :  { %5920 = vmatprep.subr.bf16.mxu1 %v7759_v16  ;;  %v2465_v16 = vld [vmem:[#allocation5 + $0x2f0] sm:$0xff] }
  0xd4   :  { %9032 = vst [vmem:[#allocation51_spill] sm:$0xff] %v7857_v60 }
  0xd5   :  { %5858 = vmatpush1.bf16.msra.mxu0 %v7830_v35 }
  0xd6   :  { %5860 = vmatprep.subr.bf16.mxu0 %v7833_v48  ;;  %5922 = vmatpush1.bf16.msra.mxu1 %v7763_v32  ;;  %v7854_v32 = vpack.c.bf16 %v2465_v16, %v2459_v53  ;;  %v7865_v16 = vpack.c.bf16 %v2490_v28, %v2484_v26  ;;  %v2483_v53 = vld [vmem:[#allocation5 + $0x380] sm:$0xff]  ;;  %v2508_v26 = vld [vmem:[#allocation5 + $0x448] sm:$0xff]  ;;  %v2514_v28 = vld [vmem:[#allocation5 + $0x478] sm:$0xff] }
  0xd7   :  { %5924 = vmatprep.subr.bf16.mxu1 %v7767_v1  ;;  %v2477_v1 = vld [vmem:[#allocation5 + $0x350] sm:$0xff] }
  0xd9   :  { %5862 = vmatpush1.bf16.msra.mxu0 %v7838_v58 }
  0xda   :  { %5864 = vmatprep.subr.bf16.mxu0 %v7841_v20  ;;  %5926 = vmatpush1.bf16.msra.mxu1 %v7772_v45  ;;  %v7862_v45 = vpack.c.bf16 %v2477_v1, %v2471_v11  ;;  %v7873_v1 = vpack.c.bf16 %v2502_v56, %v2496_v54  ;;  %v2495_v11 = vld [vmem:[#allocation5 + $0x3e0] sm:$0xff] }
  0xdb   :  { %5928 = vmatprep.subr.bf16.mxu1 %v7775_v47  ;;  %v2489_v47 = vld [vmem:[#allocation5 + $0x3b0] sm:$0xff] }
  0xdc   :  { %9033 = vst [vmem:[#allocation52_spill] sm:$0xff] %v7862_v45 }
  0xdd   :  { %5866 = vmatpush1.bf16.msra.mxu0 %v7846_v14 }
  0xde   :  { %5868 = vmatprep.subr.bf16.mxu0 %v7849_v41  ;;  %5930 = vmatpush1.bf16.msra.mxu1 %v7780_v61  ;;  %v7870_v61 = vpack.c.bf16 %v2489_v47, %v2483_v53  ;;  %v9038_v53 = vmov 0.0  }
  0xdf   :  { %5932 = vmatprep.subr.bf16.mxu1 %v7783_v63  ;;  %v2501_v63 = vld [vmem:[#allocation5 + $0x410] sm:$0xff] }
  0xe0   :  { %9034 = vst [vmem:[#allocation53_spill] sm:$0xff] %v7870_v61 }
  0xe1   :  { %5870 = vmatpush1.bf16.msra.mxu0 %v7854_v32 }
  0xe2   :  { %5872 = vmatprep.subr.bf16.mxu0 %v7857_v60  ;;  %5934 = vmatpush1.bf16.msra.mxu1 %v7788_v21  ;;  %v7876_v60 = vpack.c.bf16 %v2501_v63, %v2495_v11  ;;  %v7879_v21 = vpack.c.bf16 %v2514_v28, %v2508_v26  ;;  %v7920_v11 = vld [vmem:[%s8856_s2] sm:$0xff] }
  0xe3   :  { %5984 = vmatprep.subr.bf16.mxu1 %v7791_v22  ;;  %v2507_v22 = vld [vmem:[#allocation5 + $0x440] sm:$0xff] }
  0xe4   :  { %9035 = vst [vmem:[#allocation54_spill] sm:$0xff] %v7876_v60  ;;  %9036 = vst [vmem:[#allocation55_spill] sm:$0xff] %v7879_v21 }
  0xe5   :  { %5874 = vmatpush1.bf16.msra.mxu0 %v7862_v45  ;;  %v2513_v45 = vld [vmem:[#allocation5 + $0x470] sm:$0xff] }
  0xe6   :  { %5876 = vmatprep.subr.bf16.mxu0 %v7865_v16  ;;  %v7882_v47 = vpack.c.bf16 %v2513_v45, %v2507_v22  ;;  %v278_v22 = vlaneseq }
  0xe8   :  { %9037 = vst [vmem:[#allocation56_spill] sm:$0xff] %v7882_v47  ;;  %v7912_v54 = vshrl.u32 %v278_v22, 7 }
  0xe9   :  { %5878 = vmatpush1.bf16.msra.mxu0 %v7870_v61 }
  0xea   :  { %5880 = vmatprep.subr.bf16.mxu0 %v7873_v1  ;;  %9039 = vst [vmem:[#allocation57_spill] sm:$0xff] %v7912_v54  ;;  %v7915_v56 = vsub.s32 2, %v7912_v54  ;;  %v7923_v26 = vsub.s32 3, %v7912_v54 }
  0xec   :  { %9040 = vst [vmem:[#allocation58_spill] sm:$0xff] %v7915_v56  ;;  %9041 = vst [vmem:[#allocation59_spill] sm:$0xff] %v7923_v26  ;;  %v289_v28 = vrot.slane %v7920_v11, %v7915_v56 }
  0xed   :  { %5882 = vmatpush1.bf16.msra.mxu0 %v7876_v60 }
  0xee   :  { %5884 = vmatprep.subr.bf16.mxu0 %v7879_v21 }
  0xf1   :  { %5886 = vmatpush1.bf16.msra.mxu0 %v7882_v47 }
  0xf2   :  { %5936 = vmatprep.subr.bf16.mxu0 %v7617_v30 }
  0xf4   :  { %2726 = vmatmul.mubr.f32.vlgmr.msra.gmra.mrb[4].mxu0 %v9038_v53  ;;  %v293_v53 = vrot.slane %v7920_v11, %v7923_v26 }
  0xf5   :  { %5938 = vmatpush1.bf16.msra.mxu0 %v7624_v38 }
  0xf6   :  { %5940 = vmatprep.subr.bf16.mxu0 %v7627_v43 }
  0xf9   :  { %5942 = vmatpush1.bf16.msra.mxu0 %v7636_v50 }
  0xfa   :  { %5944 = vmatprep.subr.bf16.mxu0 %v7640_v55 }
  0xfd   :  { %5946 = vmatpush1.bf16.msra.mxu0 %v7646_v62 }
  0xfe   :  { %5948 = vmatprep.subr.bf16.mxu0 %v7649_v5 }
 0x101   :  { %5950 = vmatpush1.bf16.msra.mxu0 %v7657_v12 }
 0x102   :  { %5952 = vmatprep.subr.bf16.mxu0 %v7662_v17 }
 0x105   :  { %5954 = vmatpush1.bf16.msra.mxu0 %v7670_v24 }
 0x106   :  { %5956 = vmatprep.subr.bf16.mxu0 %v7675_v29 }
 0x109   :  { %5958 = vmatpush1.bf16.msra.mxu0 %v7685_v37 }
 0x10a   :  { %5960 = vmatprep.subr.bf16.mxu0 %v7690_v31 }
 0x10d   :  { %5962 = vmatpush1.bf16.msra.mxu0 %v7697_v51 }
 0x10e   :  { %5964 = vmatprep.subr.bf16.mxu0 %v7702_v57 }
 0x10f   :  { %v804_v45 = vpop.f32.mrb[2].mxu0 }
 0x110   :  { %v806_v63 = vpop.f32.mrb[3].mxu0 }
 0x111   :  { %5966 = vmatpush1.bf16.msra.mxu0 %v7709_v3  ;;  %v807_v22 = vadd.f32 %v806_v63, %v293_v53 }
 0x112   :  { %5968 = vmatprep.subr.bf16.mxu0 %v7714_v9  ;;  %v7935_v9 = vsub.s32 5, %v7912_v54 }
 0x114   :  { %9043 = vst [vmem:[#allocation61_spill] sm:$0xff] %v7935_v9 }
 0x115   :  { %5970 = vmatpush1.bf16.msra.mxu0 %v7721_v19  ;;  %v7932_v19 = vsub.s32 4, %v7912_v54 }
 0x116   :  { %5972 = vmatprep.subr.bf16.mxu0 %v7726_v27 }
 0x117   :  { %9042 = vst [vmem:[#allocation60_spill] sm:$0xff] %v7932_v19  ;;  %v297_v56 = vrot.slane %v7920_v11, %v7932_v19 }
 0x119   :  { %5974 = vmatpush1.bf16.msra.mxu0 %v7733_v40 }
 0x11a   :  { %5976 = vmatprep.subr.bf16.mxu0 %v7738_v46 }
 0x11d   :  { %5978 = vmatpush1.bf16.msra.mxu0 %v7745_v59 }
 0x11e   :  { %5980 = vmatprep.subr.bf16.mxu0 %v7750_v7 }
 0x121   :  { %5982 = vmatpush1.bf16.msra.mxu0 %v7757_v15 }
 0x122   :  { %6032 = vmatprep.subr.bf16.mxu0 %v7659_v13  ;;  %v805_v13 = vadd.f32 %v804_v45, %v289_v28  ;;  %v301_v45 = vrot.slane %v7920_v11, %v7935_v9  ;;  %v7949_v9 = vsub.s32 1, %v7912_v54 }
 0x124   :  { %9045 = vst [vmem:[#allocation63_spill] sm:$0xff] %v7949_v9 }
 0x188   :  { %v2656_v15 = vpop.f32.mrb[22].mxu1 }
 0x189   :  { %v2734_v7 = vadd.f32 %v2656_v15, %v805_v13  ;;  %v2658_v59 = vpop.f32.mrb[23].mxu1 }
 0x18a   :  { %v7929_v46 = vadd.f32 %v2658_v59, %v807_v22  ;;  %v7944_v22 = vsub.s32 0, %v7912_v54 }
 0x18c   :  { %9044 = vst [vmem:[#allocation62_spill] sm:$0xff] %v7944_v22  ;;  %v281_v19 = vrot.slane %v7920_v11, %v7944_v22 }
 0x197   :  { %v2585_v40 = vpop.f32.mrb[0].mxu0 }
 0x198   :  { %v2587_v27 = vpop.f32.mrb[1].mxu0 }
 0x1c7   :  { %v2727_v53 = vpop.f32.mrb[4].mxu0 }
 0x1c8   :  { %v6955_v63 = vadd.f32 %v2727_v53, %v297_v56  ;;  %v2729_v13 = vpop.f32.mrb[5].mxu0  ;;  %v6949_v56 = vadd.f32 %v2585_v40, %v281_v19 }
 0x1c9   :  { %v6956_v59 = vadd.f32 %v2729_v13, %v301_v45  ;;  %v285_v45 = vrot.slane %v7920_v11, %v7949_v9 }
 0x1ca   :  { %7058 = vtanh.f32 %v6955_v63  ;;  %v5376_v53 = vmul.f32 -1.442695, %v6949_v56 }
 0x1cb   :  { %7060 = vtanh.f32 %v6956_v59  ;;  %v6950_v13 = vadd.f32 %v2587_v27, %v285_v45  ;;  %v5378_v45 = vmul.f32 -1.442695, %v2734_v7 }
 0x1cc   :  { %7062 = vpow2.f32 %v5376_v53 }
 0x1cd   :  { %v5377_v59 = vmul.f32 -1.442695, %v6950_v13 }
 0x1cf   :  { %7064 = vpow2.f32 %v5377_v59 }
 0x1d4   :  { %v7059_v15 = vpop.eup %7058 }
 0x1d5   :  { %2774 = vrot.lane.b32.xlu0 %v7059_v15, %s7363_s21  ;;  %v7061_v28 = vpop.eup %7060 }
 0x1d6   :  { %v7063_v15 = vpop.eup %7062 }
 0x1d9   :  { %2776 = vrot.lane.b32.xlu0 %v7061_v28, %s7363_s21  ;;  %v2753_v28 = vadd.f32 1.0, %v7063_v15  ;;  %v7065_v26 = vpop.eup %7064 }
 0x1da   :  { %v2754_v3 = vadd.f32 1.0, %v7065_v26 }
 0x1db   :  { %7066 = vrcp.f32 %v2753_v28 }
 0x1dc   :  { %7068 = vrcp.f32 %v2754_v3 }
 0x1dd   :  { %7070 = vpow2.f32 %v5378_v45 }
 0x1e5   :  { %v7067_v54 = vpop.eup %7066 }
 0x1e6   :  { %v7069_v56 = vpop.eup %7068 }
 0x1e7   :  { %v7071_v53 = vpop.eup %7070  ;;  %v2770_v26 = vmul.f32 0.0, %v7069_v56 }
 0x1e8   :  { %v2755_v13 = vadd.f32 1.0, %v7071_v53 }
 0x1ea   :  { %7072 = vrcp.f32 %v2755_v13 }
 0x1f4   :  { %v7073_v59 = vpop.eup %7072 }
 0x247   :  { %v2775_v57 = vpop.permute.xlu0 %2774 }
 0x24b   :  { %v2777_v22 = vpop.permute.xlu0 %2776 }
 0x24c   :  { %v2778_v19 = vsel %vm2515_vm4, %v2775_v57, %v2777_v22  ;;  %v2782_v27 = vmul.f32 %v7069_v56, %v2777_v22  ;;  %v5379_v56 = vmul.f32 -1.442695, %v7929_v46  ;;  %v9046_v46 = vld [vmem:[#allocation30_spill] sm:$0xff] }
 0x24d   :  { %v2781_v40 = vmul.f32 %v7067_v54, %v2778_v19  ;;  %v2771_v54 = vmul.f32 0.0, %v7073_v59 }
 0x24f   :  { %2785 = vrot.lane.b32.xlu1 %v2781_v40, %s7363_s21  ;;  %v5380_v40 = vmul.f32 -1.442695, %v6955_v63  ;;  %v9047_v63 = vld [vmem:[#allocation32_spill] sm:$0xff] }
 0x253   :  { %2787 = vrot.lane.b32.xlu1 %v2782_v27, %s7363_s21 }
 0x2c1   :  { %v2786_v3 = vpop.permute.xlu1 %2785 }
 0x2c2   :  { %v7956_v15 = vadd.f32 %v2786_v3, %v2770_v26 }
 0x2c4   :  { %7074 = vtanh.f32 %v7956_v15 }
 0x2c5   :  { %v2788_v57 = vpop.permute.xlu1 %2787 }
 0x2c6   :  { %v2789_v28 = vsel %vm2515_vm4, %v2786_v3, %v2788_v57 }
 0x2c7   :  { %v7960_v19 = vadd.f32 %v2789_v28, %v2771_v54 }
 0x2c9   :  { %7076 = vtanh.f32 %v7960_v19 }
 0x2ca   :  { %7078 = vpow2.f32 %v5380_v40  ;;  %v9049_v40 = vld [vmem:[#allocation36_spill] sm:$0xff] }
 0x2cb   :  { %7080 = vpow2.f32 %v5379_v56  ;;  %v9050_v56 = vld [vmem:[#allocation38_spill] sm:$0xff] }
 0x2ce   :  { %v7075_v7 = vpop.eup %7074 }
 0x2cf   :  { %2798 = vrot.lane.b32.xlu0 %v7075_v7, %s7363_s21 }
 0x2d3   :  { %v7077_v22 = vpop.eup %7076 }
 0x2d4   :  { %2800 = vrot.lane.b32.xlu1 %v7077_v22, %s7363_s21  ;;  %v7079_v27 = vpop.eup %7078  ;;  %v9048_v22 = vld [vmem:[#allocation34_spill] sm:$0xff] }
 0x2d5   :  { %v7081_v45 = vpop.eup %7080  ;;  %v2757_v53 = vadd.f32 1.0, %v7079_v27  ;;  %v9051_v27 = vld [vmem:[#allocation51_spill] sm:$0xff] }
 0x2d6   :  { %v2756_v13 = vadd.f32 1.0, %v7081_v45  ;;  %v9052_v45 = vld [vmem:[#allocation40_spill] sm:$0xff] }
 0x2d7   :  { %7082 = vrcp.f32 %v2757_v53  ;;  %v9053_v53 = vld [vmem:[#allocation42_spill] sm:$0xff] }
 0x2d8   :  { %7084 = vrcp.f32 %v2756_v13  ;;  %v9054_v13 = vld [vmem:[#allocation52_spill] sm:$0xff] }
 0x2e1   :  { %v7083_v26 = vpop.eup %7082 }
 0x2e2   :  { %v7085_v57 = vpop.eup %7084 }
 0x341   :  { %v2799_v3 = vpop.permute.xlu0 %2798 }
 0x346   :  { %v2801_v59 = vpop.permute.xlu1 %2800 }
 0x347   :  { %v2802_v54 = vsel %vm2515_vm4, %v2799_v3, %v2801_v59  ;;  %v2806_v28 = vmul.f32 %v7083_v26, %v2801_v59  ;;  %v9055_v26 = vld [vmem:[#allocation43_spill] sm:$0xff]  ;;  %v9056_v3 = vld [vmem:[#allocation44_spill] sm:$0xff]  ;;  %v9057_v59 = vld [vmem:[#allocation45_spill] sm:$0xff] }
 0x348   :  { %v2805_v7 = vmul.f32 %v7085_v57, %v2802_v54  ;;  %v9058_v57 = vld [vmem:[#allocation46_spill] sm:$0xff]  ;;  %v9059_v54 = vld [vmem:[#allocation47_spill] sm:$0xff] }
 0x349   :  { %5381 = vmatprep.mubr.msk.f32.mxu1 %vm2515_vm4, %v2806_v28  ;;  %5382 = vmatprep.mubr.msk.f32.mxu0 %vm2515_vm4, %v2806_v28 }
 0x34a   :  { %2875 = vmatmul.mubr.f32.vlgmr.msra.gmra.mrb[0].mxu1 %v2805_v7  ;;  %2946 = vmatmul.mubr.f32.vlgmr.msra.gmra.mrb[6].mxu0 %v2805_v7 }
 0x34b   :  { %5986 = vmatpush1.bf16.msra.mxu1 %v7796_v42  ;;  %5383 = vmatprep.mubr.msk.f32.mxu1 %vm2515_vm4, %v2806_v28  ;;  %v9060_v28 = vld [vmem:[#allocation48_spill] sm:$0xff] }
 0x34c   :  { %5988 = vmatprep.subr.bf16.mxu1 %v7799_v44  ;;  %6034 = vmatpush1.bf16.msra.mxu0 %v7666_v23 }
 0x34d   :  { %6036 = vmatprep.subr.bf16.mxu0 %v7672_v25 }
 0x34f   :  { %5990 = vmatpush1.bf16.msra.mxu1 %v7805_v6 }
 0x350   :  { %5992 = vmatprep.subr.bf16.mxu1 %v7809_v8  ;;  %6038 = vmatpush1.bf16.msra.mxu0 %v7680_v36 }
 0x351   :  { %6040 = vmatprep.subr.bf16.mxu0 %v7687_v39 }
 0x353   :  { %5994 = vmatpush1.bf16.msra.mxu1 %v7814_v33 }
 0x354   :  { %5996 = vmatprep.subr.bf16.mxu1 %v7817_v34  ;;  %6042 = vmatpush1.bf16.msra.mxu0 %v7693_v49 }
 0x355   :  { %6044 = vmatprep.subr.bf16.mxu0 %v7699_v52 }
 0x357   :  { %5998 = vmatpush1.bf16.msra.mxu1 %v7822_v0 }
 0x358   :  { %6000 = vmatprep.subr.bf16.mxu1 %v7825_v10  ;;  %6046 = vmatpush1.bf16.msra.mxu0 %v7705_v2 }
 0x359   :  { %6048 = vmatprep.subr.bf16.mxu0 %v7711_v4 }
 0x35b   :  { %6002 = vmatpush1.bf16.msra.mxu1 %v7830_v35 }
 0x35c   :  { %6004 = vmatprep.subr.bf16.mxu1 %v7833_v48  ;;  %6050 = vmatpush1.bf16.msra.mxu0 %v7717_v18 }
 0x35d   :  { %6052 = vmatprep.subr.bf16.mxu0 %v9046_v46 }
 0x35f   :  { %6006 = vmatpush1.bf16.msra.mxu1 %v7838_v58 }
 0x360   :  { %6008 = vmatprep.subr.bf16.mxu1 %v7841_v20  ;;  %6054 = vmatpush1.bf16.msra.mxu0 %v9047_v63 }
 0x361   :  { %6056 = vmatprep.subr.bf16.mxu0 %v9048_v22 }
 0x363   :  { %6010 = vmatpush1.bf16.msra.mxu1 %v7846_v14 }
 0x364   :  { %6012 = vmatprep.subr.bf16.mxu1 %v7849_v41  ;;  %6058 = vmatpush1.bf16.msra.mxu0 %v9049_v40 }
 0x365   :  { %6060 = vmatprep.subr.bf16.mxu0 %v9050_v56 }
 0x367   :  { %6014 = vmatpush1.bf16.msra.mxu1 %v7854_v32 }
 0x368   :  { %6016 = vmatprep.subr.bf16.mxu1 %v9051_v27  ;;  %6062 = vmatpush1.bf16.msra.mxu0 %v9052_v45 }
 0x369   :  { %6064 = vmatprep.subr.bf16.mxu0 %v9053_v53 }
 0x36b   :  { %6018 = vmatpush1.bf16.msra.mxu1 %v9054_v13 }
 0x36c   :  { %6020 = vmatprep.subr.bf16.mxu1 %v7865_v16  ;;  %6066 = vmatpush1.bf16.msra.mxu0 %v9055_v26 }
 0x36d   :  { %6068 = vmatprep.subr.bf16.mxu0 %v9056_v3  ;;  %v9061_v3 = vld [vmem:[#allocation49_spill] sm:$0xff] }
 0x36f   :  { %6022 = vmatpush1.bf16.msra.mxu1 %v7870_v61  ;;  %v9062_v61 = vld [vmem:[#allocation50_spill] sm:$0xff] }
 0x370   :  { %6024 = vmatprep.subr.bf16.mxu1 %v7873_v1  ;;  %6070 = vmatpush1.bf16.msra.mxu0 %v9057_v59 }
 0x371   :  { %6072 = vmatprep.subr.bf16.mxu0 %v9058_v57 }
 0x373   :  { %6026 = vmatpush1.bf16.msra.mxu1 %v7876_v60 }
 0x374   :  { %6028 = vmatprep.subr.bf16.mxu1 %v7879_v21  ;;  %6074 = vmatpush1.bf16.msra.mxu0 %v9059_v54 }
 0x375   :  { %6076 = vmatprep.subr.bf16.mxu0 %v9060_v28 }
 0x377   :  { %6030 = vmatpush1.bf16.msra.mxu1 %v7882_v47 }
 0x378   :  { %6080 = vmatprep.subr.bf16.mxu1 %v7617_v30  ;;  %6078 = vmatpush1.bf16.msra.mxu0 %v9061_v3  ;;  %v9076_v3 = vld [vmem:[#allocation57_spill] sm:$0xff] }
 0x379   :  { %6128 = vmatprep.subr.bf16.mxu0 %v9062_v61  ;;  %v8054_v30 = vsub.s32 7, %v9076_v3 }
 0x37a   :  { %3017 = vmatmul.mubr.f32.vlgmr.msra.gmra.mrb[2].mxu1 %v2805_v7  ;;  %v9063_v7 = vld [vmem:[#allocation26_spill] sm:$0xff] }
 0x37b   :  { %6082 = vmatpush1.bf16.msra.mxu1 %v7624_v38  ;;  %9077 = vst [vmem:[#allocation30_spill] sm:$0xff] %v8054_v30 }
 0x37c   :  { %6084 = vmatprep.subr.bf16.mxu1 %v7627_v43 }
 0x37f   :  { %6086 = vmatpush1.bf16.msra.mxu1 %v7636_v50 }
 0x380   :  { %6088 = vmatprep.subr.bf16.mxu1 %v7640_v55  ;;  %v9064_v55 = vld [vmem:[#allocation27_spill] sm:$0xff] }
 0x383   :  { %6090 = vmatpush1.bf16.msra.mxu1 %v7646_v62  ;;  %v9065_v62 = vld [vmem:[#allocation28_spill] sm:$0xff] }
 0x384   :  { %6092 = vmatprep.subr.bf16.mxu1 %v7649_v5  ;;  %v9066_v5 = vld [vmem:[#allocation29_spill] sm:$0xff] }
 0x387   :  { %6094 = vmatpush1.bf16.msra.mxu1 %v7657_v12  ;;  %v9067_v12 = vld [vmem:[#allocation31_spill] sm:$0xff] }
 0x388   :  { %6096 = vmatprep.subr.bf16.mxu1 %v7662_v17  ;;  %v9068_v17 = vld [vmem:[#allocation33_spill] sm:$0xff] }
 0x38b   :  { %6098 = vmatpush1.bf16.msra.mxu1 %v7670_v24  ;;  %v9069_v24 = vld [vmem:[#allocation35_spill] sm:$0xff] }
 0x38c   :  { %6100 = vmatprep.subr.bf16.mxu1 %v7675_v29  ;;  %v9070_v29 = vld [vmem:[#allocation37_spill] sm:$0xff] }
 0x38f   :  { %6102 = vmatpush1.bf16.msra.mxu1 %v7685_v37  ;;  %v9071_v37 = vld [vmem:[#allocation39_spill] sm:$0xff] }
 0x390   :  { %6104 = vmatprep.subr.bf16.mxu1 %v7690_v31  ;;  %v9072_v31 = vld [vmem:[#allocation41_spill] sm:$0xff] }
 0x393   :  { %6106 = vmatpush1.bf16.msra.mxu1 %v7697_v51  ;;  %v9073_v51 = vld [vmem:[#allocation19_spill] sm:$0xff] }
 0x394   :  { %6108 = vmatprep.subr.bf16.mxu1 %v9063_v7 }
 0x397   :  { %6110 = vmatpush1.bf16.msra.mxu1 %v9064_v55 }
 0x398   :  { %6112 = vmatprep.subr.bf16.mxu1 %v9065_v62 }
 0x39b   :  { %6114 = vmatpush1.bf16.msra.mxu1 %v9066_v5  ;;  %v9075_v5 = vld [vmem:[#allocation59_spill] sm:$0xff] }
 0x39c   :  { %6116 = vmatprep.subr.bf16.mxu1 %v9067_v12  ;;  %v8045_v12 = vld [vmem:[%s8856_s2 + $0x8] sm:$0xff] }
 0x39f   :  { %6118 = vmatpush1.bf16.msra.mxu1 %v9068_v17  ;;  %v9074_v17 = vld [vmem:[#allocation58_spill] sm:$0xff] }
 0x3a0   :  { %6120 = vmatprep.subr.bf16.mxu1 %v9069_v24  ;;  %v321_v24 = vrot.slane %v8045_v12, %v9074_v17  ;;  %v8057_v17 = vsub.s32 6, %v9076_v3 }
 0x3a2   :  { %9078 = vst [vmem:[#allocation32_spill] sm:$0xff] %v8057_v17 }
 0x3a3   :  { %6122 = vmatpush1.bf16.msra.mxu1 %v9070_v29  ;;  %v325_v29 = vrot.slane %v8045_v12, %v9075_v5  ;;  %v309_v5 = vrot.slane %v7920_v11, %v8054_v30 }
 0x3a4   :  { %6124 = vmatprep.subr.bf16.mxu1 %v9071_v37 }
 0x3a7   :  { %6126 = vmatpush1.bf16.msra.mxu1 %v9072_v31 }
 0x3a8   :  { %6176 = vmatprep.subr.bf16.mxu1 %v9073_v51 }
 0x41d   :  { %v2876_v7 = vpop.f32.mrb[0].mxu1  ;;  %v2947_v55 = vpop.f32.mrb[6].mxu0 }
 0x41e   :  { %v2878_v50 = vpop.f32.mrb[1].mxu1  ;;  %v2949_v62 = vpop.f32.mrb[7].mxu0 }
 0x44d   :  { %v3018_v37 = vpop.f32.mrb[2].mxu1 }
 0x44e   :  { %v6961_v43 = vadd.f32 %v3018_v37, %v321_v24  ;;  %v3020_v31 = vpop.f32.mrb[3].mxu1  ;;  %v305_v24 = vrot.slane %v7920_v11, %v8057_v17 }
 0x44f   :  { %v6962_v38 = vadd.f32 %v3020_v31, %v325_v29  ;;  %v6958_v29 = vadd.f32 %v2878_v50, %v309_v5  ;;  %v9079_v50 = vld [vmem:[#allocation62_spill] sm:$0xff] }
 0x450   :  { %7086 = vtanh.f32 %v6961_v43  ;;  %v313_v5 = vrot.slane %v8045_v12, %v9079_v50 }
 0x451   :  { %7088 = vtanh.f32 %v6962_v38  ;;  %v6957_v38 = vadd.f32 %v2876_v7, %v305_v24  ;;  %v5385_v37 = vmul.f32 -1.442695, %v6958_v29 }
 0x452   :  { %v6959_v7 = vadd.f32 %v2947_v55, %v313_v5 }
 0x453   :  { %v5384_v31 = vmul.f32 -1.442695, %v6957_v38  ;;  %7090 = vpow2.f32 %v5385_v37 }
 0x454   :  { %v5386_v24 = vmul.f32 -1.442695, %v6959_v7 }
 0x455   :  { %7092 = vpow2.f32 %v5384_v31 }
 0x45a   :  { %v7087_v51 = vpop.eup %7086 }
 0x45b   :  { %v7089_v61 = vpop.eup %7088  ;;  %3065 = vrot.lane.b32.xlu0 %v7087_v51, %s7363_s21 }
 0x45c   :  { %3067 = vrot.lane.b32.xlu1 %v7089_v61, %s7363_s21 }
 0x45d   :  { %v7091_v51 = vpop.eup %7090 }
 0x45e   :  { %v3045_v47 = vadd.f32 1.0, %v7091_v51 }
 0x45f   :  { %v7093_v61 = vpop.eup %7092 }
 0x460   :  { %v3044_v28 = vadd.f32 1.0, %v7093_v61  ;;  %7094 = vrcp.f32 %v3045_v47 }
 0x462   :  { %7096 = vrcp.f32 %v3044_v28 }
 0x463   :  { %7098 = vpow2.f32 %v5386_v24 }
 0x46a   :  { %v7095_v54 = vpop.eup %7094 }
 0x46b   :  { %v3061_v37 = vmul.f32 %v7095_v54, %v7956_v15  ;;  %v317_v15 = vrot.slane %v8045_v12, %v7949_v9 }
 0x46c   :  { %v7097_v60 = vpop.eup %7096 }
 0x46d   :  { %v7099_v47 = vpop.eup %7098 }
 0x46e   :  { %v3046_v28 = vadd.f32 1.0, %v7099_v47 }
 0x470   :  { %7100 = vrcp.f32 %v3046_v28 }
 0x47a   :  { %v7101_v29 = vpop.eup %7100 }
 0x4cd   :  { %v3066_v3 = vpop.permute.xlu0 %3065 }
 0x4ce   :  { %v3068_v21 = vpop.permute.xlu1 %3067 }
 0x4cf   :  { %v3069_v30 = vsel %vm2515_vm4, %v3066_v3, %v3068_v21  ;;  %v3073_v57 = vmul.f32 %v7095_v54, %v3068_v21  ;;  %v3062_v21 = vmul.f32 %v7101_v29, %v7960_v19  ;;  %v6960_v19 = vadd.f32 %v2949_v62, %v317_v15  ;;  %v9081_v62 = vld [vmem:[#allocation53_spill] sm:$0xff]  ;;  %v9086_v15 = vld [vmem:[#allocation48_spill] sm:$0xff] }
 0x4d0   :  { %v3072_v11 = vmul.f32 %v7097_v60, %v3069_v30  ;;  %v5388_v54 = vmul.f32 -1.442695, %v6961_v43  ;;  %v9080_v43 = vld [vmem:[#allocation44_spill] sm:$0xff] }
 0x4d1   :  { %3078 = vrot.lane.b32.xlu1 %v3073_v57, %s7363_s21  ;;  %v5387_v61 = vmul.f32 -1.442695, %v6960_v19  ;;  %v9087_v19 = vld [vmem:[#allocation56_spill] sm:$0xff] }
 0x4d2   :  { %3076 = vrot.lane.b32.xlu0 %v3072_v11, %s7363_s21 }
 0x543   :  { %v3079_v38 = vpop.permute.xlu1 %3078 }
 0x544   :  { %v3077_v30 = vpop.permute.xlu0 %3076 }
 0x545   :  { %v3080_v60 = vsel %vm2515_vm4, %v3077_v30, %v3079_v38  ;;  %v8071_v57 = vadd.f32 %v3077_v30, %v3061_v37  ;;  %v9082_v30 = vld [vmem:[#allocation46_spill] sm:$0xff] }
 0x546   :  { %v8073_v31 = vadd.f32 %v3080_v60, %v3062_v21  ;;  %v9083_v60 = vld [vmem:[#allocation54_spill] sm:$0xff] }
 0x547   :  { %7102 = vtanh.f32 %v8071_v57 }
 0x548   :  { %7104 = vtanh.f32 %v8073_v31 }
 0x549   :  { %7106 = vpow2.f32 %v5388_v54  ;;  %v9088_v54 = vld [vmem:[#allocation11_spill] sm:$0xff] }
 0x54a   :  { %7108 = vpow2.f32 %v5387_v61  ;;  %v9089_v61 = vld [vmem:[#allocation49_spill] sm:$0xff] }
 0x551   :  { %v7103_v55 = vpop.eup %7102 }
 0x552   :  { %v7105_v51 = vpop.eup %7104  ;;  %3089 = vrot.lane.b32.xlu0 %v7103_v55, %s7363_s21  ;;  %v9084_v55 = vld [vmem:[#allocation55_spill] sm:$0xff] }
 0x553   :  { %3091 = vrot.lane.b32.xlu1 %v7105_v51, %s7363_s21  ;;  %v7107_v3 = vpop.eup %7106  ;;  %v9085_v51 = vld [vmem:[#allocation47_spill] sm:$0xff] }
 0x554   :  { %v7109_v11 = vpop.eup %7108  ;;  %v3048_v5 = vadd.f32 1.0, %v7107_v3  ;;  %v9090_v3 = vld [vmem:[#allocation50_spill] sm:$0xff] }
 0x555   :  { %v3047_v7 = vadd.f32 1.0, %v7109_v11  ;;  %v9091_v11 = vld [vmem:[#allocation12_spill] sm:$0xff] }
 0x556   :  { %7110 = vrcp.f32 %v3048_v5  ;;  %v9092_v5 = vld [vmem:[#allocation13_spill] sm:$0xff] }
 0x557   :  { %7112 = vrcp.f32 %v3047_v7  ;;  %v9093_v7 = vld [vmem:[#allocation14_spill] sm:$0xff] }
 0x560   :  { %v7111_v47 = vpop.eup %7110 }
 0x561   :  { %v7113_v29 = vpop.eup %7112 }
 0x5c4   :  { %v3090_v24 = vpop.permute.xlu0 %3089 }
 0x5c5   :  { %v3092_v28 = vpop.permute.xlu1 %3091 }
 0x5c6   :  { %v3093_v38 = vsel %vm2515_vm4, %v3090_v24, %v3092_v28  ;;  %v3097_v37 = vmul.f32 %v7111_v47, %v3092_v28  ;;  %v9094_v24 = vld [vmem:[#allocation15_spill] sm:$0xff]  ;;  %v9095_v47 = vld [vmem:[#allocation16_spill] sm:$0xff]  ;;  %v9096_v28 = vld [vmem:[#allocation17_spill] sm:$0xff] }
 0x5c7   :  { %v3096_v21 = vmul.f32 %v7113_v29, %v3093_v38  ;;  %v9097_v29 = vld [vmem:[#allocation18_spill] sm:$0xff]  ;;  %v9098_v38 = vld [vmem:[#allocation20_spill] sm:$0xff] }
 0x5c8   :  { %5389 = vmatprep.mubr.msk.f32.mxu0 %vm2515_vm4, %v3097_v37  ;;  %5390 = vmatprep.mubr.msk.f32.mxu1 %vm2515_vm4, %v3097_v37 }
 0x5c9   :  { %3166 = vmatmul.mubr.f32.vlgmr.msra.gmra.mrb[8].mxu0 %v3096_v21  ;;  %3237 = vmatmul.mubr.f32.vlgmr.msra.gmra.mrb[4].mxu1 %v3096_v21 }
 0x5ca   :  { %6130 = vmatpush1.bf16.msra.mxu0 %v7796_v42  ;;  %5391 = vmatprep.mubr.msk.f32.mxu0 %vm2515_vm4, %v3097_v37  ;;  %v9099_v37 = vld [vmem:[#allocation21_spill] sm:$0xff] }
 0x5cb   :  { %6132 = vmatprep.subr.bf16.mxu0 %v7799_v44  ;;  %6178 = vmatpush1.bf16.msra.mxu1 %v7666_v23 }
 0x5cc   :  { %6180 = vmatprep.subr.bf16.mxu1 %v7672_v25 }
 0x5ce   :  { %6134 = vmatpush1.bf16.msra.mxu0 %v7805_v6 }
 0x5cf   :  { %6136 = vmatprep.subr.bf16.mxu0 %v7809_v8  ;;  %6182 = vmatpush1.bf16.msra.mxu1 %v7680_v36 }
 0x5d0   :  { %6184 = vmatprep.subr.bf16.mxu1 %v7687_v39 }
 0x5d2   :  { %6138 = vmatpush1.bf16.msra.mxu0 %v7814_v33 }
 0x5d3   :  { %6140 = vmatprep.subr.bf16.mxu0 %v7817_v34  ;;  %6186 = vmatpush1.bf16.msra.mxu1 %v7693_v49 }
 0x5d4   :  { %6188 = vmatprep.subr.bf16.mxu1 %v7699_v52 }
 0x5d6   :  { %6142 = vmatpush1.bf16.msra.mxu0 %v7822_v0 }
 0x5d7   :  { %6144 = vmatprep.subr.bf16.mxu0 %v7825_v10  ;;  %6190 = vmatpush1.bf16.msra.mxu1 %v7705_v2 }
 0x5d8   :  { %6192 = vmatprep.subr.bf16.mxu1 %v7711_v4 }
 0x5da   :  { %6146 = vmatpush1.bf16.msra.mxu0 %v7830_v35 }
 0x5db   :  { %6148 = vmatprep.subr.bf16.mxu0 %v7833_v48  ;;  %6194 = vmatpush1.bf16.msra.mxu1 %v7717_v18 }
 0x5dc   :  { %6196 = vmatprep.subr.bf16.mxu1 %v9046_v46 }
 0x5de   :  { %6150 = vmatpush1.bf16.msra.mxu0 %v7838_v58 }
 0x5df   :  { %6152 = vmatprep.subr.bf16.mxu0 %v7841_v20  ;;  %6198 = vmatpush1.bf16.msra.mxu1 %v9047_v63 }
 0x5e0   :  { %6200 = vmatprep.subr.bf16.mxu1 %v9048_v22 }
 0x5e2   :  { %6154 = vmatpush1.bf16.msra.mxu0 %v7846_v14 }
 0x5e3   :  { %6156 = vmatprep.subr.bf16.mxu0 %v7849_v41  ;;  %6202 = vmatpush1.bf16.msra.mxu1 %v9049_v40 }
 0x5e4   :  { %6204 = vmatprep.subr.bf16.mxu1 %v9050_v56 }
 0x5e6   :  { %6158 = vmatpush1.bf16.msra.mxu0 %v7854_v32 }
 0x5e7   :  { %6160 = vmatprep.subr.bf16.mxu0 %v9051_v27  ;;  %6206 = vmatpush1.bf16.msra.mxu1 %v9052_v45 }
 0x5e8   :  { %6208 = vmatprep.subr.bf16.mxu1 %v9053_v53 }
 0x5ea   :  { %6162 = vmatpush1.bf16.msra.mxu0 %v9054_v13 }
 0x5eb   :  { %6164 = vmatprep.subr.bf16.mxu0 %v7865_v16  ;;  %6210 = vmatpush1.bf16.msra.mxu1 %v9055_v26 }
 0x5ec   :  { %6212 = vmatprep.subr.bf16.mxu1 %v9080_v43 }
 0x5ee   :  { %6166 = vmatpush1.bf16.msra.mxu0 %v9081_v62 }
 0x5ef   :  { %6168 = vmatprep.subr.bf16.mxu0 %v7873_v1  ;;  %6214 = vmatpush1.bf16.msra.mxu1 %v9057_v59 }
 0x5f0   :  { %6216 = vmatprep.subr.bf16.mxu1 %v9082_v30 }
 0x5f2   :  { %6170 = vmatpush1.bf16.msra.mxu0 %v9083_v60 }
 0x5f3   :  { %6172 = vmatprep.subr.bf16.mxu0 %v9084_v55  ;;  %6218 = vmatpush1.bf16.msra.mxu1 %v9085_v51  ;;  %v9117_v51 = vld [vmem:[#allocation60_spill] sm:$0xff] }
 0x5f4   :  { %6220 = vmatprep.subr.bf16.mxu1 %v9086_v15 }
 0x5f6   :  { %6174 = vmatpush1.bf16.msra.mxu0 %v9087_v19  ;;  %v9116_v19 = vld [vmem:[#allocation61_spill] sm:$0xff] }
 0x5f7   :  { %6224 = vmatprep.subr.bf16.mxu0 %v9088_v54  ;;  %6222 = vmatpush1.bf16.msra.mxu1 %v9089_v61  ;;  %v333_v15 = vrot.slane %v8045_v12, %v9116_v19 }
 0x5f8   :  { %6272 = vmatprep.subr.bf16.mxu1 %v9090_v3  ;;  %v9100_v3 = vld [vmem:[#allocation22_spill] sm:$0xff] }
 0x5f9   :  { %3308 = vmatmul.mubr.f32.vlgmr.msra.gmra.mrb[10].mxu0 %v3096_v21  ;;  %v9101_v21 = vld [vmem:[#allocation23_spill] sm:$0xff] }
 0x5fa   :  { %6226 = vmatpush1.bf16.msra.mxu0 %v9091_v11  ;;  %v9102_v11 = vld [vmem:[#allocation24_spill] sm:$0xff] }
 0x5fb   :  { %6228 = vmatprep.subr.bf16.mxu0 %v9092_v5  ;;  %v9103_v5 = vld [vmem:[#allocation25_spill] sm:$0xff] }
 0x5fe   :  { %6230 = vmatpush1.bf16.msra.mxu0 %v9093_v7  ;;  %v9104_v7 = vld [vmem:[#allocation26_spill] sm:$0xff] }
 0x5ff   :  { %6232 = vmatprep.subr.bf16.mxu0 %v9094_v24  ;;  %v9105_v24 = vld [vmem:[#allocation27_spill] sm:$0xff] }
 0x602   :  { %6234 = vmatpush1.bf16.msra.mxu0 %v9095_v47  ;;  %v9106_v47 = vld [vmem:[#allocation28_spill] sm:$0xff] }
 0x603   :  { %6236 = vmatprep.subr.bf16.mxu0 %v9096_v28  ;;  %v9107_v28 = vld [vmem:[#allocation29_spill] sm:$0xff] }
 0x606   :  { %6238 = vmatpush1.bf16.msra.mxu0 %v9097_v29  ;;  %v9108_v29 = vld [vmem:[#allocation31_spill] sm:$0xff] }
 0x607   :  { %6240 = vmatprep.subr.bf16.mxu0 %v9098_v38  ;;  %v9109_v38 = vld [vmem:[#allocation33_spill] sm:$0xff] }
 0x60a   :  { %6242 = vmatpush1.bf16.msra.mxu0 %v9099_v37  ;;  %v9110_v37 = vld [vmem:[#allocation35_spill] sm:$0xff] }
 0x60b   :  { %6244 = vmatprep.subr.bf16.mxu0 %v9100_v3  ;;  %v9111_v3 = vld [vmem:[#allocation37_spill] sm:$0xff] }
 0x60e   :  { %6246 = vmatpush1.bf16.msra.mxu0 %v9101_v21  ;;  %v9112_v21 = vld [vmem:[#allocation39_spill] sm:$0xff] }
 0x60f   :  { %6248 = vmatprep.subr.bf16.mxu0 %v9102_v11  ;;  %v9113_v11 = vld [vmem:[#allocation41_spill] sm:$0xff] }
 0x612   :  { %6250 = vmatpush1.bf16.msra.mxu0 %v9103_v5  ;;  %v9114_v5 = vld [vmem:[#allocation19_spill] sm:$0xff] }
 0x613   :  { %6252 = vmatprep.subr.bf16.mxu0 %v9104_v7 }
 0x616   :  { %6254 = vmatpush1.bf16.msra.mxu0 %v9105_v24 }
 0x617   :  { %6256 = vmatprep.subr.bf16.mxu0 %v9106_v47 }
 0x61a   :  { %6258 = vmatpush1.bf16.msra.mxu0 %v9107_v28 }
 0x61b   :  { %6260 = vmatprep.subr.bf16.mxu0 %v9108_v29  ;;  %v8160_v29 = vld [vmem:[%s8856_s2 + $0x10] sm:$0xff] }
 0x61c   :  { %9115 = vst [vmem:[#allocation34_spill] sm:$0xff] %v8160_v29 }
 0x61e   :  { %6262 = vmatpush1.bf16.msra.mxu0 %v9109_v38 }
 0x61f   :  { %6264 = vmatprep.subr.bf16.mxu0 %v9110_v37  ;;  %v345_v37 = vrot.slane %v8160_v29, %v9079_v50  ;;  %v329_v50 = vrot.slane %v8045_v12, %v9117_v51 }
 0x622   :  { %6266 = vmatpush1.bf16.msra.mxu0 %v9111_v3  ;;  %v349_v3 = vrot.slane %v8160_v29, %v7949_v9 }
 0x623   :  { %6268 = vmatprep.subr.bf16.mxu0 %v9112_v21 }
 0x626   :  { %6270 = vmatpush1.bf16.msra.mxu0 %v9113_v11 }
 0x627   :  { %6320 = vmatprep.subr.bf16.mxu0 %v9114_v5 }
 0x69c   :  { %v3167_v7 = vpop.f32.mrb[8].mxu0  ;;  %v3238_v24 = vpop.f32.mrb[4].mxu1 }
 0x69d   :  { %v3169_v61 = vpop.f32.mrb[9].mxu0  ;;  %v3240_v47 = vpop.f32.mrb[5].mxu1  ;;  %v6963_v9 = vadd.f32 %v3167_v7, %v329_v50 }
 0x69e   :  { %v6964_v55 = vadd.f32 %v3169_v61, %v333_v15 }
 0x6a0   :  { %v5393_v29 = vmul.f32 -1.442695, %v6964_v55 }
 0x6cc   :  { %v3309_v21 = vpop.f32.mrb[10].mxu0 }
 0x6cd   :  { %v6967_v38 = vadd.f32 %v3309_v21, %v345_v37  ;;  %v3311_v11 = vpop.f32.mrb[11].mxu0  ;;  %v5392_v37 = vmul.f32 -1.442695, %v6963_v9  ;;  %v337_v9 = vrot.slane %v8045_v12, %v8057_v17 }
 0x6ce   :  { %v6968_v28 = vadd.f32 %v3311_v11, %v349_v3 }
 0x6cf   :  { %7114 = vtanh.f32 %v6967_v38  ;;  %v6965_v50 = vadd.f32 %v3238_v24, %v337_v9 }
 0x6d0   :  { %7116 = vtanh.f32 %v6968_v28 }
 0x6d1   :  { %7118 = vpow2.f32 %v5393_v29  ;;  %v5394_v55 = vmul.f32 -1.442695, %v6965_v50 }
 0x6d2   :  { %7120 = vpow2.f32 %v5392_v37 }
 0x6d9   :  { %v7115_v5 = vpop.eup %7114 }
 0x6da   :  { %v7117_v54 = vpop.eup %7116  ;;  %3356 = vrot.lane.b32.xlu0 %v7115_v5, %s7363_s21 }
 0x6db   :  { %3358 = vrot.lane.b32.xlu1 %v7117_v54, %s7363_s21  ;;  %v7119_v3 = vpop.eup %7118 }
 0x6dc   :  { %v7121_v11 = vpop.eup %7120  ;;  %v3336_v28 = vadd.f32 1.0, %v7119_v3 }
 0x6dd   :  { %v3335_v21 = vadd.f32 1.0, %v7121_v11 }
 0x6de   :  { %7122 = vrcp.f32 %v3336_v28  ;;  %v5396_v28 = vmul.f32 -1.442695, %v6967_v38  ;;  %v9121_v38 = vld [vmem:[#allocation54_spill] sm:$0xff] }
 0x6df   :  { %7124 = vrcp.f32 %v3335_v21 }
 0x6e0   :  { %7126 = vpow2.f32 %v5394_v55 }
 0x6e8   :  { %v7123_v54 = vpop.eup %7122 }
 0x6e9   :  { %v7125_v30 = vpop.eup %7124  ;;  %v3352_v37 = vmul.f32 %v7123_v54, %v8071_v57  ;;  %v9118_v57 = vld [vmem:[#allocation30_spill] sm:$0xff] }
 0x6ea   :  { %v7127_v15 = vpop.eup %7126 }
 0x6eb   :  { %v3337_v61 = vadd.f32 1.0, %v7127_v15 }
 0x6ed   :  { %7128 = vrcp.f32 %v3337_v61 }
 0x6f7   :  { %v7129_v7 = vpop.eup %7128 }
 0x74c   :  { %v3357_v5 = vpop.permute.xlu0 %3356 }
 0x74d   :  { %v3359_v60 = vpop.permute.xlu1 %3358 }
 0x74e   :  { %v3360_v19 = vsel %vm2515_vm4, %v3357_v5, %v3359_v60  ;;  %v3364_v59 = vmul.f32 %v7123_v54, %v3359_v60  ;;  %v3353_v60 = vmul.f32 %v7129_v7, %v8073_v31  ;;  %v341_v31 = vrot.slane %v8045_v12, %v9118_v57  ;;  %v9119_v12 = vld [vmem:[#allocation45_spill] sm:$0xff] }
 0x74f   :  { %v3363_v51 = vmul.f32 %v7125_v30, %v3360_v19 }
 0x750   :  { %3369 = vrot.lane.b32.xlu1 %v3364_v59, %s7363_s21  ;;  %v6966_v11 = vadd.f32 %v3240_v47, %v341_v31  ;;  %v9120_v47 = vld [vmem:[#allocation46_spill] sm:$0xff]  ;;  %v9126_v31 = vld [vmem:[#allocation11_spill] sm:$0xff] }
 0x751   :  { %3367 = vrot.lane.b32.xlu0 %v3363_v51, %s7363_s21 }
 0x752   :  { %v5395_v21 = vmul.f32 -1.442695, %v6966_v11  ;;  %v9127_v11 = vld [vmem:[#allocation49_spill] sm:$0xff] }
 0x7c2   :  { %v3370_v29 = vpop.permute.xlu1 %3369 }
 0x7c3   :  { %v3368_v30 = vpop.permute.xlu0 %3367 }
 0x7c4   :  { %v3371_v59 = vsel %vm2515_vm4, %v3368_v30, %v3370_v29  ;;  %v8180_v19 = vadd.f32 %v3368_v30, %v3352_v37  ;;  %v9122_v30 = vld [vmem:[#allocation55_spill] sm:$0xff] }
 0x7c5   :  { %v8182_v51 = vadd.f32 %v3371_v59, %v3353_v60  ;;  %v9123_v59 = vld [vmem:[#allocation47_spill] sm:$0xff] }
 0x7c6   :  { %7130 = vtanh.f32 %v8180_v19 }
 0x7c7   :  { %7132 = vtanh.f32 %v8182_v51 }
 0x7c8   :  { %7134 = vpow2.f32 %v5396_v28  ;;  %v9128_v28 = vld [vmem:[#allocation50_spill] sm:$0xff] }
 0x7c9   :  { %7136 = vpow2.f32 %v5395_v21  ;;  %v9129_v21 = vld [vmem:[#allocation12_spill] sm:$0xff] }
 0x7d0   :  { %v7131_v24 = vpop.eup %7130 }
 0x7d1   :  { %v7133_v3 = vpop.eup %7132  ;;  %3380 = vrot.lane.b32.xlu0 %v7131_v24, %s7363_s21  ;;  %v9124_v24 = vld [vmem:[#allocation48_spill] sm:$0xff] }
 0x7d2   :  { %3382 = vrot.lane.b32.xlu1 %v7133_v3, %s7363_s21  ;;  %v7135_v5 = vpop.eup %7134  ;;  %v9125_v3 = vld [vmem:[#allocation56_spill] sm:$0xff] }
 0x7d3   :  { %v7137_v54 = vpop.eup %7136  ;;  %v3339_v9 = vadd.f32 1.0, %v7135_v5  ;;  %v9130_v5 = vld [vmem:[#allocation13_spill] sm:$0xff] }
 0x7d4   :  { %v3338_v50 = vadd.f32 1.0, %v7137_v54  ;;  %v9131_v54 = vld [vmem:[#allocation14_spill] sm:$0xff] }
 0x7d5   :  { %7138 = vrcp.f32 %v3339_v9  ;;  %v9132_v9 = vld [vmem:[#allocation15_spill] sm:$0xff] }
 0x7d6   :  { %7140 = vrcp.f32 %v3338_v50  ;;  %v9133_v50 = vld [vmem:[#allocation16_spill] sm:$0xff] }
 0x7df   :  { %v7139_v15 = vpop.eup %7138 }
 0x7e0   :  { %v7141_v7 = vpop.eup %7140 }
 0x843   :  { %v3381_v55 = vpop.permute.xlu0 %3380 }
 0x844   :  { %v3383_v61 = vpop.permute.xlu1 %3382 }
 0x845   :  { %v3384_v29 = vsel %vm2515_vm4, %v3381_v55, %v3383_v61  ;;  %v3388_v37 = vmul.f32 %v7139_v15, %v3383_v61  ;;  %v9134_v55 = vld [vmem:[#allocation17_spill] sm:$0xff]  ;;  %v9135_v15 = vld [vmem:[#allocation18_spill] sm:$0xff]  ;;  %v9136_v61 = vld [vmem:[#allocation20_spill] sm:$0xff] }
 0x846   :  { %v3387_v60 = vmul.f32 %v7141_v7, %v3384_v29  ;;  %v9137_v7 = vld [vmem:[#allocation21_spill] sm:$0xff]  ;;  %v9138_v29 = vld [vmem:[#allocation22_spill] sm:$0xff] }
 0x847   :  { %5397 = vmatprep.mubr.msk.f32.mxu1 %vm2515_vm4, %v3388_v37  ;;  %5398 = vmatprep.mubr.msk.f32.mxu0 %vm2515_vm4, %v3388_v37 }
 0x848   :  { %3457 = vmatmul.mubr.f32.vlgmr.msra.gmra.mrb[6].mxu1 %v3387_v60  ;;  %3528 = vmatmul.mubr.f32.vlgmr.msra.gmra.mrb[12].mxu0 %v3387_v60 }
 0x849   :  { %6274 = vmatpush1.bf16.msra.mxu1 %v7796_v42  ;;  %5399 = vmatprep.mubr.msk.f32.mxu1 %vm2515_vm4, %v3388_v37  ;;  %v9139_v37 = vld [vmem:[#allocation23_spill] sm:$0xff] }
 0x84a   :  { %6276 = vmatprep.subr.bf16.mxu1 %v7799_v44  ;;  %6322 = vmatpush1.bf16.msra.mxu0 %v7666_v23 }
 0x84b   :  { %6324 = vmatprep.subr.bf16.mxu0 %v7672_v25 }
 0x84d   :  { %6278 = vmatpush1.bf16.msra.mxu1 %v7805_v6 }
 0x84e   :  { %6280 = vmatprep.subr.bf16.mxu1 %v7809_v8  ;;  %6326 = vmatpush1.bf16.msra.mxu0 %v7680_v36 }
 0x84f   :  { %6328 = vmatprep.subr.bf16.mxu0 %v7687_v39 }
 0x851   :  { %6282 = vmatpush1.bf16.msra.mxu1 %v7814_v33 }
 0x852   :  { %6284 = vmatprep.subr.bf16.mxu1 %v7817_v34  ;;  %6330 = vmatpush1.bf16.msra.mxu0 %v7693_v49 }
 0x853   :  { %6332 = vmatprep.subr.bf16.mxu0 %v7699_v52 }
 0x855   :  { %6286 = vmatpush1.bf16.msra.mxu1 %v7822_v0 }
 0x856   :  { %6288 = vmatprep.subr.bf16.mxu1 %v7825_v10  ;;  %6334 = vmatpush1.bf16.msra.mxu0 %v7705_v2 }
 0x857   :  { %6336 = vmatprep.subr.bf16.mxu0 %v7711_v4 }
 0x859   :  { %6290 = vmatpush1.bf16.msra.mxu1 %v7830_v35 }
 0x85a   :  { %6292 = vmatprep.subr.bf16.mxu1 %v7833_v48  ;;  %6338 = vmatpush1.bf16.msra.mxu0 %v7717_v18 }
 0x85b   :  { %6340 = vmatprep.subr.bf16.mxu0 %v9046_v46 }
 0x85d   :  { %6294 = vmatpush1.bf16.msra.mxu1 %v7838_v58 }
 0x85e   :  { %6296 = vmatprep.subr.bf16.mxu1 %v7841_v20  ;;  %6342 = vmatpush1.bf16.msra.mxu0 %v9047_v63 }
 0x85f   :  { %6344 = vmatprep.subr.bf16.mxu0 %v9048_v22 }
 0x861   :  { %6298 = vmatpush1.bf16.msra.mxu1 %v7846_v14 }
 0x862   :  { %6300 = vmatprep.subr.bf16.mxu1 %v7849_v41  ;;  %6346 = vmatpush1.bf16.msra.mxu0 %v9049_v40 }
 0x863   :  { %6348 = vmatprep.subr.bf16.mxu0 %v9050_v56 }
 0x865   :  { %6302 = vmatpush1.bf16.msra.mxu1 %v7854_v32 }
 0x866   :  { %6304 = vmatprep.subr.bf16.mxu1 %v9051_v27  ;;  %6350 = vmatpush1.bf16.msra.mxu0 %v9052_v45 }
 0x867   :  { %6352 = vmatprep.subr.bf16.mxu0 %v9053_v53 }
 0x869   :  { %6306 = vmatpush1.bf16.msra.mxu1 %v9054_v13 }
 0x86a   :  { %6308 = vmatprep.subr.bf16.mxu1 %v7865_v16  ;;  %6354 = vmatpush1.bf16.msra.mxu0 %v9055_v26 }
 0x86b   :  { %6356 = vmatprep.subr.bf16.mxu0 %v9080_v43 }
 0x86d   :  { %6310 = vmatpush1.bf16.msra.mxu1 %v9081_v62 }
 0x86e   :  { %6312 = vmatprep.subr.bf16.mxu1 %v7873_v1  ;;  %6358 = vmatpush1.bf16.msra.mxu0 %v9119_v12 }
 0x86f   :  { %6360 = vmatprep.subr.bf16.mxu0 %v9120_v47 }
 0x871   :  { %6314 = vmatpush1.bf16.msra.mxu1 %v9121_v38 }
 0x872   :  { %6316 = vmatprep.subr.bf16.mxu1 %v9122_v30  ;;  %6362 = vmatpush1.bf16.msra.mxu0 %v9123_v59 }
 0x873   :  { %6364 = vmatprep.subr.bf16.mxu0 %v9124_v24 }
 0x875   :  { %6318 = vmatpush1.bf16.msra.mxu1 %v9125_v3  ;;  %v9155_v3 = vld [vmem:[#allocation58_spill] sm:$0xff] }
 0x876   :  { %6368 = vmatprep.subr.bf16.mxu1 %v9126_v31  ;;  %6366 = vmatpush1.bf16.msra.mxu0 %v9127_v11 }
 0x877   :  { %6416 = vmatprep.subr.bf16.mxu0 %v9128_v28 }
 0x878   :  { %3599 = vmatmul.mubr.f32.vlgmr.msra.gmra.mrb[8].mxu1 %v3387_v60  ;;  %v9140_v60 = vld [vmem:[#allocation24_spill] sm:$0xff] }
 0x879   :  { %6370 = vmatpush1.bf16.msra.mxu1 %v9129_v21 }
 0x87a   :  { %6372 = vmatprep.subr.bf16.mxu1 %v9130_v5  ;;  %v9141_v5 = vld [vmem:[#allocation25_spill] sm:$0xff] }
 0x87d   :  { %6374 = vmatpush1.bf16.msra.mxu1 %v9131_v54  ;;  %v9142_v54 = vld [vmem:[#allocation26_spill] sm:$0xff] }
 0x87e   :  { %6376 = vmatprep.subr.bf16.mxu1 %v9132_v9  ;;  %v9143_v9 = vld [vmem:[#allocation27_spill] sm:$0xff] }
 0x881   :  { %6378 = vmatpush1.bf16.msra.mxu1 %v9133_v50  ;;  %v9144_v50 = vld [vmem:[#allocation28_spill] sm:$0xff] }
 0x882   :  { %6380 = vmatprep.subr.bf16.mxu1 %v9134_v55  ;;  %v9145_v55 = vld [vmem:[#allocation29_spill] sm:$0xff] }
 0x885   :  { %6382 = vmatpush1.bf16.msra.mxu1 %v9135_v15  ;;  %v9146_v15 = vld [vmem:[#allocation31_spill] sm:$0xff] }
 0x886   :  { %6384 = vmatprep.subr.bf16.mxu1 %v9136_v61  ;;  %v9147_v61 = vld [vmem:[#allocation33_spill] sm:$0xff] }
 0x889   :  { %6386 = vmatpush1.bf16.msra.mxu1 %v9137_v7  ;;  %v9148_v7 = vld [vmem:[#allocation35_spill] sm:$0xff] }
 0x88a   :  { %6388 = vmatprep.subr.bf16.mxu1 %v9138_v29  ;;  %v9149_v29 = vld [vmem:[#allocation37_spill] sm:$0xff] }
 0x88d   :  { %6390 = vmatpush1.bf16.msra.mxu1 %v9139_v37  ;;  %v9150_v37 = vld [vmem:[#allocation39_spill] sm:$0xff] }
 0x88e   :  { %6392 = vmatprep.subr.bf16.mxu1 %v9140_v60  ;;  %v9151_v60 = vld [vmem:[#allocation41_spill] sm:$0xff] }
 0x891   :  { %6394 = vmatpush1.bf16.msra.mxu1 %v9141_v5  ;;  %v9152_v5 = vld [vmem:[#allocation19_spill] sm:$0xff] }
 0x892   :  { %6396 = vmatprep.subr.bf16.mxu1 %v9142_v54 }
 0x895   :  { %6398 = vmatpush1.bf16.msra.mxu1 %v9143_v9 }
 0x896   :  { %6400 = vmatprep.subr.bf16.mxu1 %v9144_v50 }
 0x899   :  { %6402 = vmatpush1.bf16.msra.mxu1 %v9145_v55  ;;  %v9153_v55 = vld [vmem:[#allocation34_spill] sm:$0xff] }
 0x89a   :  { %6404 = vmatprep.subr.bf16.mxu1 %v9146_v15  ;;  %v369_v28 = vrot.slane %v9153_v55, %v8057_v17  ;;  %v353_v17 = vrot.slane %v9153_v55, %v9155_v3 }
 0x89d   :  { %6406 = vmatpush1.bf16.msra.mxu1 %v9147_v61  ;;  %v373_v61 = vrot.slane %v9153_v55, %v9118_v57 }
 0x89e   :  { %6408 = vmatprep.subr.bf16.mxu1 %v9148_v7 }
 0x8a1   :  { %6410 = vmatpush1.bf16.msra.mxu1 %v9149_v29 }
 0x8a2   :  { %6412 = vmatprep.subr.bf16.mxu1 %v9150_v37 }
 0x8a5   :  { %6414 = vmatpush1.bf16.msra.mxu1 %v9151_v60 }
 0x8a6   :  { %6464 = vmatprep.subr.bf16.mxu1 %v9152_v5  ;;  %v9154_v5 = vld [vmem:[#allocation59_spill] sm:$0xff] }
 0x8a7   :  { %v357_v31 = vrot.slane %v9153_v55, %v9154_v5 }
 0x91b   :  { %v3458_v54 = vpop.f32.mrb[6].mxu1  ;;  %v3529_v9 = vpop.f32.mrb[12].mxu0 }
 0x91c   :  { %v3460_v21 = vpop.f32.mrb[7].mxu1  ;;  %v3531_v50 = vpop.f32.mrb[13].mxu0  ;;  %v6969_v57 = vadd.f32 %v3458_v54, %v353_v17  ;;  %v9156_v17 = vld [vmem:[#allocation60_spill] sm:$0xff] }
 0x91d   :  { %v6970_v24 = vadd.f32 %v3460_v21, %v357_v31 }
 0x91f   :  { %v5401_v59 = vmul.f32 -1.442695, %v6970_v24 }
 0x94b   :  { %v3600_v15 = vpop.f32.mrb[8].mxu1 }
 0x94c   :  { %v6973_v7 = vadd.f32 %v3600_v15, %v369_v28  ;;  %v3602_v11 = vpop.f32.mrb[9].mxu1  ;;  %v5400_v28 = vmul.f32 -1.442695, %v6969_v57  ;;  %v361_v57 = vrot.slane %v9153_v55, %v9156_v17 }
 0x94d   :  { %v6974_v29 = vadd.f32 %v3602_v11, %v373_v61 }
 0x94e   :  { %7142 = vtanh.f32 %v6973_v7 }
 0x94f   :  { %7144 = vtanh.f32 %v6974_v29 }
 0x950   :  { %7146 = vpow2.f32 %v5401_v59  ;;  %v6971_v59 = vadd.f32 %v3529_v9, %v361_v57 }
 0x951   :  { %7148 = vpow2.f32 %v5400_v28 }
 0x952   :  { %v5402_v24 = vmul.f32 -1.442695, %v6971_v59 }
 0x958   :  { %v7143_v37 = vpop.eup %7142 }
 0x959   :  { %v7145_v60 = vpop.eup %7144  ;;  %3647 = vrot.lane.b32.xlu0 %v7143_v37, %s7363_s21 }
 0x95a   :  { %3649 = vrot.lane.b32.xlu1 %v7145_v60, %s7363_s21  ;;  %v7147_v11 = vpop.eup %7146 }
 0x95b   :  { %v7149_v15 = vpop.eup %7148  ;;  %v3627_v61 = vadd.f32 1.0, %v7147_v11 }
 0x95c   :  { %v3626_v29 = vadd.f32 1.0, %v7149_v15 }
 0x95d   :  { %7150 = vrcp.f32 %v3627_v61 }
 0x95e   :  { %7152 = vrcp.f32 %v3626_v29  ;;  %v5404_v29 = vmul.f32 -1.442695, %v6973_v7  ;;  %v9160_v7 = vld [vmem:[#allocation55_spill] sm:$0xff] }
 0x95f   :  { %7154 = vpow2.f32 %v5402_v24 }
 0x967   :  { %v7151_v60 = vpop.eup %7150 }
 0x968   :  { %v7153_v38 = vpop.eup %7152  ;;  %v3643_v11 = vmul.f32 %v7151_v60, %v8180_v19  ;;  %v9157_v19 = vld [vmem:[#allocation61_spill] sm:$0xff] }
 0x969   :  { %v7155_v31 = vpop.eup %7154 }
 0x96a   :  { %v3628_v21 = vadd.f32 1.0, %v7155_v31 }
 0x96c   :  { %7156 = vrcp.f32 %v3628_v21 }
 0x976   :  { %v7157_v54 = vpop.eup %7156 }
 0x9cb   :  { %v3648_v37 = vpop.permute.xlu0 %3647 }
 0x9cc   :  { %v3650_v30 = vpop.permute.xlu1 %3649 }
 0x9cd   :  { %v3651_v5 = vsel %vm2515_vm4, %v3648_v37, %v3650_v30  ;;  %v3655_v47 = vmul.f32 %v7151_v60, %v3650_v30  ;;  %v3644_v30 = vmul.f32 %v7157_v54, %v8182_v51  ;;  %v365_v51 = vrot.slane %v9153_v55, %v9157_v19  ;;  %v9159_v55 = vld [vmem:[#allocation54_spill] sm:$0xff] }
 0x9ce   :  { %v3654_v3 = vmul.f32 %v7153_v38, %v3651_v5 }
 0x9cf   :  { %3660 = vrot.lane.b32.xlu1 %v3655_v47, %s7363_s21  ;;  %v6972_v61 = vadd.f32 %v3531_v50, %v365_v51  ;;  %v9158_v50 = vld [vmem:[#allocation46_spill] sm:$0xff]  ;;  %v9164_v51 = vld [vmem:[#allocation11_spill] sm:$0xff] }
 0x9d0   :  { %3658 = vrot.lane.b32.xlu0 %v3654_v3, %s7363_s21 }
 0x9d1   :  { %v5403_v37 = vmul.f32 -1.442695, %v6972_v61  ;;  %v9165_v61 = vld [vmem:[#allocation49_spill] sm:$0xff] }
 0xa41   :  { %v3661_v28 = vpop.permute.xlu1 %3660 }
 0xa42   :  { %v3659_v38 = vpop.permute.xlu0 %3658 }
 0xa43   :  { %v3662_v47 = vsel %vm2515_vm4, %v3659_v38, %v3661_v28  ;;  %v8284_v5 = vadd.f32 %v3659_v38, %v3643_v11 }
 0xa44   :  { %v8286_v3 = vadd.f32 %v3662_v47, %v3644_v30  ;;  %v9161_v47 = vld [vmem:[#allocation47_spill] sm:$0xff] }
 0xa45   :  { %7158 = vtanh.f32 %v8284_v5 }
 0xa46   :  { %7160 = vtanh.f32 %v8286_v3 }
 0xa47   :  { %7162 = vpow2.f32 %v5404_v29  ;;  %v9166_v29 = vld [vmem:[#allocation50_spill] sm:$0xff] }
 0xa48   :  { %7164 = vpow2.f32 %v5403_v37  ;;  %v9167_v37 = vld [vmem:[#allocation12_spill] sm:$0xff] }
 0xa4f   :  { %v7159_v9 = vpop.eup %7158 }
 0xa50   :  { %v7161_v15 = vpop.eup %7160  ;;  %3671 = vrot.lane.b32.xlu0 %v7159_v9, %s7363_s21  ;;  %v9162_v9 = vld [vmem:[#allocation48_spill] sm:$0xff] }
 0xa51   :  { %3673 = vrot.lane.b32.xlu1 %v7161_v15, %s7363_s21  ;;  %v7163_v60 = vpop.eup %7162  ;;  %v9163_v15 = vld [vmem:[#allocation56_spill] sm:$0xff] }
 0xa52   :  { %v7165_v57 = vpop.eup %7164  ;;  %v3630_v59 = vadd.f32 1.0, %v7163_v60  ;;  %v9168_v60 = vld [vmem:[#allocation13_spill] sm:$0xff] }
 0xa53   :  { %v3629_v24 = vadd.f32 1.0, %v7165_v57  ;;  %v9169_v57 = vld [vmem:[#allocation14_spill] sm:$0xff] }
 0xa54   :  { %7166 = vrcp.f32 %v3630_v59  ;;  %v9170_v59 = vld [vmem:[#allocation15_spill] sm:$0xff] }
 0xa55   :  { %7168 = vrcp.f32 %v3629_v24  ;;  %v9171_v24 = vld [vmem:[#allocation16_spill] sm:$0xff] }
 0xa5e   :  { %v7167_v21 = vpop.eup %7166 }
 0xa5f   :  { %v7169_v28 = vpop.eup %7168 }
 0xac2   :  { %v3672_v31 = vpop.permute.xlu0 %3671 }
 0xac3   :  { %v3674_v54 = vpop.permute.xlu1 %3673 }
 0xac4   :  { %v3675_v11 = vsel %vm2515_vm4, %v3672_v31, %v3674_v54  ;;  %v3679_v30 = vmul.f32 %v7167_v21, %v3674_v54  ;;  %v9172_v31 = vld [vmem:[#allocation17_spill] sm:$0xff]  ;;  %v9173_v21 = vld [vmem:[#allocation18_spill] sm:$0xff]  ;;  %v9174_v54 = vld [vmem:[#allocation20_spill] sm:$0xff] }
 0xac5   :  { %v3678_v38 = vmul.f32 %v7169_v28, %v3675_v11  ;;  %v9175_v28 = vld [vmem:[#allocation21_spill] sm:$0xff]  ;;  %v9176_v11 = vld [vmem:[#allocation22_spill] sm:$0xff] }
 0xac6   :  { %5405 = vmatprep.mubr.msk.f32.mxu0 %vm2515_vm4, %v3679_v30  ;;  %5406 = vmatprep.mubr.msk.f32.mxu1 %vm2515_vm4, %v3679_v30 }
 0xac7   :  { %3748 = vmatmul.mubr.f32.vlgmr.msra.gmra.mrb[14].mxu0 %v3678_v38  ;;  %3819 = vmatmul.mubr.f32.vlgmr.msra.gmra.mrb[10].mxu1 %v3678_v38 }
 0xac8   :  { %6418 = vmatpush1.bf16.msra.mxu0 %v7796_v42  ;;  %5407 = vmatprep.mubr.msk.f32.mxu0 %vm2515_vm4, %v3679_v30  ;;  %v9177_v30 = vld [vmem:[#allocation23_spill] sm:$0xff] }
 0xac9   :  { %6420 = vmatprep.subr.bf16.mxu0 %v7799_v44  ;;  %6466 = vmatpush1.bf16.msra.mxu1 %v7666_v23 }
 0xaca   :  { %6468 = vmatprep.subr.bf16.mxu1 %v7672_v25 }
 0xacc   :  { %6422 = vmatpush1.bf16.msra.mxu0 %v7805_v6 }
 0xacd   :  { %6424 = vmatprep.subr.bf16.mxu0 %v7809_v8  ;;  %6470 = vmatpush1.bf16.msra.mxu1 %v7680_v36 }
 0xace   :  { %6472 = vmatprep.subr.bf16.mxu1 %v7687_v39 }
 0xad0   :  { %6426 = vmatpush1.bf16.msra.mxu0 %v7814_v33 }
 0xad1   :  { %6428 = vmatprep.subr.bf16.mxu0 %v7817_v34  ;;  %6474 = vmatpush1.bf16.msra.mxu1 %v7693_v49 }
 0xad2   :  { %6476 = vmatprep.subr.bf16.mxu1 %v7699_v52 }
 0xad4   :  { %6430 = vmatpush1.bf16.msra.mxu0 %v7822_v0 }
 0xad5   :  { %6432 = vmatprep.subr.bf16.mxu0 %v7825_v10  ;;  %6478 = vmatpush1.bf16.msra.mxu1 %v7705_v2 }
 0xad6   :  { %6480 = vmatprep.subr.bf16.mxu1 %v7711_v4 }
 0xad8   :  { %6434 = vmatpush1.bf16.msra.mxu0 %v7830_v35 }
 0xad9   :  { %6436 = vmatprep.subr.bf16.mxu0 %v7833_v48  ;;  %6482 = vmatpush1.bf16.msra.mxu1 %v7717_v18 }
 0xada   :  { %6484 = vmatprep.subr.bf16.mxu1 %v9046_v46 }
 0xadc   :  { %6438 = vmatpush1.bf16.msra.mxu0 %v7838_v58 }
 0xadd   :  { %6440 = vmatprep.subr.bf16.mxu0 %v7841_v20  ;;  %6486 = vmatpush1.bf16.msra.mxu1 %v9047_v63 }
 0xade   :  { %6488 = vmatprep.subr.bf16.mxu1 %v9048_v22 }
 0xae0   :  { %6442 = vmatpush1.bf16.msra.mxu0 %v7846_v14 }
 0xae1   :  { %6444 = vmatprep.subr.bf16.mxu0 %v7849_v41  ;;  %6490 = vmatpush1.bf16.msra.mxu1 %v9049_v40 }
 0xae2   :  { %6492 = vmatprep.subr.bf16.mxu1 %v9050_v56 }
 0xae4   :  { %6446 = vmatpush1.bf16.msra.mxu0 %v7854_v32 }
 0xae5   :  { %6448 = vmatprep.subr.bf16.mxu0 %v9051_v27  ;;  %6494 = vmatpush1.bf16.msra.mxu1 %v9052_v45 }
 0xae6   :  { %6496 = vmatprep.subr.bf16.mxu1 %v9053_v53 }
 0xae8   :  { %6450 = vmatpush1.bf16.msra.mxu0 %v9054_v13 }
 0xae9   :  { %6452 = vmatprep.subr.bf16.mxu0 %v7865_v16  ;;  %6498 = vmatpush1.bf16.msra.mxu1 %v9055_v26 }
 0xaea   :  { %6500 = vmatprep.subr.bf16.mxu1 %v9080_v43 }
 0xaec   :  { %6454 = vmatpush1.bf16.msra.mxu0 %v9081_v62 }
 0xaed   :  { %6456 = vmatprep.subr.bf16.mxu0 %v7873_v1  ;;  %6502 = vmatpush1.bf16.msra.mxu1 %v9119_v12 }
 0xaee   :  { %6504 = vmatprep.subr.bf16.mxu1 %v9158_v50 }
 0xaf0   :  { %6458 = vmatpush1.bf16.msra.mxu0 %v9159_v55 }
 0xaf1   :  { %6460 = vmatprep.subr.bf16.mxu0 %v9160_v7  ;;  %6506 = vmatpush1.bf16.msra.mxu1 %v9161_v47 }
 0xaf2   :  { %6508 = vmatprep.subr.bf16.mxu1 %v9162_v9 }
 0xaf4   :  { %6462 = vmatpush1.bf16.msra.mxu0 %v9163_v15  ;;  %v9192_v15 = vld [vmem:[#allocation62_spill] sm:$0xff] }
 0xaf5   :  { %6512 = vmatprep.subr.bf16.mxu0 %v9164_v51  ;;  %6510 = vmatpush1.bf16.msra.mxu1 %v9165_v61  ;;  %v9191_v61 = vld [vmem:[#allocation63_spill] sm:$0xff] }
 0xaf6   :  { %6560 = vmatprep.subr.bf16.mxu1 %v9166_v29 }
 0xaf7   :  { %3890 = vmatmul.mubr.f32.vlgmr.msra.gmra.mrb[16].mxu0 %v3678_v38  ;;  %v9178_v38 = vld [vmem:[#allocation24_spill] sm:$0xff] }
 0xaf8   :  { %6514 = vmatpush1.bf16.msra.mxu0 %v9167_v37 }
 0xaf9   :  { %6516 = vmatprep.subr.bf16.mxu0 %v9168_v60  ;;  %v9179_v60 = vld [vmem:[#allocation25_spill] sm:$0xff] }
 0xafc   :  { %6518 = vmatpush1.bf16.msra.mxu0 %v9169_v57  ;;  %v9180_v57 = vld [vmem:[#allocation26_spill] sm:$0xff] }
 0xafd   :  { %6520 = vmatprep.subr.bf16.mxu0 %v9170_v59  ;;  %v9181_v59 = vld [vmem:[#allocation27_spill] sm:$0xff] }
 0xb00   :  { %6522 = vmatpush1.bf16.msra.mxu0 %v9171_v24  ;;  %v9182_v24 = vld [vmem:[#allocation28_spill] sm:$0xff] }
 0xb01   :  { %6524 = vmatprep.subr.bf16.mxu0 %v9172_v31  ;;  %v9183_v31 = vld [vmem:[#allocation29_spill] sm:$0xff] }
 0xb04   :  { %6526 = vmatpush1.bf16.msra.mxu0 %v9173_v21  ;;  %v9184_v21 = vld [vmem:[#allocation31_spill] sm:$0xff] }
 0xb05   :  { %6528 = vmatprep.subr.bf16.mxu0 %v9174_v54  ;;  %v9185_v54 = vld [vmem:[#allocation33_spill] sm:$0xff] }
 0xb08   :  { %6530 = vmatpush1.bf16.msra.mxu0 %v9175_v28  ;;  %v9186_v28 = vld [vmem:[#allocation35_spill] sm:$0xff] }
 0xb09   :  { %6532 = vmatprep.subr.bf16.mxu0 %v9176_v11  ;;  %v9187_v11 = vld [vmem:[#allocation37_spill] sm:$0xff] }
 0xb0c   :  { %6534 = vmatpush1.bf16.msra.mxu0 %v9177_v30  ;;  %v9188_v30 = vld [vmem:[#allocation39_spill] sm:$0xff] }
 0xb0d   :  { %6536 = vmatprep.subr.bf16.mxu0 %v9178_v38  ;;  %v9189_v38 = vld [vmem:[#allocation41_spill] sm:$0xff] }
 0xb10   :  { %6538 = vmatpush1.bf16.msra.mxu0 %v9179_v60  ;;  %v9190_v60 = vld [vmem:[#allocation19_spill] sm:$0xff] }
 0xb11   :  { %6540 = vmatprep.subr.bf16.mxu0 %v9180_v57 }
 0xb14   :  { %6542 = vmatpush1.bf16.msra.mxu0 %v9181_v59 }
 0xb15   :  { %6544 = vmatprep.subr.bf16.mxu0 %v9182_v24 }
 0xb18   :  { %6546 = vmatpush1.bf16.msra.mxu0 %v9183_v31 }
 0xb19   :  { %6548 = vmatprep.subr.bf16.mxu0 %v9184_v21  ;;  %v8373_v21 = vld [vmem:[%s8856_s2 + $0x18] sm:$0xff] }
 0xb1a   :  { %v381_v51 = vrot.slane %v8373_v21, %v9191_v61 }
 0xb1c   :  { %6550 = vmatpush1.bf16.msra.mxu0 %v9185_v54 }
 0xb1d   :  { %6552 = vmatprep.subr.bf16.mxu0 %v9186_v28  ;;  %v393_v28 = vrot.slane %v8373_v21, %v9156_v17  ;;  %v377_v17 = vrot.slane %v8373_v21, %v9192_v15 }
 0xb20   :  { %6554 = vmatpush1.bf16.msra.mxu0 %v9187_v11  ;;  %v397_v11 = vrot.slane %v8373_v21, %v9157_v19 }
 0xb21   :  { %6556 = vmatprep.subr.bf16.mxu0 %v9188_v30 }
 0xb24   :  { %6558 = vmatpush1.bf16.msra.mxu0 %v9189_v38 }
 0xb25   :  { %6608 = vmatprep.subr.bf16.mxu0 %v9190_v60 }
 0xb9a   :  { %v3749_v57 = vpop.f32.mrb[14].mxu0  ;;  %v3820_v59 = vpop.f32.mrb[10].mxu1 }
 0xb9b   :  { %v3751_v37 = vpop.f32.mrb[15].mxu0  ;;  %v3822_v24 = vpop.f32.mrb[11].mxu1  ;;  %v6975_v19 = vadd.f32 %v3749_v57, %v377_v17  ;;  %v9193_v17 = vld [vmem:[#allocation58_spill] sm:$0xff] }
 0xb9c   :  { %v6976_v9 = vadd.f32 %v3751_v37, %v381_v51 }
 0xb9e   :  { %v5409_v47 = vmul.f32 -1.442695, %v6976_v9 }
 0xbca   :  { %v3891_v30 = vpop.f32.mrb[16].mxu0 }
 0xbcb   :  { %v6979_v54 = vadd.f32 %v3891_v30, %v393_v28  ;;  %v3893_v38 = vpop.f32.mrb[17].mxu0  ;;  %v5408_v28 = vmul.f32 -1.442695, %v6975_v19  ;;  %v385_v19 = vrot.slane %v8373_v21, %v9193_v17 }
 0xbcc   :  { %v6980_v31 = vadd.f32 %v3893_v38, %v397_v11 }
 0xbcd   :  { %7170 = vtanh.f32 %v6979_v54 }
 0xbce   :  { %7172 = vtanh.f32 %v6980_v31 }
 0xbcf   :  { %7174 = vpow2.f32 %v5409_v47  ;;  %v6977_v47 = vadd.f32 %v3820_v59, %v385_v19 }
 0xbd0   :  { %7176 = vpow2.f32 %v5408_v28 }
 0xbd1   :  { %v5410_v9 = vmul.f32 -1.442695, %v6977_v47 }
 0xbd7   :  { %v7171_v60 = vpop.eup %7170 }
 0xbd8   :  { %v7173_v29 = vpop.eup %7172  ;;  %3938 = vrot.lane.b32.xlu0 %v7171_v60, %s7363_s21 }
 0xbd9   :  { %3940 = vrot.lane.b32.xlu1 %v7173_v29, %s7363_s21  ;;  %v7175_v11 = vpop.eup %7174 }
 0xbda   :  { %v7177_v31 = vpop.eup %7176  ;;  %v3918_v30 = vadd.f32 1.0, %v7175_v11 }
 0xbdb   :  { %v3917_v38 = vadd.f32 1.0, %v7177_v31 }
 0xbdc   :  { %7178 = vrcp.f32 %v3918_v30 }
 0xbdd   :  { %7180 = vrcp.f32 %v3917_v38  ;;  %v5412_v38 = vmul.f32 -1.442695, %v6979_v54  ;;  %v9196_v54 = vld [vmem:[#allocation54_spill] sm:$0xff] }
 0xbde   :  { %7182 = vpow2.f32 %v5410_v9 }
 0xbe6   :  { %v7179_v29 = vpop.eup %7178 }
 0xbe7   :  { %v7181_v55 = vpop.eup %7180  ;;  %v3934_v11 = vmul.f32 %v7179_v29, %v8284_v5  ;;  %v9194_v5 = vld [vmem:[#allocation59_spill] sm:$0xff] }
 0xbe8   :  { %v7183_v51 = vpop.eup %7182 }
 0xbe9   :  { %v3919_v37 = vadd.f32 1.0, %v7183_v51 }
 0xbeb   :  { %7184 = vrcp.f32 %v3919_v37 }
 0xbf5   :  { %v7185_v57 = vpop.eup %7184 }
 0xc4a   :  { %v3939_v60 = vpop.permute.xlu0 %3938 }
 0xc4b   :  { %v3941_v7 = vpop.permute.xlu1 %3940 }
 0xc4c   :  { %v3942_v61 = vsel %vm2515_vm4, %v3939_v60, %v3941_v7  ;;  %v3946_v50 = vmul.f32 %v7179_v29, %v3941_v7  ;;  %v3935_v7 = vmul.f32 %v7185_v57, %v8286_v3  ;;  %v389_v3 = vrot.slane %v8373_v21, %v9194_v5 }
 0xc4d   :  { %v3945_v15 = vmul.f32 %v7181_v55, %v3942_v61 }
 0xc4e   :  { %3951 = vrot.lane.b32.xlu1 %v3946_v50, %s7363_s21  ;;  %v6978_v30 = vadd.f32 %v3822_v24, %v389_v3  ;;  %v9195_v24 = vld [vmem:[#allocation46_spill] sm:$0xff]  ;;  %v9200_v3 = vld [vmem:[#allocation56_spill] sm:$0xff] }
 0xc4f   :  { %3949 = vrot.lane.b32.xlu0 %v3945_v15, %s7363_s21 }
 0xc50   :  { %v5411_v60 = vmul.f32 -1.442695, %v6978_v30  ;;  %v9201_v30 = vld [vmem:[#allocation11_spill] sm:$0xff] }
 0xcc0   :  { %v3952_v28 = vpop.permute.xlu1 %3951 }
 0xcc1   :  { %v3950_v55 = vpop.permute.xlu0 %3949 }
 0xcc2   :  { %v3953_v50 = vsel %vm2515_vm4, %v3950_v55, %v3952_v28  ;;  %v8393_v61 = vadd.f32 %v3950_v55, %v3934_v11 }
 0xcc3   :  { %v8395_v15 = vadd.f32 %v3953_v50, %v3935_v7  ;;  %v9197_v50 = vld [vmem:[#allocation55_spill] sm:$0xff] }
 0xcc4   :  { %7186 = vtanh.f32 %v8393_v61 }
 0xcc5   :  { %7188 = vtanh.f32 %v8395_v15 }
 0xcc6   :  { %7190 = vpow2.f32 %v5412_v38  ;;  %v9202_v38 = vld [vmem:[#allocation49_spill] sm:$0xff] }
 0xcc7   :  { %7192 = vpow2.f32 %v5411_v60  ;;  %v9203_v60 = vld [vmem:[#allocation50_spill] sm:$0xff] }
 0xcce   :  { %v7187_v59 = vpop.eup %7186 }
 0xccf   :  { %v7189_v31 = vpop.eup %7188  ;;  %3962 = vrot.lane.b32.xlu0 %v7187_v59, %s7363_s21  ;;  %v9198_v59 = vld [vmem:[#allocation47_spill] sm:$0xff] }
 0xcd0   :  { %3964 = vrot.lane.b32.xlu1 %v7189_v31, %s7363_s21  ;;  %v7191_v29 = vpop.eup %7190  ;;  %v9199_v31 = vld [vmem:[#allocation48_spill] sm:$0xff] }
 0xcd1   :  { %v7193_v19 = vpop.eup %7192  ;;  %v3921_v47 = vadd.f32 1.0, %v7191_v29  ;;  %v9204_v29 = vld [vmem:[#allocation12_spill] sm:$0xff] }
 0xcd2   :  { %v3920_v9 = vadd.f32 1.0, %v7193_v19  ;;  %v9205_v19 = vld [vmem:[#allocation13_spill] sm:$0xff] }
 0xcd3   :  { %7194 = vrcp.f32 %v3921_v47  ;;  %v9206_v47 = vld [vmem:[#allocation14_spill] sm:$0xff] }
 0xcd4   :  { %7196 = vrcp.f32 %v3920_v9  ;;  %v9207_v9 = vld [vmem:[#allocation15_spill] sm:$0xff] }
 0xcdd   :  { %v7195_v37 = vpop.eup %7194 }
 0xcde   :  { %v7197_v28 = vpop.eup %7196 }
 0xd41   :  { %v3963_v51 = vpop.permute.xlu0 %3962 }
 0xd42   :  { %v3965_v57 = vpop.permute.xlu1 %3964 }
 0xd43   :  { %v3966_v11 = vsel %vm2515_vm4, %v3963_v51, %v3965_v57  ;;  %v3970_v7 = vmul.f32 %v7195_v37, %v3965_v57  ;;  %v9208_v51 = vld [vmem:[#allocation16_spill] sm:$0xff]  ;;  %v9209_v37 = vld [vmem:[#allocation17_spill] sm:$0xff]  ;;  %v9210_v57 = vld [vmem:[#allocation18_spill] sm:$0xff] }
 0xd44   :  { %v3969_v55 = vmul.f32 %v7197_v28, %v3966_v11  ;;  %v9211_v28 = vld [vmem:[#allocation20_spill] sm:$0xff]  ;;  %v9212_v11 = vld [vmem:[#allocation21_spill] sm:$0xff] }
 0xd45   :  { %5413 = vmatprep.mubr.msk.f32.mxu1 %vm2515_vm4, %v3970_v7  ;;  %5414 = vmatprep.mubr.msk.f32.mxu0 %vm2515_vm4, %v3970_v7 }
 0xd46   :  { %4039 = vmatmul.mubr.f32.vlgmr.msra.gmra.mrb[12].mxu1 %v3969_v55  ;;  %4110 = vmatmul.mubr.f32.vlgmr.msra.gmra.mrb[18].mxu0 %v3969_v55 }
 0xd47   :  { %6562 = vmatpush1.bf16.msra.mxu1 %v7796_v42  ;;  %5415 = vmatprep.mubr.msk.f32.mxu1 %vm2515_vm4, %v3970_v7  ;;  %v9213_v7 = vld [vmem:[#allocation22_spill] sm:$0xff] }
 0xd48   :  { %6564 = vmatprep.subr.bf16.mxu1 %v7799_v44  ;;  %6610 = vmatpush1.bf16.msra.mxu0 %v7666_v23 }
 0xd49   :  { %6612 = vmatprep.subr.bf16.mxu0 %v7672_v25 }
 0xd4b   :  { %6566 = vmatpush1.bf16.msra.mxu1 %v7805_v6 }
 0xd4c   :  { %6568 = vmatprep.subr.bf16.mxu1 %v7809_v8  ;;  %6614 = vmatpush1.bf16.msra.mxu0 %v7680_v36 }
 0xd4d   :  { %6616 = vmatprep.subr.bf16.mxu0 %v7687_v39 }
 0xd4f   :  { %6570 = vmatpush1.bf16.msra.mxu1 %v7814_v33 }
 0xd50   :  { %6572 = vmatprep.subr.bf16.mxu1 %v7817_v34  ;;  %6618 = vmatpush1.bf16.msra.mxu0 %v7693_v49 }
 0xd51   :  { %6620 = vmatprep.subr.bf16.mxu0 %v7699_v52 }
 0xd53   :  { %6574 = vmatpush1.bf16.msra.mxu1 %v7822_v0 }
 0xd54   :  { %6576 = vmatprep.subr.bf16.mxu1 %v7825_v10  ;;  %6622 = vmatpush1.bf16.msra.mxu0 %v7705_v2 }
 0xd55   :  { %6624 = vmatprep.subr.bf16.mxu0 %v7711_v4 }
 0xd57   :  { %6578 = vmatpush1.bf16.msra.mxu1 %v7830_v35 }
 0xd58   :  { %6580 = vmatprep.subr.bf16.mxu1 %v7833_v48  ;;  %6626 = vmatpush1.bf16.msra.mxu0 %v7717_v18 }
 0xd59   :  { %6628 = vmatprep.subr.bf16.mxu0 %v9046_v46 }
 0xd5b   :  { %6582 = vmatpush1.bf16.msra.mxu1 %v7838_v58 }
 0xd5c   :  { %6584 = vmatprep.subr.bf16.mxu1 %v7841_v20  ;;  %6630 = vmatpush1.bf16.msra.mxu0 %v9047_v63 }
 0xd5d   :  { %6632 = vmatprep.subr.bf16.mxu0 %v9048_v22 }
 0xd5f   :  { %6586 = vmatpush1.bf16.msra.mxu1 %v7846_v14 }
 0xd60   :  { %6588 = vmatprep.subr.bf16.mxu1 %v7849_v41  ;;  %6634 = vmatpush1.bf16.msra.mxu0 %v9049_v40 }
 0xd61   :  { %6636 = vmatprep.subr.bf16.mxu0 %v9050_v56 }
 0xd63   :  { %6590 = vmatpush1.bf16.msra.mxu1 %v7854_v32 }
 0xd64   :  { %6592 = vmatprep.subr.bf16.mxu1 %v9051_v27  ;;  %6638 = vmatpush1.bf16.msra.mxu0 %v9052_v45 }
 0xd65   :  { %6640 = vmatprep.subr.bf16.mxu0 %v9053_v53 }
 0xd67   :  { %6594 = vmatpush1.bf16.msra.mxu1 %v9054_v13 }
 0xd68   :  { %6596 = vmatprep.subr.bf16.mxu1 %v7865_v16  ;;  %6642 = vmatpush1.bf16.msra.mxu0 %v9055_v26 }
 0xd69   :  { %6644 = vmatprep.subr.bf16.mxu0 %v9080_v43 }
 0xd6b   :  { %6598 = vmatpush1.bf16.msra.mxu1 %v9081_v62 }
 0xd6c   :  { %6600 = vmatprep.subr.bf16.mxu1 %v7873_v1  ;;  %6646 = vmatpush1.bf16.msra.mxu0 %v9119_v12 }
 0xd6d   :  { %6648 = vmatprep.subr.bf16.mxu0 %v9195_v24 }
 0xd6f   :  { %6602 = vmatpush1.bf16.msra.mxu1 %v9196_v54 }
 0xd70   :  { %6604 = vmatprep.subr.bf16.mxu1 %v9197_v50  ;;  %6650 = vmatpush1.bf16.msra.mxu0 %v9198_v59 }
 0xd71   :  { %6652 = vmatprep.subr.bf16.mxu0 %v9199_v31  ;;  %v9229_v31 = vld [vmem:[#allocation32_spill] sm:$0xff] }
 0xd73   :  { %6606 = vmatpush1.bf16.msra.mxu1 %v9200_v3 }
 0xd74   :  { %6656 = vmatprep.subr.bf16.mxu1 %v9201_v30  ;;  %6654 = vmatpush1.bf16.msra.mxu0 %v9202_v38  ;;  %v9228_v30 = vld [vmem:[#allocation30_spill] sm:$0xff] }
 0xd75   :  { %6704 = vmatprep.subr.bf16.mxu0 %v9203_v60  ;;  %v405_v3 = vrot.slane %v8373_v21, %v9228_v30 }
 0xd76   :  { %4181 = vmatmul.mubr.f32.vlgmr.msra.gmra.mrb[14].mxu1 %v3969_v55  ;;  %v9214_v55 = vld [vmem:[#allocation23_spill] sm:$0xff] }
 0xd77   :  { %6658 = vmatpush1.bf16.msra.mxu1 %v9204_v29  ;;  %v9215_v29 = vld [vmem:[#allocation24_spill] sm:$0xff] }
 0xd78   :  { %6660 = vmatprep.subr.bf16.mxu1 %v9205_v19  ;;  %v9216_v19 = vld [vmem:[#allocation25_spill] sm:$0xff] }
 0xd7b   :  { %6662 = vmatpush1.bf16.msra.mxu1 %v9206_v47  ;;  %v9217_v47 = vld [vmem:[#allocation26_spill] sm:$0xff] }
 0xd7c   :  { %6664 = vmatprep.subr.bf16.mxu1 %v9207_v9  ;;  %v9218_v9 = vld [vmem:[#allocation27_spill] sm:$0xff] }
 0xd7f   :  { %6666 = vmatpush1.bf16.msra.mxu1 %v9208_v51  ;;  %v9219_v51 = vld [vmem:[#allocation28_spill] sm:$0xff] }
 0xd80   :  { %6668 = vmatprep.subr.bf16.mxu1 %v9209_v37  ;;  %v9220_v37 = vld [vmem:[#allocation29_spill] sm:$0xff] }
 0xd83   :  { %6670 = vmatpush1.bf16.msra.mxu1 %v9210_v57  ;;  %v9221_v57 = vld [vmem:[#allocation31_spill] sm:$0xff] }
 0xd84   :  { %6672 = vmatprep.subr.bf16.mxu1 %v9211_v28  ;;  %v9222_v28 = vld [vmem:[#allocation33_spill] sm:$0xff] }
 0xd87   :  { %6674 = vmatpush1.bf16.msra.mxu1 %v9212_v11  ;;  %v9223_v11 = vld [vmem:[#allocation35_spill] sm:$0xff] }
 0xd88   :  { %6676 = vmatprep.subr.bf16.mxu1 %v9213_v7  ;;  %v9224_v7 = vld [vmem:[#allocation37_spill] sm:$0xff] }
 0xd8b   :  { %6678 = vmatpush1.bf16.msra.mxu1 %v9214_v55  ;;  %v9225_v55 = vld [vmem:[#allocation39_spill] sm:$0xff] }
 0xd8c   :  { %6680 = vmatprep.subr.bf16.mxu1 %v9215_v29  ;;  %v9226_v29 = vld [vmem:[#allocation41_spill] sm:$0xff] }
 0xd8f   :  { %6682 = vmatpush1.bf16.msra.mxu1 %v9216_v19  ;;  %v9227_v19 = vld [vmem:[#allocation19_spill] sm:$0xff] }
 0xd90   :  { %6684 = vmatprep.subr.bf16.mxu1 %v9217_v47 }
 0xd93   :  { %6686 = vmatpush1.bf16.msra.mxu1 %v9218_v9 }
 0xd94   :  { %6688 = vmatprep.subr.bf16.mxu1 %v9219_v51 }
 0xd97   :  { %6690 = vmatpush1.bf16.msra.mxu1 %v9220_v37 }
 0xd98   :  { %6692 = vmatprep.subr.bf16.mxu1 %v9221_v57  ;;  %v8482_v57 = vld [vmem:[%s8856_s2 + $0x20] sm:$0xff] }
 0xd9b   :  { %6694 = vmatpush1.bf16.msra.mxu1 %v9222_v28 }
 0xd9c   :  { %6696 = vmatprep.subr.bf16.mxu1 %v9223_v11  ;;  %v417_v11 = vrot.slane %v8482_v57, %v9193_v17  ;;  %v401_v17 = vrot.slane %v8373_v21, %v9229_v31 }
 0xd9f   :  { %6698 = vmatpush1.bf16.msra.mxu1 %v9224_v7  ;;  %v421_v7 = vrot.slane %v8482_v57, %v9194_v5 }
 0xda0   :  { %6700 = vmatprep.subr.bf16.mxu1 %v9225_v55 }
 0xda3   :  { %6702 = vmatpush1.bf16.msra.mxu1 %v9226_v29 }
 0xda4   :  { %6752 = vmatprep.subr.bf16.mxu1 %v9227_v19 }
 0xe19   :  { %v4040_v47 = vpop.f32.mrb[12].mxu1  ;;  %v4111_v9 = vpop.f32.mrb[18].mxu0 }
 0xe1a   :  { %v4042_v60 = vpop.f32.mrb[13].mxu1  ;;  %v4113_v51 = vpop.f32.mrb[19].mxu0  ;;  %v6981_v5 = vadd.f32 %v4040_v47, %v401_v17  ;;  %v9230_v17 = vld [vmem:[#allocation62_spill] sm:$0xff] }
 0xe1b   :  { %v6982_v59 = vadd.f32 %v4042_v60, %v405_v3 }
 0xe1d   :  { %v5417_v50 = vmul.f32 -1.442695, %v6982_v59 }
 0xe49   :  { %v4182_v55 = vpop.f32.mrb[14].mxu1 }
 0xe4a   :  { %v6985_v28 = vadd.f32 %v4182_v55, %v417_v11  ;;  %v4184_v29 = vpop.f32.mrb[15].mxu1  ;;  %v5416_v11 = vmul.f32 -1.442695, %v6981_v5  ;;  %v409_v5 = vrot.slane %v8482_v57, %v9230_v17 }
 0xe4b   :  { %v6986_v37 = vadd.f32 %v4184_v29, %v421_v7 }
 0xe4c   :  { %7198 = vtanh.f32 %v6985_v28 }
 0xe4d   :  { %7200 = vtanh.f32 %v6986_v37 }
 0xe4e   :  { %7202 = vpow2.f32 %v5417_v50  ;;  %v6983_v50 = vadd.f32 %v4111_v9, %v409_v5 }
 0xe4f   :  { %7204 = vpow2.f32 %v5416_v11 }
 0xe50   :  { %v5418_v59 = vmul.f32 -1.442695, %v6983_v50 }
 0xe56   :  { %v7199_v19 = vpop.eup %7198 }
 0xe57   :  { %v7201_v38 = vpop.eup %7200  ;;  %4229 = vrot.lane.b32.xlu0 %v7199_v19, %s7363_s21 }
 0xe58   :  { %4231 = vrot.lane.b32.xlu1 %v7201_v38, %s7363_s21  ;;  %v7203_v29 = vpop.eup %7202 }
 0xe59   :  { %v7205_v37 = vpop.eup %7204  ;;  %v4209_v7 = vadd.f32 1.0, %v7203_v29 }
 0xe5a   :  { %v4208_v55 = vadd.f32 1.0, %v7205_v37 }
 0xe5b   :  { %7206 = vrcp.f32 %v4209_v7 }
 0xe5c   :  { %7208 = vrcp.f32 %v4208_v55 }
 0xe5d   :  { %7210 = vpow2.f32 %v5418_v59 }
 0xe65   :  { %v7207_v38 = vpop.eup %7206 }
 0xe66   :  { %v7209_v24 = vpop.eup %7208  ;;  %v4225_v29 = vmul.f32 %v7207_v38, %v8393_v61  ;;  %v9231_v61 = vld [vmem:[#allocation63_spill] sm:$0xff] }
 0xe67   :  { %v7211_v3 = vpop.eup %7210 }
 0xe68   :  { %v4210_v60 = vadd.f32 1.0, %v7211_v3 }
 0xe6a   :  { %7212 = vrcp.f32 %v4210_v60 }
 0xe74   :  { %v7213_v47 = vpop.eup %7212 }
 0xec9   :  { %v4230_v19 = vpop.permute.xlu0 %4229 }
 0xeca   :  { %v4232_v54 = vpop.permute.xlu1 %4231 }
 0xecb   :  { %v4233_v30 = vsel %vm2515_vm4, %v4230_v19, %v4232_v54  ;;  %v4237_v12 = vmul.f32 %v7207_v38, %v4232_v54  ;;  %v4226_v54 = vmul.f32 %v7213_v47, %v8395_v15  ;;  %v413_v15 = vrot.slane %v8482_v57, %v9231_v61 }
 0xecc   :  { %v4236_v21 = vmul.f32 %v7209_v24, %v4233_v30  ;;  %v5420_v19 = vmul.f32 -1.442695, %v6985_v28  ;;  %v9251_v28 = vld [vmem:[#allocation22_spill] sm:$0xff] }
 0xecd   :  { %4242 = vrot.lane.b32.xlu1 %v4237_v12, %s7363_s21  ;;  %v6984_v55 = vadd.f32 %v4113_v51, %v413_v15  ;;  %v9250_v51 = vld [vmem:[#allocation21_spill] sm:$0xff]  ;;  %v9255_v15 = vld [vmem:[#allocation26_spill] sm:$0xff] }
 0xece   :  { %4240 = vrot.lane.b32.xlu0 %v4236_v21, %s7363_s21 }
 0xecf   :  { %v5419_v38 = vmul.f32 -1.442695, %v6984_v55  ;;  %v9256_v55 = vld [vmem:[#allocation27_spill] sm:$0xff] }
 0xf3f   :  { %v4243_v11 = vpop.permute.xlu1 %4242 }
 0xf40   :  { %v4241_v24 = vpop.permute.xlu0 %4240 }
 0xf41   :  { %v4244_v12 = vsel %vm2515_vm4, %v4241_v24, %v4243_v11  ;;  %v8502_v30 = vadd.f32 %v4241_v24, %v4225_v29 }
 0xf42   :  { %v8504_v37 = vadd.f32 %v4244_v12, %v4226_v54  ;;  %v9252_v12 = vld [vmem:[#allocation23_spill] sm:$0xff] }
 0xf43   :  { %7214 = vtanh.f32 %v8502_v30 }
 0xf44   :  { %7216 = vtanh.f32 %v8504_v37 }
 0xf45   :  { %7218 = vpow2.f32 %v5420_v19  ;;  %v9257_v19 = vld [vmem:[#allocation28_spill] sm:$0xff] }
 0xf46   :  { %7220 = vpow2.f32 %v5419_v38  ;;  %v9258_v38 = vld [vmem:[#allocation29_spill] sm:$0xff] }
 0xf4d   :  { %v7215_v9 = vpop.eup %7214 }
 0xf4e   :  { %v7217_v7 = vpop.eup %7216  ;;  %4253 = vrot.lane.b32.xlu0 %v7215_v9, %s7363_s21  ;;  %v9253_v9 = vld [vmem:[#allocation24_spill] sm:$0xff] }
 0xf4f   :  { %4255 = vrot.lane.b32.xlu1 %v7217_v7, %s7363_s21  ;;  %v7219_v21 = vpop.eup %7218  ;;  %v9254_v7 = vld [vmem:[#allocation25_spill] sm:$0xff] }
 0xf50   :  { %v7221_v5 = vpop.eup %7220  ;;  %v4212_v50 = vadd.f32 1.0, %v7219_v21  ;;  %v9259_v21 = vld [vmem:[#allocation31_spill] sm:$0xff] }
 0xf51   :  { %v4211_v59 = vadd.f32 1.0, %v7221_v5  ;;  %v9260_v5 = vld [vmem:[#allocation33_spill] sm:$0xff] }
 0xf52   :  { %7222 = vrcp.f32 %v4212_v50  ;;  %v9261_v50 = vld [vmem:[#allocation35_spill] sm:$0xff] }
 0xf53   :  { %7224 = vrcp.f32 %v4211_v59  ;;  %v9262_v59 = vld [vmem:[#allocation37_spill] sm:$0xff] }
 0xf5c   :  { %v7223_v60 = vpop.eup %7222 }
 0xf5d   :  { %v7225_v11 = vpop.eup %7224 }
 0xfc0   :  { %v4254_v3 = vpop.permute.xlu0 %4253 }
 0xfc1   :  { %v4256_v47 = vpop.permute.xlu1 %4255 }
 0xfc2   :  { %v4257_v29 = vsel %vm2515_vm4, %v4254_v3, %v4256_v47  ;;  %v4261_v54 = vmul.f32 %v7223_v60, %v4256_v47  ;;  %v9263_v3 = vld [vmem:[#allocation39_spill] sm:$0xff]  ;;  %v9264_v60 = vld [vmem:[#allocation41_spill] sm:$0xff]  ;;  %v9265_v47 = vmov 0.0  }
 0xfc3   :  { %v4260_v24 = vmul.f32 %v7225_v11, %v4257_v29 }
 0xfc4   :  { %5421 = vmatprep.mubr.msk.f32.mxu0 %vm2515_vm4, %v4261_v54  ;;  %5422 = vmatprep.mubr.msk.f32.mxu1 %vm2515_vm4, %v4261_v54 }
 0xfc5   :  { %4330 = vmatmul.mubr.f32.vlgmr.msra.gmra.mrb[20].mxu0 %v4260_v24  ;;  %4401 = vmatmul.mubr.f32.vlgmr.msra.gmra.mrb[16].mxu1 %v4260_v24 }
 0xfc6   :  { %6706 = vmatpush1.bf16.msra.mxu0 %v7796_v42  ;;  %5423 = vmatprep.mubr.msk.f32.mxu0 %vm2515_vm4, %v4261_v54 }
 0xfc7   :  { %6708 = vmatprep.subr.bf16.mxu0 %v7799_v44  ;;  %6754 = vmatpush1.bf16.msra.mxu1 %v7666_v23  ;;  %v9232_v23 = vld [vmem:[#allocation45_spill] sm:$0xff] }
 0xfc8   :  { %6756 = vmatprep.subr.bf16.mxu1 %v7672_v25  ;;  %v9233_v25 = vld [vmem:[#allocation46_spill] sm:$0xff] }
 0xfca   :  { %6710 = vmatpush1.bf16.msra.mxu0 %v7805_v6 }
 0xfcb   :  { %6712 = vmatprep.subr.bf16.mxu0 %v7809_v8  ;;  %6758 = vmatpush1.bf16.msra.mxu1 %v7680_v36  ;;  %v9234_v36 = vld [vmem:[#allocation54_spill] sm:$0xff] }
 0xfcc   :  { %6760 = vmatprep.subr.bf16.mxu1 %v7687_v39  ;;  %v9235_v39 = vld [vmem:[#allocation55_spill] sm:$0xff] }
 0xfce   :  { %6714 = vmatpush1.bf16.msra.mxu0 %v7814_v33 }
 0xfcf   :  { %6716 = vmatprep.subr.bf16.mxu0 %v7817_v34  ;;  %6762 = vmatpush1.bf16.msra.mxu1 %v7693_v49  ;;  %v9236_v49 = vld [vmem:[#allocation47_spill] sm:$0xff] }
 0xfd0   :  { %6764 = vmatprep.subr.bf16.mxu1 %v7699_v52  ;;  %v9237_v52 = vld [vmem:[#allocation48_spill] sm:$0xff] }
 0xfd2   :  { %6718 = vmatpush1.bf16.msra.mxu0 %v7822_v0 }
 0xfd3   :  { %6720 = vmatprep.subr.bf16.mxu0 %v7825_v10  ;;  %6766 = vmatpush1.bf16.msra.mxu1 %v7705_v2  ;;  %v9238_v2 = vld [vmem:[#allocation56_spill] sm:$0xff] }
 0xfd4   :  { %6768 = vmatprep.subr.bf16.mxu1 %v7711_v4  ;;  %v9239_v4 = vld [vmem:[#allocation11_spill] sm:$0xff] }
 0xfd6   :  { %6722 = vmatpush1.bf16.msra.mxu0 %v7830_v35 }
 0xfd7   :  { %6724 = vmatprep.subr.bf16.mxu0 %v7833_v48  ;;  %6770 = vmatpush1.bf16.msra.mxu1 %v7717_v18  ;;  %v9240_v18 = vld [vmem:[#allocation49_spill] sm:$0xff] }
 0xfd8   :  { %6772 = vmatprep.subr.bf16.mxu1 %v9046_v46  ;;  %v9241_v46 = vld [vmem:[#allocation50_spill] sm:$0xff] }
 0xfda   :  { %6726 = vmatpush1.bf16.msra.mxu0 %v7838_v58 }
 0xfdb   :  { %6728 = vmatprep.subr.bf16.mxu0 %v7841_v20  ;;  %6774 = vmatpush1.bf16.msra.mxu1 %v9047_v63  ;;  %v9242_v63 = vld [vmem:[#allocation12_spill] sm:$0xff] }
 0xfdc   :  { %6776 = vmatprep.subr.bf16.mxu1 %v9048_v22  ;;  %v9243_v22 = vld [vmem:[#allocation13_spill] sm:$0xff] }
 0xfde   :  { %6730 = vmatpush1.bf16.msra.mxu0 %v7846_v14 }
 0xfdf   :  { %6732 = vmatprep.subr.bf16.mxu0 %v7849_v41  ;;  %6778 = vmatpush1.bf16.msra.mxu1 %v9049_v40  ;;  %v9244_v40 = vld [vmem:[#allocation14_spill] sm:$0xff] }
 0xfe0   :  { %6780 = vmatprep.subr.bf16.mxu1 %v9050_v56  ;;  %v9245_v56 = vld [vmem:[#allocation15_spill] sm:$0xff] }
 0xfe2   :  { %6734 = vmatpush1.bf16.msra.mxu0 %v7854_v32 }
 0xfe3   :  { %6736 = vmatprep.subr.bf16.mxu0 %v9051_v27  ;;  %6782 = vmatpush1.bf16.msra.mxu1 %v9052_v45  ;;  %v9246_v45 = vld [vmem:[#allocation16_spill] sm:$0xff] }
 0xfe4   :  { %6784 = vmatprep.subr.bf16.mxu1 %v9053_v53  ;;  %v9247_v53 = vld [vmem:[#allocation17_spill] sm:$0xff] }
 0xfe6   :  { %6738 = vmatpush1.bf16.msra.mxu0 %v9054_v13 }
 0xfe7   :  { %6740 = vmatprep.subr.bf16.mxu0 %v7865_v16  ;;  %6786 = vmatpush1.bf16.msra.mxu1 %v9055_v26  ;;  %v9248_v26 = vld [vmem:[#allocation18_spill] sm:$0xff] }
 0xfe8   :  { %6788 = vmatprep.subr.bf16.mxu1 %v9080_v43  ;;  %v9249_v43 = vld [vmem:[#allocation20_spill] sm:$0xff] }
 0xfea   :  { %6742 = vmatpush1.bf16.msra.mxu0 %v9081_v62 }
 0xfeb   :  { %6744 = vmatprep.subr.bf16.mxu0 %v7873_v1  ;;  %6790 = vmatpush1.bf16.msra.mxu1 %v9232_v23  ;;  %v8591_v23 = vld [vmem:[%s8856_s2 + $0x28] sm:$0xff] }
 0xfec   :  { %6792 = vmatprep.subr.bf16.mxu1 %v9233_v25  ;;  %v441_v25 = vrot.slane %v8591_v23, %v9230_v17 }
 0xfee   :  { %6746 = vmatpush1.bf16.msra.mxu0 %v9234_v36 }
 0xfef   :  { %6748 = vmatprep.subr.bf16.mxu0 %v9235_v39  ;;  %6794 = vmatpush1.bf16.msra.mxu1 %v9236_v49  ;;  %v445_v49 = vrot.slane %v8591_v23, %v9231_v61 }
 0xff0   :  { %6796 = vmatprep.subr.bf16.mxu1 %v9237_v52 }
 0xff2   :  { %6750 = vmatpush1.bf16.msra.mxu0 %v9238_v2 }
 0xff3   :  { %6800 = vmatprep.subr.bf16.mxu0 %v9239_v4  ;;  %6798 = vmatpush1.bf16.msra.mxu1 %v9240_v18 }
 0xff4   :  { %6848 = vmatprep.subr.bf16.mxu1 %v9241_v46 }
 0xff5   :  { %4472 = vmatmul.mubr.f32.vlgmr.msra.gmra.mrb[22].mxu0 %v4260_v24 }
 0xff6   :  { %6802 = vmatpush1.bf16.msra.mxu0 %v9242_v63 }
 0xff7   :  { %6804 = vmatprep.subr.bf16.mxu0 %v9243_v22 }
 0xffa   :  { %6806 = vmatpush1.bf16.msra.mxu0 %v9244_v40  ;;  %v9266_v40 = vld [vmem:[#allocation61_spill] sm:$0xff] }
 0xffb   :  { %6808 = vmatprep.subr.bf16.mxu0 %v9245_v56  ;;  %v429_v56 = vrot.slane %v8482_v57, %v9266_v40 }
 0xffe   :  { %6810 = vmatpush1.bf16.msra.mxu0 %v9246_v45  ;;  %v9267_v45 = vld [vmem:[#allocation60_spill] sm:$0xff] }
 0xfff   :  { %6812 = vmatprep.subr.bf16.mxu0 %v9247_v53  ;;  %v425_v17 = vrot.slane %v8482_v57, %v9267_v45 }
0x1002   :  { %6814 = vmatpush1.bf16.msra.mxu0 %v9248_v26 }
0x1003   :  { %6816 = vmatprep.subr.bf16.mxu0 %v9249_v43 }
0x1006   :  { %6818 = vmatpush1.bf16.msra.mxu0 %v9250_v51 }
0x1007   :  { %6820 = vmatprep.subr.bf16.mxu0 %v9251_v28 }
0x100a   :  { %6822 = vmatpush1.bf16.msra.mxu0 %v9252_v12 }
0x100b   :  { %6824 = vmatprep.subr.bf16.mxu0 %v9253_v9 }
0x100e   :  { %6826 = vmatpush1.bf16.msra.mxu0 %v9254_v7 }
0x100f   :  { %6828 = vmatprep.subr.bf16.mxu0 %v9255_v15 }
0x1012   :  { %6830 = vmatpush1.bf16.msra.mxu0 %v9256_v55 }
0x1013   :  { %6832 = vmatprep.subr.bf16.mxu0 %v9257_v19 }
0x1016   :  { %6834 = vmatpush1.bf16.msra.mxu0 %v9258_v38 }
0x1017   :  { %6836 = vmatprep.subr.bf16.mxu0 %v9259_v21 }
0x101a   :  { %6838 = vmatpush1.bf16.msra.mxu0 %v9260_v5 }
0x101b   :  { %6840 = vmatprep.subr.bf16.mxu0 %v9261_v50  ;;  %v433_v50 = vrot.slane %v8482_v57, %v9229_v31 }
0x101e   :  { %6842 = vmatpush1.bf16.msra.mxu0 %v9262_v59 }
0x101f   :  { %6844 = vmatprep.subr.bf16.mxu0 %v9263_v3 }
0x1022   :  { %6846 = vmatpush1.bf16.msra.mxu0 %v9264_v60 }
0x1023   :  { %5465 = vmatprep.subr.mxu0 %v9265_v47 }
0x1098   :  { %v4331_v11 = vpop.f32.mrb[20].mxu0  ;;  %v4402_v29 = vpop.f32.mrb[16].mxu1 }
0x1099   :  { %v4333_v54 = vpop.f32.mrb[21].mxu0  ;;  %v4404_v24 = vpop.f32.mrb[17].mxu1  ;;  %v6987_v61 = vadd.f32 %v4331_v11, %v425_v17  ;;  %v6989_v59 = vadd.f32 %v4402_v29, %v433_v50 }
0x109a   :  { %v6988_v53 = vadd.f32 %v4333_v54, %v429_v56 }
0x109b   :  { %v5424_v43 = vmul.f32 -1.442695, %v6987_v61  ;;  %v5426_v3 = vmul.f32 -1.442695, %v6989_v59 }
0x109c   :  { %v5425_v26 = vmul.f32 -1.442695, %v6988_v53 }
0x10c8   :  { %v4473_v52 = vpop.f32.mrb[22].mxu0 }
0x10c9   :  { %v6991_v4 = vadd.f32 %v4473_v52, %v441_v25  ;;  %v4475_v18 = vpop.f32.mrb[23].mxu0 }
0x10ca   :  { %v6992_v46 = vadd.f32 %v4475_v18, %v445_v49 }
0x10cb   :  { %7226 = vtanh.f32 %v6991_v4  ;;  %v5428_v53 = vmul.f32 -1.442695, %v6991_v4 }
0x10cc   :  { %7228 = vtanh.f32 %v6992_v46 }
0x10cd   :  { %7230 = vpow2.f32 %v5425_v26 }
0x10ce   :  { %7232 = vpow2.f32 %v5424_v43 }
0x10d5   :  { %v7227_v63 = vpop.eup %7226 }
0x10d6   :  { %v7229_v22 = vpop.eup %7228  ;;  %4520 = vrot.lane.b32.xlu0 %v7227_v63, %s7363_s21 }
0x10d7   :  { %4522 = vrot.lane.b32.xlu1 %v7229_v22, %s7363_s21  ;;  %v7231_v51 = vpop.eup %7230 }
0x10d8   :  { %v7233_v28 = vpop.eup %7232  ;;  %v4500_v12 = vadd.f32 1.0, %v7231_v51 }
0x10d9   :  { %v4499_v9 = vadd.f32 1.0, %v7233_v28 }
0x10da   :  { %7234 = vrcp.f32 %v4500_v12 }
0x10db   :  { %7236 = vrcp.f32 %v4499_v9 }
0x10dc   :  { %7238 = vpow2.f32 %v5426_v3  ;;  %v4844_v3 = vld [vmem:[%s8858_s4] sm:$0xff] }
0x10e4   :  { %v7235_v15 = vpop.eup %7234 }
0x10e5   :  { %v7237_v19 = vpop.eup %7236  ;;  %v4516_v49 = vmul.f32 %v7235_v15, %v8502_v30  ;;  %v9268_v30 = vld [vmem:[#allocation30_spill] sm:$0xff] }
0x10e6   :  { %v7239_v60 = vpop.eup %7238 }
0x10e7   :  { %v4501_v11 = vadd.f32 1.0, %v7239_v60  ;;  %v4845_v60 = vld [vmem:[%s8858_s4 + $0x8] sm:$0xff] }
0x10e9   :  { %7240 = vrcp.f32 %v4501_v11  ;;  %v4846_v11 = vld [vmem:[%s8858_s4 + $0x10] sm:$0xff] }
0x10f3   :  { %v7241_v54 = vpop.eup %7240 }
0x10f4   :  { %v4517_v52 = vmul.f32 %v7241_v54, %v8504_v37  ;;  %v437_v37 = vrot.slane %v8482_v57, %v9268_v30  ;;  %v7364_v54 = vmov 0.0|0.0  }
0x10f6   :  { %v6990_v17 = vadd.f32 %v4404_v24, %v437_v37 }
0x10f8   :  { %v5427_v61 = vmul.f32 -1.442695, %v6990_v17  ;;  %v4852_v17 = vld [vmem:[%s8858_s4 + $0x40] sm:$0xff] }
0x1148   :  { %v4521_v7 = vpop.permute.xlu0 %4520 }
0x1149   :  { %v4523_v55 = vpop.permute.xlu1 %4522 }
0x114a   :  { %v4524_v38 = vsel %vm2515_vm4, %v4521_v7, %v4523_v55  ;;  %v4528_v21 = vmul.f32 %v7235_v15, %v4523_v55 }
0x114b   :  { %v4527_v5 = vmul.f32 %v7237_v19, %v4524_v38 }
0x114c   :  { %4533 = vrot.lane.b32.xlu1 %v4528_v21, %s7363_s21 }
0x114d   :  { %4531 = vrot.lane.b32.xlu0 %v4527_v5, %s7363_s21 }
0x11be   :  { %v4534_v25 = vpop.permute.xlu1 %4533 }
0x11bf   :  { %v4532_v18 = vpop.permute.xlu0 %4531 }
0x11c0   :  { %v4535_v46 = vsel %vm2515_vm4, %v4532_v18, %v4534_v25  ;;  %v8611_v63 = vadd.f32 %v4532_v18, %v4516_v49  ;;  %v6896_v25 = vpack.c.bf16 %v4845_v60, %v4844_v3  ;;  %v4847_v49 = vld [vmem:[%s8858_s4 + $0x18] sm:$0xff]  ;;  %v4848_v18 = vld [vmem:[%s8858_s4 + $0x20] sm:$0xff] }
0x11c1   :  { %v8613_v22 = vadd.f32 %v4535_v46, %v4517_v52  ;;  %v6899_v52 = vpack.c.bf16 %v4847_v49, %v4846_v11  ;;  %v4849_v46 = vld [vmem:[%s8858_s4 + $0x28] sm:$0xff] }
0x11c2   :  { %7242 = vtanh.f32 %v8611_v63 }
0x11c3   :  { %7244 = vtanh.f32 %v8613_v22 }
0x11c4   :  { %7246 = vpow2.f32 %v5428_v53  ;;  %v4853_v53 = vld [vmem:[%s8858_s4 + $0x48] sm:$0xff] }
0x11c5   :  { %7248 = vpow2.f32 %v5427_v61  ;;  %v6908_v61 = vpack.c.bf16 %v4853_v53, %v4852_v17 }
0x11cc   :  { %v7243_v29 = vpop.eup %7242 }
0x11cd   :  { %v7245_v56 = vpop.eup %7244  ;;  %4544 = vrot.lane.b32.xlu0 %v7243_v29, %s7363_s21  ;;  %v6902_v29 = vpack.c.bf16 %v4849_v46, %v4848_v18 }
0x11ce   :  { %4546 = vrot.lane.b32.xlu1 %v7245_v56, %s7363_s21  ;;  %v7247_v26 = vpop.eup %7246  ;;  %v4850_v56 = vld [vmem:[%s8858_s4 + $0x30] sm:$0xff] }
0x11cf   :  { %v7249_v43 = vpop.eup %7248  ;;  %v4503_v51 = vadd.f32 1.0, %v7247_v26  ;;  %v4854_v26 = vld [vmem:[%s8858_s4 + $0x50] sm:$0xff] }
0x11d0   :  { %v4502_v28 = vadd.f32 1.0, %v7249_v43  ;;  %v4855_v43 = vld [vmem:[%s8858_s4 + $0x58] sm:$0xff] }
0x11d1   :  { %7250 = vrcp.f32 %v4503_v51  ;;  %v6911_v51 = vpack.c.bf16 %v4855_v43, %v4854_v26  ;;  %v5440_v26 = vld [vmem:[%s8860_s6] ss:$0 sm:$0xff] }
0x11d2   :  { %7252 = vrcp.f32 %v4502_v28  ;;  %v4856_v28 = vld [vmem:[%s8858_s4 + $0x60] sm:$0xff] }
0x11db   :  { %v7251_v9 = vpop.eup %7250 }
0x11dc   :  { %v7253_v15 = vpop.eup %7252 }
0x123f   :  { %v4545_v12 = vpop.permute.xlu0 %4544 }
0x1240   :  { %v4547_v7 = vpop.permute.xlu1 %4546 }
0x1241   :  { %v4548_v55 = vsel %vm2515_vm4, %v4545_v12, %v4547_v7  ;;  %v4552_v19 = vmul.f32 %v7251_v9, %v4547_v7  ;;  %v4857_v12 = vld [vmem:[%s8858_s4 + $0x68] sm:$0xff]  ;;  %v4858_v7 = vld [vmem:[%s8858_s4 + $0x70] sm:$0xff] }
0x1242   :  { %v4551_v38 = vmul.f32 %v7253_v15, %v4548_v55  ;;  %v6914_v9 = vpack.c.bf16 %v4857_v12, %v4856_v28  ;;  %v4859_v15 = vld [vmem:[%s8858_s4 + $0x78] sm:$0xff]  ;;  %v5115_v12 = vld [vmem:[%s8863_s9] sm:$0xff] }
0x1243   :  { %5429 = vmatprep.mubr.msk.f32.mxu1 %vm2515_vm4, %v4552_v19  ;;  %5430 = vmatprep.mubr.msk.f32.mxu0 %vm2515_vm4, %v4552_v19  ;;  %v6917_v55 = vpack.c.bf16 %v4859_v15, %v4858_v7 }
0x1244   :  { %4621 = vmatmul.mubr.f32.vlgmr.msra.gmra.mrb[18].mxu1 %v4551_v38  ;;  %4692 = vmatmul.mubr.f32.vlgmr.msra.gmra.mrb[24].mxu0 %v4551_v38 }
0x1245   :  { %6850 = vmatpush1.bf16.msra.mxu1 %v7796_v42  ;;  %5431 = vmatprep.mubr.msk.f32.mxu1 %vm2515_vm4, %v4552_v19  ;;  %v469_v42 = vrot.slane %v8591_v23, %v9268_v30  ;;  %v4851_v30 = vld [vmem:[%s8858_s4 + $0x38] sm:$0xff]  ;;  %v4860_v19 = vld [vmem:[%s8858_s4 + $0x80] sm:$0xff] }
0x1246   :  { %6852 = vmatprep.subr.bf16.mxu1 %v7799_v44  ;;  %v6905_v37 = vpack.c.bf16 %v4851_v30, %v4850_v56  ;;  %5467 = vmatprep.mubr.msk.f32.mxu0 %vm7365_vm5, %v9265_v47  ;;  %v5031_v30 = vld [vmem:[%s8861_s7 + $0x10] sm:$0xff] }
0x1249   :  { %6854 = vmatpush1.bf16.msra.mxu1 %v7805_v6 }
0x124a   :  { %6856 = vmatprep.subr.bf16.mxu1 %v7809_v8 }
0x124d   :  { %6858 = vmatpush1.bf16.msra.mxu1 %v7814_v33 }
0x124e   :  { %6860 = vmatprep.subr.bf16.mxu1 %v7817_v34 }
0x1251   :  { %6862 = vmatpush1.bf16.msra.mxu1 %v7822_v0 }
0x1252   :  { %6864 = vmatprep.subr.bf16.mxu1 %v7825_v10 }
0x1255   :  { %6866 = vmatpush1.bf16.msra.mxu1 %v7830_v35 }
0x1256   :  { %6868 = vmatprep.subr.bf16.mxu1 %v7833_v48  ;;  %v9269_v48 = vld [vmem:[#allocation59_spill] sm:$0xff] }
0x1259   :  { %6870 = vmatpush1.bf16.msra.mxu1 %v7838_v58 }
0x125a   :  { %6872 = vmatprep.subr.bf16.mxu1 %v7841_v20  ;;  %v453_v20 = vrot.slane %v8591_v23, %v9269_v48 }
0x125d   :  { %6874 = vmatpush1.bf16.msra.mxu1 %v7846_v14 }
0x125e   :  { %6876 = vmatprep.subr.bf16.mxu1 %v7849_v41  ;;  %v9270_v41 = vld [vmem:[#allocation58_spill] sm:$0xff] }
0x1261   :  { %6878 = vmatpush1.bf16.msra.mxu1 %v7854_v32  ;;  %v465_v32 = vrot.slane %v8591_v23, %v9229_v31 }
0x1262   :  { %6880 = vmatprep.subr.bf16.mxu1 %v9051_v27 }
0x1265   :  { %6882 = vmatpush1.bf16.msra.mxu1 %v9054_v13 }
0x1266   :  { %6884 = vmatprep.subr.bf16.mxu1 %v7865_v16  ;;  %v449_v16 = vrot.slane %v8591_v23, %v9270_v41 }
0x1269   :  { %6886 = vmatpush1.bf16.msra.mxu1 %v9081_v62 }
0x126a   :  { %6888 = vmatprep.subr.bf16.mxu1 %v7873_v1 }
0x126d   :  { %6890 = vmatpush1.bf16.msra.mxu1 %v9234_v36 }
0x126e   :  { %6892 = vmatprep.subr.bf16.mxu1 %v9235_v39 }
0x1271   :  { %6894 = vmatpush1.bf16.msra.mxu1 %v9238_v2 }
0x1272   :  { %6895 = vmatprep.subr.bf16.mxu1 %v7364_v54 }
0x1274   :  { %4763 = vmatmul.mubr.f32.vlgmr.msra.gmra.mrb[20].mxu1 %v4551_v38  ;;  %v4861_v38 = vld [vmem:[%s8858_s4 + $0x88] sm:$0xff] }
0x1275   :  { %6897 = vmatpush1.bf16.msra.mxu1 %v6896_v25 }
0x1276   :  { %6898 = vmatprep.subr.bf16.mxu1 %v7364_v54 }
0x1279   :  { %6900 = vmatpush1.bf16.msra.mxu1 %v6899_v52 }
0x127a   :  { %6901 = vmatprep.subr.bf16.mxu1 %v7364_v54 }
0x127d   :  { %6903 = vmatpush1.bf16.msra.mxu1 %v6902_v29  ;;  %v5030_v29 = vld [vmem:[%s8861_s7 + $0x8] sm:$0xff] }
0x127e   :  { %6904 = vmatprep.subr.bf16.mxu1 %v7364_v54 }
0x1281   :  { %6906 = vmatpush1.bf16.msra.mxu1 %v6905_v37  ;;  %v5032_v37 = vld [vmem:[%s8861_s7 + $0x18] sm:$0xff] }
0x1282   :  { %6907 = vmatprep.subr.bf16.mxu1 %v7364_v54  ;;  %v6935_v17 = vpack.c.bf16 %v5032_v37, %v5031_v30 }
0x1285   :  { %6909 = vmatpush1.bf16.msra.mxu1 %v6908_v61 }
0x1286   :  { %6910 = vmatprep.subr.bf16.mxu1 %v7364_v54 }
0x1289   :  { %6912 = vmatpush1.bf16.msra.mxu1 %v6911_v51 }
0x128a   :  { %6913 = vmatprep.subr.bf16.mxu1 %v7364_v54 }
0x128d   :  { %6915 = vmatpush1.bf16.msra.mxu1 %v6914_v9  ;;  %v5116_v9 = vld [vmem:[%s8863_s9 + $0x8] sm:$0xff] }
0x128e   :  { %6916 = vmatprep.subr.bf16.mxu1 %v7364_v54  ;;  %v6938_v15 = vpack.c.bf16 %v5116_v9, %v5115_v12 }
0x1291   :  { %6918 = vmatpush1.bf16.msra.mxu1 %v6917_v55 }
0x1292   :  { %6919 = vmatprep.subr.bf16.mxu1 %v7364_v54 }
0x1317   :  { %v4622_v0 = vpop.f32.mrb[18].mxu1  ;;  %v8648_v35 = vpop.f32.mrb[24].mxu0 }
0x1318   :  { %v4624_v58 = vpop.f32.mrb[19].mxu1  ;;  %v8650_v14 = vpop.f32.mrb[25].mxu0  ;;  %v6993_v27 = vadd.f32 %v4622_v0, %v449_v16  ;;  %v6920_v0 = vpack.c.bf16 %v4861_v38, %v4860_v19  ;;  %v5117_v19 = vld [vmem:[%s8863_s9 + $0x10] sm:$0xff]  ;;  %v5118_v38 = vld [vmem:[%s8863_s9 + $0x18] sm:$0xff] }
0x1319   :  { %v6994_v1 = vadd.f32 %v4624_v58, %v453_v20  ;;  %v4862_v58 = vld [vmem:[%s8858_s4 + $0x90] sm:$0xff] }
0x131a   :  { %v5432_v62 = vmul.f32 -1.442695, %v6993_v27  ;;  %6921 = vmatpush1.bf16.msra.mxu1 %v6920_v0  ;;  %v6941_v0 = vpack.c.bf16 %v5118_v38, %v5117_v19 }
0x131b   :  { %v5433_v13 = vmul.f32 -1.442695, %v6994_v1  ;;  %6922 = vmatprep.subr.bf16.mxu1 %v7364_v54 }
0x1347   :  { %v4764_v44 = vpop.f32.mrb[20].mxu1 }
0x1348   :  { %v8656_v6 = vadd.f32 %v4764_v44, %v465_v32  ;;  %v4766_v8 = vpop.f32.mrb[21].mxu1  ;;  %v4863_v32 = vld [vmem:[%s8858_s4 + $0x98] sm:$0xff]  ;;  %v4864_v44 = vld [vmem:[%s8858_s4 + $0xa0] sm:$0xff] }
0x1349   :  { %v6998_v33 = vadd.f32 %v4766_v8, %v469_v42  ;;  %v6923_v42 = vpack.c.bf16 %v4863_v32, %v4862_v58  ;;  %v4865_v8 = vld [vmem:[%s8858_s4 + $0xa8] sm:$0xff]  ;;  %v5441_v58 = vld [vmem:[%s8862_s8] ss:$0 sm:$0xff] }
0x134a   :  { %7254 = vtanh.f32 %v8656_v6  ;;  %v5200_v32 = vld [vmem:[%s8865_s11] sm:$0xff] }
0x134b   :  { %7256 = vtanh.f32 %v6998_v33  ;;  %6924 = vmatpush1.bf16.msra.mxu1 %v6923_v42  ;;  %v6926_v33 = vpack.c.bf16 %v4865_v8, %v4864_v44  ;;  %v5201_v42 = vld [vmem:[%s8865_s11 + $0x8] sm:$0xff] }
0x134c   :  { %7258 = vpow2.f32 %v5433_v13  ;;  %6925 = vmatprep.subr.bf16.mxu1 %v7364_v54 }
0x134d   :  { %7260 = vpow2.f32 %v5432_v62 }
0x134f   :  { %6927 = vmatpush1.bf16.msra.mxu1 %v6926_v33 }
0x1350   :  { %6928 = vmatprep.subr.bf16.mxu1 %v7364_v54 }
0x1354   :  { %v7255_v34 = vpop.eup %7254 }
0x1355   :  { %v7257_v10 = vpop.eup %7256  ;;  %4811 = vrot.lane.b32.xlu0 %v7255_v34, %s7363_s21  ;;  %v457_v34 = vrot.slane %v8591_v23, %v9267_v45  ;;  %v4866_v45 = vld [vmem:[%s8858_s4 + $0xb0] sm:$0xff] }
0x1356   :  { %4813 = vrot.lane.b32.xlu1 %v7257_v10, %s7363_s21  ;;  %v7259_v31 = vpop.eup %7258 }
0x1357   :  { %v7261_v57 = vpop.eup %7260  ;;  %v4791_v36 = vadd.f32 1.0, %v7259_v31  ;;  %v6995_v10 = vadd.f32 %v8648_v35, %v457_v34  ;;  %v4868_v31 = vld [vmem:[%s8859_s5] sm:$0x3]  ;;  %v4867_v35 = vld [vmem:[%s8858_s4 + $0xb8] sm:$0xff]  ;;  %v6944_v34 = vpack.c.bf16 %v5201_v42, %v5200_v32 }
0x1358   :  { %v4790_v39 = vadd.f32 1.0, %v7261_v57  ;;  %5466 = vmatpush3.msk.msra.mxu0 %vm522_vm0, %v4868_v31 }
0x1359   :  { %7262 = vrcp.f32 %v4791_v36  ;;  %v5434_v48 = vmul.f32 -1.442695, %v6995_v10  ;;  %6931 = vmatprep.subr.bf16.mxu0 %v7364_v54 }
0x135a   :  { %7264 = vrcp.f32 %v4790_v39 }
0x135b   :  { %7266 = vpow2.f32 %v5434_v48  ;;  %v5202_v48 = vld [vmem:[%s8865_s11 + $0x10] sm:$0xff] }
0x1363   :  { %v8665_v24 = vpop.eup %7262 }
0x1364   :  { %v7265_v21 = vpop.eup %7264  ;;  %v4807_v27 = vmul.f32 %v8665_v24, %v8611_v63  ;;  %v6929_v63 = vpack.c.bf16 %v4867_v35, %v4866_v45 }
0x1365   :  { %v7267_v20 = vpop.eup %7266 }
0x1366   :  { %v4792_v41 = vadd.f32 1.0, %v7267_v20  ;;  %6930 = vmatpush1.bf16.msra.mxu1 %v6929_v63  ;;  %v5203_v20 = vld [vmem:[%s8865_s11 + $0x18] sm:$0xff] }
0x1368   :  { %7268 = vrcp.f32 %v4792_v41  ;;  %v6947_v41 = vpack.c.bf16 %v5203_v20, %v5202_v48 }
0x1372   :  { %v7269_v16 = vpop.eup %7268 }
0x1373   :  { %v4808_v13 = vmul.f32 %v7269_v16, %v8613_v22  ;;  %v5443_v16 = vld [vmem:[%s8864_s10] ss:$0 sm:$0xff]  ;;  %s7327_s10 = scalar_lea.vmem %s5295_s14, 32 }
0x1374   :  { %p7328_p2 = scmp.ne.s32.totalorder %s5295_s14, %s7327_s10  ;;  %p7333_p4 = scmp.lt.s32.totalorder %s7327_s10, %s7327_s10 }
0x1376   :  { %p7334_p5 = por %p7333_p4, %p7332_p3 }
0x1378   :  { %p7335_p6 = pnand %p7334_p5, %p7328_p2 }
0x13c7   :  { %v4812_v2 = vpop.permute.xlu0 %4811 }
0x13c8   :  { %v4814_v4 = vpop.permute.xlu1 %4813 }
0x13c9   :  { %v4815_v5 = vsel %vm2515_vm4, %v4812_v2, %v4814_v4  ;;  %v4819_v50 = vmul.f32 %v8665_v24, %v4814_v4  ;;  %v7282_v24 = vld [vmem:[%s8854_s0] sm:$0x3]  ;;  %v461_v4 = vrot.slane %v8591_v23, %v9266_v40 }
0x13ca   :  { %v4818_v59 = vmul.f32 %v7265_v21, %v4815_v5  ;;  %v5436_v5 = vmul.f32 -1.442695, %v8656_v6  ;;  %v5029_v6 = vld [vmem:[%s8861_s7] sm:$0xff] }
0x13cb   :  { %4824 = vrot.lane.b32.xlu1 %v4819_v50, %s7363_s21  ;;  %v6996_v21 = vadd.f32 %v8650_v14, %v461_v4  ;;  %v6932_v56 = vpack.c.bf16 %v5030_v29, %v5029_v6 }
0x13cc   :  { %4822 = vrot.lane.b32.xlu0 %v4818_v59, %s7363_s21 }
0x13cd   :  { %v5435_v50 = vmul.f32 -1.442695, %v6996_v21 }
0x143d   :  { %v4825_v1 = vpop.permute.xlu1 %4824 }
0x143e   :  { %v4823_v62 = vpop.permute.xlu0 %4822 }
0x143f   :  { %v4826_v57 = vsel %vm2515_vm4, %v4823_v62, %v4825_v1  ;;  %v4829_v36 = vadd.f32 %v4823_v62, %v4807_v27 }
0x1440   :  { %v4830_v22 = vadd.f32 %v4826_v57, %v4808_v13 }
0x1441   :  { %7270 = vtanh.f32 %v4829_v36 }
0x1442   :  { %7272 = vtanh.f32 %v4830_v22 }
0x1443   :  { %7274 = vpow2.f32 %v5436_v5 }
0x1444   :  { %7276 = vpow2.f32 %v5435_v50 }
0x144b   :  { %v7271_v39 = vpop.eup %7270 }
0x144c   :  { %v7273_v2 = vpop.eup %7272  ;;  %4835 = vrot.lane.b32.xlu0 %v7271_v39, %s7363_s21 }
0x144d   :  { %4837 = vrot.lane.b32.xlu1 %v7273_v2, %s7363_s21  ;;  %v7275_v59 = vpop.eup %7274 }
0x144e   :  { %v7277_v3 = vpop.eup %7276  ;;  %v4794_v60 = vadd.f32 1.0, %v7275_v59 }
0x144f   :  { %v4793_v11 = vadd.f32 1.0, %v7277_v3 }
0x1450   :  { %4869 = vrot.lane.b32.xlu0 %v7282_v24, %s7366_s25  ;;  %7278 = vrcp.f32 %v4794_v60 }
0x1451   :  { %7280 = vrcp.f32 %v4793_v11 }
0x145a   :  { %v7279_v49 = vpop.eup %7278 }
0x145b   :  { %v7281_v18 = vpop.eup %7280 }
0x14be   :  { %v4836_v25 = vpop.permute.xlu0 %4835 }
0x14bf   :  { %v4838_v52 = vpop.permute.xlu1 %4837 }
0x14c0   :  { %v4839_v46 = vsel %vm2515_vm4, %v4836_v25, %v4838_v52  ;;  %v4843_v23 = vmul.f32 %v7279_v49, %v4838_v52 }
0x14c1   :  { %v4842_v40 = vmul.f32 %v7281_v18, %v4839_v46 }
0x14c2   :  { %v4870_v14 = vpop.permute.xlu0 %4869  ;;  %5439 = vmatprep.mubr.msk.f32.mxu1 %vm2515_vm4, %v4843_v23 }
0x14c3   :  { %5468 = vmatmul.mubr.msk.f32.vlgmr.msra.gmra.mrb[26].mxu0 %vm4871_vm6, %v4870_v14  ;;  %5015 = vmatmul.mubr.f32.vlgmr.msra.gmra.mrb[24].mxu1 %v4842_v40 }
0x14c4   :  { %5478 = vmatprep.mubr.msk.f32.mxu0 %vm7365_vm5, %v9265_v47  ;;  %6933 = vmatpush3.bf16.msra.mxu0 %v6932_v56 }
0x14c5   :  { %6934 = vmatprep.subr.bf16.mxu0 %v7364_v54 }
0x14c8   :  { %6936 = vmatpush3.bf16.msra.mxu0 %v6935_v17 }
0x14c9   :  { %6937 = vmatprep.subr.bf16.mxu0 %v7364_v54 }
0x1596   :  { %v4943_v53 = vpop.f32.mrb[26].mxu0  ;;  %v5016_v61 = vpop.f32.mrb[24].mxu1 }
0x1597   :  { %v5017_v43 = vadd.f32 %v5016_v61, %v4943_v53  ;;  %v5469_v51 = vpop.f32.mrb[27].mxu0  ;;  %v5018_v28 = vpop.f32.mrb[25].mxu1 }
0x1599   :  { %v5027_v7 = vadd.f32 %v5440_v26, %v5017_v43 }
0x159b   :  { %v5028_v55 = vmax.f32 %v5027_v7, 0.0 }
0x159d   :  { %5479 = vmatmul.mubr.msk.f32.vlgmr.msra.gmra.mrb[28].mxu0 %vm5040_vm7, %v5028_v55 }
0x159e   :  { %6939 = vmatpush3.bf16.msra.mxu0 %v6938_v15  ;;  %5489 = vmatprep.mubr.msk.f32.mxu0 %vm7365_vm5, %v9265_v47 }
0x159f   :  { %6940 = vmatprep.subr.bf16.mxu0 %v7364_v54 }
0x15a2   :  { %6942 = vmatpush3.bf16.msra.mxu0 %v6941_v0 }
0x15a3   :  { %6943 = vmatprep.subr.bf16.mxu0 %v7364_v54 }
0x1670   :  { %v5110_v44 = vpop.f32.mrb[28].mxu0 }
0x1671   :  { %v5111_v8 = vadd.f32 %v5441_v58, %v5110_v44  ;;  %v5480_v33 = vpop.f32.mrb[29].mxu0 }
0x1673   :  { %v5114_v10 = vmax.f32 %v5111_v8, 0.0 }
0x1675   :  { %5490 = vmatmul.mubr.msk.f32.vlgmr.msra.gmra.mrb[30].mxu0 %vm5040_vm7, %v5114_v10 }
0x1676   :  { %6945 = vmatpush3.bf16.msra.mxu0 %v6944_v34  ;;  %5500 = vmatprep.mubr.msk.f32.mxu0 %vm7365_vm5, %v9265_v47 }
0x1677   :  { %6946 = vmatprep.subr.bf16.mxu0 %v7364_v54  ;;  %v5445_v54 = vld [vmem:[%s8866_s12] ss:$0 sm:$0xff] }
0x167a   :  { %6948 = vmatpush3.bf16.msra.mxu0 %v6947_v41 }
0x1748   :  { %v5195_v1 = vpop.f32.mrb[30].mxu0 }
0x1749   :  { %v5196_v27 = vadd.f32 %v5443_v16, %v5195_v1  ;;  %v5491_v13 = vpop.f32.mrb[31].mxu0 }
0x174b   :  { %v5199_v47 = vmax.f32 %v5196_v27, 0.0 }
0x174d   :  { %5501 = vmatmul.mubr.msk.f32.vlgmr.msra.gmra.mrb[32].mxu0 %vm5040_vm7, %v5199_v47 }
0x1820   :  { %v5280_v62 = vpop.f32.mrb[32].mxu0 }
0x1821   :  { %v5281_v31 = vadd.f32 %v5445_v54, %v5280_v62  ;;  %v5502_v45 = vpop.f32.mrb[33].mxu0 }
0x1823   :  { %v5447_v35 = vclamps-f32 %v5281_v31, 1.0 }
0x1825   :  { %5287 = vst.msk [vmem:[#allocation7] sm:$0x3] %vm5286_vm8, %v5447_v35 }
0x1826   :  { %7338 = shalt.err (!%p7335_p6)
}
0x1827   :  { %s7339_s12 = scalar_lea.hbm %s8867_s13, 32 }
0x1828   :  { %p7340_p7 = scmp.ne.s32.totalorder %s8867_s13, %s7339_s12  ;;  %p7343_p8 = scmp.lt.u32.totalorder %s7339_s12, %s8867_s13 }
0x182a   :  { %p7345_p9 = pnand %p7343_p8, %p7340_p7 }
0x182c   :  { %7348 = shalt.err (!%p7345_p9)
}
0x182d   :  { %5297 = dma.vmem_to_hbm [thread:$0]  %s5295_s14, 32, %s8867_s13, [#allocation4]  }
0x182e   :  { %7353 = dma.done.wait [#allocation4], 32  }
0x182f   :  { %7354 = vsyncadd [#allocation4], 4294967264 }
0x1830   :  { %5301 = vsyncpa [#allocation3], 1 }
0x1831   :  { %5302 = vsyncpa [#allocation6], 1 }
0x1832   :  { %5303 = vsyncpa [#allocation4], 1 }

</bundles_post_ra>
